<compile_context>
chip_gen: v6e
topology: v6e:2x2x1
jax: 0.10.0
libtpu: 0.0.40
codegen_flags: <defaults>
</compile_context>

<pallas_src>
import math
import functools

import numpy as np
import jax
import jax.numpy as jnp
from jax.experimental import pallas as pl
from jax.experimental.pallas import tpu as pltpu


# ------------------------------ Pallas kernel -------------------------------

def _fused_forward_kernel(x_ref, w_ref, b_ref, fcw_ref, fcb_ref, mask_ref, o_ref,
                          act_ref, col_ref, *, taps, halo):
    # x_ref:    (F, HW)        bf16  channel-padded input image, spatial on lanes
    # w_ref:    (L, F, 9F)     bf16  stacked im2col conv weights
    # b_ref:    (L, F, 1)      f32   stacked conv biases
    # fcw_ref:  (C, F)         bf16  fc weight
    # fcb_ref:  (C, 1)         f32   fc bias
    # mask_ref: (9, 1, HW)     f32   per-tap horizontal validity masks
    # o_ref:    (C, 1)         f32   logits for this image
    # act_ref:  (F, HW + 2*halo) f32 haloed activation buffer (VMEM scratch)
    # col_ref:  (9F, HW)       bf16  im2col matrix (VMEM scratch)
    f, hw = x_ref.shape
    num_layers = w_ref.shape[0]

    # Zero the haloed buffer once: the halo provides the vertical zero padding of
    # every conv for free (only the interior is ever overwritten).
    act_ref[...] = jnp.zeros_like(act_ref)
    act_ref[:, halo:halo + hw] = x_ref[...].astype(jnp.float32)

    for layer in range(num_layers):
        # Build the im2col matrix: each tap is a contiguous lane-window read from
        # the haloed buffer (no reshape/transpose), masked only where a horizontal
        # shift would wrap across image rows.
        for t, (start, use_mask) in enumerate(taps):
            piece = act_ref[:, start:start + hw]                      # (F, HW) f32
            if use_mask:
                piece = piece * mask_ref[t]                           # (1, HW) bcast
            col_ref[t * f:(t + 1) * f, :] = piece.astype(col_ref.dtype)

        # One K = 9*F matmul on the MXU, bf16 x bf16 with f32 accumulation.
        acc = jnp.dot(w_ref[layer], col_ref[...],
                      preferred_element_type=jnp.float32)             # (F, HW) f32
        acc = acc + b_ref[layer]                                      # bias (F, 1)
        act_ref[:, halo:halo + hw] = acc * jax.nn.sigmoid(acc)        # Swish, f32

    # Head: Linear applied per spatial position, then mean over the lane axis.
    # Equivalent to AdaptiveAvgPool2d(1) -> Flatten -> Linear (Linear is linear).
    act5 = act_ref[:, halo:halo + hw].astype(fcw_ref.dtype)           # (F, HW) bf16
    per_pos = jnp.dot(fcw_ref[...], act5,
                      preferred_element_type=jnp.float32)             # (C, HW) f32
    logits = jnp.mean(per_pos, axis=1, keepdims=True) + fcb_ref[...]  # (C, 1)
    o_ref[...] = logits.astype(o_ref.dtype)


# --------------------------------- Wrapper ----------------------------------

@jax.jit
def init_baseline_forward(x_nchw, packed):
    """InitBaseline forward. x_nchw: (N, 3, H, W) f32 -> (N, num_classes) f32."""
    n, cin, height, width = x_nchw.shape
    hw = height * width
    num_layers, f, _ = packed["conv_w"].shape
    num_classes = packed["fc_w"].shape[0]
    halo = width + 1                                # covers shifts of +-(W+1)

    # Lane-dense input: flatten spatial onto the lane axis; zero-pad channels 3 -> f
    # (padded conv1 weights are zero, so the math is unchanged). bf16 halves DMA.
    x = x_nchw.reshape(n, cin, hw)
    x = jnp.pad(x, ((0, 0), (0, f - cin), (0, 0))).astype(jnp.bfloat16)

    # Static per-tap window starts inside the haloed buffer + horizontal masks
    # (computed with numpy at trace time; vertical padding is handled by the halo).
    xx = np.arange(hw) % width
    tap_mask = np.ones((9, 1, hw), np.float32)
    taps = []
    for dy in range(3):
        for dx in range(3):
            shift = (dy - 1) * width + (dx - 1)
            taps.append((shift + halo, dx != 1))
            if dx != 1:
                valid = (xx + (dx - 1) >= 0) & (xx + (dx - 1) < width)
                tap_mask[dy * 3 + dx, 0, :] = valid.astype(np.float32)
    taps = tuple(taps)
    tap_mask = jnp.asarray(tap_mask)

    kernel = functools.partial(_fused_forward_kernel, taps=taps, halo=halo)
    out = pl.pallas_call(
        kernel,
        out_shape=jax.ShapeDtypeStruct((n, num_classes, 1), jnp.float32),
        grid_spec=pltpu.PrefetchScalarGridSpec(
            num_scalar_prefetch=0,
            grid=(n,),                                                 # one image / step
            in_specs=[
                pl.BlockSpec((pl.Squeezed(), f, hw), lambda i: (i, 0, 0)),    # x
                pl.BlockSpec((num_layers, f, 9 * f), lambda i: (0, 0, 0)),    # conv W
                pl.BlockSpec((num_layers, f, 1), lambda i: (0, 0, 0)),        # conv b
                pl.BlockSpec((num_classes, f), lambda i: (0, 0)),             # fc W
                pl.BlockSpec((num_classes, 1), lambda i: (0, 0)),             # fc b
                pl.BlockSpec((9, 1, hw), lambda i: (0, 0, 0)),                # tap masks
            ],
            out_specs=pl.BlockSpec((pl.Squeezed(), num_classes, 1),
                                   lambda i: (i, 0, 0)),
            scratch_shapes=[
                pltpu.VMEM((f, hw + 2 * halo), jnp.float32),   # haloed activations
                pltpu.VMEM((9 * f, hw), jnp.bfloat16),         # im2col matrix
            ],
        ),
        compiler_params=pltpu.CompilerParams(
            # Images are independent -> shard the batch across TensorCores (v7x).
            dimension_semantics=("parallel",)),
    )(x, packed["conv_w"], packed["conv_b"], packed["fc_w"], packed["fc_b"], tap_mask)
    return out.reshape(n, num_classes)


# ------------------------ Parameters (PyTorch layout) ------------------------

def init_params(key, num_classes, f=32):
    """Matches InitBaseline.__init__: conv W ~ N(0, sqrt(2/(9*Cin))), zero bias;
    fc W ~ N(0, sqrt(2/in_features)), zero bias.  Kept in PyTorch layouts."""
    params = {}
    cins = [3, f, f, f, f]
    keys = jax.random.split(key, 6)
    for i, cin in enumerate(cins):
        std = math.sqrt(2.0 / (3 * 3 * cin))
        params[f"conv{i + 1}_w"] = (
            jax.random.normal(keys[i], (f, cin, 3, 3), jnp.float32) * std)   # OIHW
        params[f"conv{i + 1}_b"] = jnp.zeros((f,), jnp.float32)
    std = math.sqrt(2.0 / f)
    params["fc_w"] = jax.random.normal(keys[5], (num_classes, f), jnp.float32) * std
    params["fc_b"] = jnp.zeros((num_classes,), jnp.float32)
    return params


def pack_params(params, f=32, num_layers=5):
    """Convert PyTorch-layout params to the kernel's stacked im2col layout."""
    ws, bs = [], []
    for i in range(num_layers):
        w_pt = params[f"conv{i + 1}_w"]                        # (Cout, Cin, 3, 3)
        cin = w_pt.shape[1]
        if cin < f:                                            # layer 1: pad Cin -> f
            w_pt = jnp.pad(w_pt, ((0, 0), (0, f - cin), (0, 0), (0, 0)))
        # (Cout, Cin, ky, kx) -> (Cout, ky, kx, Cin) -> (Cout, 9*Cin), tap-major K.
        ws.append(jnp.transpose(w_pt, (0, 2, 3, 1)).reshape(f, 9 * f))
        bs.append(params[f"conv{i + 1}_b"].reshape(f, 1))
    return {
        "conv_w": jnp.stack(ws).astype(jnp.bfloat16),          # (5, f, 9f)
        "conv_b": jnp.stack(bs).astype(jnp.float32),           # (5, f, 1)
        "fc_w": params["fc_w"].astype(jnp.bfloat16),           # (C, f)
        "fc_b": params["fc_b"].reshape(-1, 1).astype(jnp.float32),  # (C, 1)
    }


# --------------------------- Pure-JAX reference ------------------------------

def reference_forward(x_nchw, params):
    """Reference with the same quantization points (bf16 matmul inputs, f32 math)."""
    hi = jax.lax.Precision.HIGHEST
    q = lambda a: a.astype(jnp.bfloat16).astype(jnp.float32)
    act = q(x_nchw)
    for i in range(5):
        w = q(params[f"conv{i + 1}_w"])
        b = params[f"conv{i + 1}_b"]
        out = jax.lax.conv_general_dilated(
            act, w, window_strides=(1, 1), padding=((1, 1), (1, 1)),
            dimension_numbers=("NCHW", "OIHW", "NCHW"), precision=hi)
        out = out + b[None, :, None, None]
        act = q(out * jax.nn.sigmoid(out))                     # Swish
    per_pos = jnp.einsum("cf,nfhw->nchw", q(params["fc_w"]), act, precision=hi)
    return per_pos.mean(axis=(2, 3)) + params["fc_b"][None, :]


# ----------------------------------- Main ------------------------------------

if __name__ == "__main__":
    num_classes = 10
    key = jax.random.PRNGKey(0)
    k_x, k_p = jax.random.split(key)

    # Small input consistent with the module: batch=2, 3-channel RGB, 16x16 spatial.
    x = jax.random.normal(k_x, (2, 3, 16, 16), jnp.float32)    # NCHW like PyTorch
    params = init_params(k_p, num_classes)
    packed = pack_params(params)

    out = init_baseline_forward(x, packed)
    jax.block_until_ready(out)
    assert out.shape == (2, num_classes)

    # Correctness check against the pure-JAX reference (matching bf16/f32 math).
    ref = reference_forward(x, params)
    err = float(jnp.max(jnp.abs(out - ref)))
    assert err < 2e-2, f"max |kernel - reference| = {err}"

    print("KERNEL_OK")
</pallas_src>

<mosaic_0001>
module attributes {stable_mosaic.version = 11 : i64} {
  func.func @_fused_forward_kernel(%arg0: i32, %arg1: memref<1x32x256xbf16, #tpu.memory_space<vmem>>, %arg2: memref<5x32x288xbf16, #tpu.memory_space<vmem>>, %arg3: memref<5x32x1xf32, #tpu.memory_space<vmem>>, %arg4: memref<10x32xbf16, #tpu.memory_space<vmem>>, %arg5: memref<10x1xf32, #tpu.memory_space<vmem>>, %arg6: memref<9x1x256xf32, #tpu.memory_space<vmem>>, %arg7: memref<1x10x1xf32, #tpu.memory_space<vmem>>, %arg8: memref<32x290xf32, #tpu.memory_space<vmem>>, %arg9: memref<288x256xbf16, #tpu.memory_space<vmem>>) attributes {dimension_semantics = [#tpu.dimension_semantics<parallel>], iteration_bounds = array<i64: 2>, scalar_prefetch = 0 : i64, scratch_operands = 2 : i64, tpu.core_type = #tpu.core_type<tc>, window_params = [{transform_indices = @transform_0, window_bounds = array<i64: 1, 32, 256>}, {pipeline_mode = #tpu.pipeline_mode<synchronous>, transform_indices = @transform_1, window_bounds = array<i64: 5, 32, 288>}, {pipeline_mode = #tpu.pipeline_mode<synchronous>, transform_indices = @transform_2, window_bounds = array<i64: 5, 32, 1>}, {pipeline_mode = #tpu.pipeline_mode<synchronous>, transform_indices = @transform_3, window_bounds = array<i64: 10, 32>}, {pipeline_mode = #tpu.pipeline_mode<synchronous>, transform_indices = @transform_4, window_bounds = array<i64: 10, 1>}, {pipeline_mode = #tpu.pipeline_mode<synchronous>, transform_indices = @transform_5, window_bounds = array<i64: 9, 1, 256>}, {transform_indices = @transform_6, window_bounds = array<i64: 1, 10, 1>}]} {
    %cst = arith.constant 0.000000e+00 : f32
    %0 = vector.broadcast %cst : f32 to vector<32x290xf32>
    %c0 = arith.constant 0 : index
    %c0_0 = arith.constant 0 : index
    %1 = vector.load %arg8[%c0, %c0_0] : memref<32x290xf32, #tpu.memory_space<vmem>>, vector<32x290xf32>
    tpu.vector_store %arg8[%c0, %c0_0], %0 {strides = array<i32>} : memref<32x290xf32, #tpu.memory_space<vmem>>, vector<32x290xf32>,
    %c0_1 = arith.constant 0 : index
    %c0_2 = arith.constant 0 : index
    %c0_3 = arith.constant 0 : index
    %2 = vector.load %arg1[%c0_1, %c0_2, %c0_3] : memref<1x32x256xbf16, #tpu.memory_space<vmem>>, vector<1x32x256xbf16>
    %3 = vector.shape_cast %2 : vector<1x32x256xbf16> to vector<32x256xbf16>
    %4 = arith.extf %3 : vector<32x256xbf16> to vector<32x256xf32>
    %c0_4 = arith.constant 0 : index
    %c17 = arith.constant 17 : index
    %5 = vector.load %arg8[%c0_4, %c17] : memref<32x290xf32, #tpu.memory_space<vmem>>, vector<32x256xf32>
    tpu.vector_store %arg8[%c0_4, %c17], %4 {strides = array<i32>} : memref<32x290xf32, #tpu.memory_space<vmem>>, vector<32x256xf32>,
    %c0_5 = arith.constant 0 : index
    %c0_6 = arith.constant 0 : index
    %6 = vector.load %arg8[%c0_5, %c0_6] : memref<32x290xf32, #tpu.memory_space<vmem>>, vector<32x256xf32>
    %c0_7 = arith.constant 0 : index
    %c0_8 = arith.constant 0 : index
    %c0_9 = arith.constant 0 : index
    %7 = vector.load %arg6[%c0_7, %c0_8, %c0_9] : memref<9x1x256xf32, #tpu.memory_space<vmem>>, vector<1x1x256xf32>
    %8 = vector.shape_cast %7 : vector<1x1x256xf32> to vector<1x256xf32>
    %9 = vector.broadcast %8 : vector<1x256xf32> to vector<32x256xf32>
    %10 = arith.mulf %6, %9 : vector<32x256xf32>
    %11 = arith.truncf %10 : vector<32x256xf32> to vector<32x256xbf16>
    %c0_10 = arith.constant 0 : index
    %c0_11 = arith.constant 0 : index
    %12 = vector.load %arg9[%c0_10, %c0_11] : memref<288x256xbf16, #tpu.memory_space<vmem>>, vector<32x256xbf16>
    tpu.vector_store %arg9[%c0_10, %c0_11], %11 {strides = array<i32>} : memref<288x256xbf16, #tpu.memory_space<vmem>>, vector<32x256xbf16>,
    %c0_12 = arith.constant 0 : index
    %c1 = arith.constant 1 : index
    %13 = vector.load %arg8[%c0_12, %c1] : memref<32x290xf32, #tpu.memory_space<vmem>>, vector<32x256xf32>
    %14 = arith.truncf %13 : vector<32x256xf32> to vector<32x256xbf16>
    %c32 = arith.constant 32 : index
    %c0_13 = arith.constant 0 : index
    %15 = vector.load %arg9[%c32, %c0_13] : memref<288x256xbf16, #tpu.memory_space<vmem>>, vector<32x256xbf16>
    tpu.vector_store %arg9[%c32, %c0_13], %14 {strides = array<i32>} : memref<288x256xbf16, #tpu.memory_space<vmem>>, vector<32x256xbf16>,
    %c0_14 = arith.constant 0 : index
    %c2 = arith.constant 2 : index
    %16 = vector.load %arg8[%c0_14, %c2] : memref<32x290xf32, #tpu.memory_space<vmem>>, vector<32x256xf32>
    %c2_15 = arith.constant 2 : index
    %c0_16 = arith.constant 0 : index
    %c0_17 = arith.constant 0 : index
    %17 = vector.load %arg6[%c2_15, %c0_16, %c0_17] : memref<9x1x256xf32, #tpu.memory_space<vmem>>, vector<1x1x256xf32>
    %18 = vector.shape_cast %17 : vector<1x1x256xf32> to vector<1x256xf32>
    %19 = vector.broadcast %18 : vector<1x256xf32> to vector<32x256xf32>
    %20 = arith.mulf %16, %19 : vector<32x256xf32>
    %21 = arith.truncf %20 : vector<32x256xf32> to vector<32x256xbf16>
    %c64 = arith.constant 64 : index
    %c0_18 = arith.constant 0 : index
    %22 = vector.load %arg9[%c64, %c0_18] : memref<288x256xbf16, #tpu.memory_space<vmem>>, vector<32x256xbf16>
    tpu.vector_store %arg9[%c64, %c0_18], %21 {strides = array<i32>} : memref<288x256xbf16, #tpu.memory_space<vmem>>, vector<32x256xbf16>,
    %c0_19 = arith.constant 0 : index
    %c16 = arith.constant 16 : index
    %23 = vector.load %arg8[%c0_19, %c16] : memref<32x290xf32, #tpu.memory_space<vmem>>, vector<32x256xf32>
    %c3 = arith.constant 3 : index
    %c0_20 = arith.constant 0 : index
    %c0_21 = arith.constant 0 : index
    %24 = vector.load %arg6[%c3, %c0_20, %c0_21] : memref<9x1x256xf32, #tpu.memory_space<vmem>>, vector<1x1x256xf32>
    %25 = vector.shape_cast %24 : vector<1x1x256xf32> to vector<1x256xf32>
    %26 = vector.broadcast %25 : vector<1x256xf32> to vector<32x256xf32>
    %27 = arith.mulf %23, %26 : vector<32x256xf32>
    %28 = arith.truncf %27 : vector<32x256xf32> to vector<32x256xbf16>
    %c96 = arith.constant 96 : index
    %c0_22 = arith.constant 0 : index
    %29 = vector.load %arg9[%c96, %c0_22] : memref<288x256xbf16, #tpu.memory_space<vmem>>, vector<32x256xbf16>
    tpu.vector_store %arg9[%c96, %c0_22], %28 {strides = array<i32>} : memref<288x256xbf16, #tpu.memory_space<vmem>>, vector<32x256xbf16>,
    %c0_23 = arith.constant 0 : index
    %c17_24 = arith.constant 17 : index
    %30 = vector.load %arg8[%c0_23, %c17_24] : memref<32x290xf32, #tpu.memory_space<vmem>>, vector<32x256xf32>
    %31 = arith.truncf %30 : vector<32x256xf32> to vector<32x256xbf16>
    %c128 = arith.constant 128 : index
    %c0_25 = arith.constant 0 : index
    %32 = vector.load %arg9[%c128, %c0_25] : memref<288x256xbf16, #tpu.memory_space<vmem>>, vector<32x256xbf16>
    tpu.vector_store %arg9[%c128, %c0_25], %31 {strides = array<i32>} : memref<288x256xbf16, #tpu.memory_space<vmem>>, vector<32x256xbf16>,
    %c0_26 = arith.constant 0 : index
    %c18 = arith.constant 18 : index
    %33 = vector.load %arg8[%c0_26, %c18] : memref<32x290xf32, #tpu.memory_space<vmem>>, vector<32x256xf32>
    %c5 = arith.constant 5 : index
    %c0_27 = arith.constant 0 : index
    %c0_28 = arith.constant 0 : index
    %34 = vector.load %arg6[%c5, %c0_27, %c0_28] : memref<9x1x256xf32, #tpu.memory_space<vmem>>, vector<1x1x256xf32>
    %35 = vector.shape_cast %34 : vector<1x1x256xf32> to vector<1x256xf32>
    %36 = vector.broadcast %35 : vector<1x256xf32> to vector<32x256xf32>
    %37 = arith.mulf %33, %36 : vector<32x256xf32>
    %38 = arith.truncf %37 : vector<32x256xf32> to vector<32x256xbf16>
    %c160 = arith.constant 160 : index
    %c0_29 = arith.constant 0 : index
    %39 = vector.load %arg9[%c160, %c0_29] : memref<288x256xbf16, #tpu.memory_space<vmem>>, vector<32x256xbf16>
    tpu.vector_store %arg9[%c160, %c0_29], %38 {strides = array<i32>} : memref<288x256xbf16, #tpu.memory_space<vmem>>, vector<32x256xbf16>,
    %c0_30 = arith.constant 0 : index
    %c32_31 = arith.constant 32 : index
    %40 = vector.load %arg8[%c0_30, %c32_31] : memref<32x290xf32, #tpu.memory_space<vmem>>, vector<32x256xf32>
    %c6 = arith.constant 6 : index
    %c0_32 = arith.constant 0 : index
    %c0_33 = arith.constant 0 : index
    %41 = vector.load %arg6[%c6, %c0_32, %c0_33] : memref<9x1x256xf32, #tpu.memory_space<vmem>>, vector<1x1x256xf32>
    %42 = vector.shape_cast %41 : vector<1x1x256xf32> to vector<1x256xf32>
    %43 = vector.broadcast %42 : vector<1x256xf32> to vector<32x256xf32>
    %44 = arith.mulf %40, %43 : vector<32x256xf32>
    %45 = arith.truncf %44 : vector<32x256xf32> to vector<32x256xbf16>
    %c192 = arith.constant 192 : index
    %c0_34 = arith.constant 0 : index
    %46 = vector.load %arg9[%c192, %c0_34] : memref<288x256xbf16, #tpu.memory_space<vmem>>, vector<32x256xbf16>
    tpu.vector_store %arg9[%c192, %c0_34], %45 {strides = array<i32>} : memref<288x256xbf16, #tpu.memory_space<vmem>>, vector<32x256xbf16>,
    %c0_35 = arith.constant 0 : index
    %c33 = arith.constant 33 : index
    %47 = vector.load %arg8[%c0_35, %c33] : memref<32x290xf32, #tpu.memory_space<vmem>>, vector<32x256xf32>
    %48 = arith.truncf %47 : vector<32x256xf32> to vector<32x256xbf16>
    %c224 = arith.constant 224 : index
    %c0_36 = arith.constant 0 : index
    %49 = vector.load %arg9[%c224, %c0_36] : memref<288x256xbf16, #tpu.memory_space<vmem>>, vector<32x256xbf16>
    tpu.vector_store %arg9[%c224, %c0_36], %48 {strides = array<i32>} : memref<288x256xbf16, #tpu.memory_space<vmem>>, vector<32x256xbf16>,
    %c0_37 = arith.constant 0 : index
    %c34 = arith.constant 34 : index
    %50 = vector.load %arg8[%c0_37, %c34] : memref<32x290xf32, #tpu.memory_space<vmem>>, vector<32x256xf32>
    %c8 = arith.constant 8 : index
    %c0_38 = arith.constant 0 : index
    %c0_39 = arith.constant 0 : index
    %51 = vector.load %arg6[%c8, %c0_38, %c0_39] : memref<9x1x256xf32, #tpu.memory_space<vmem>>, vector<1x1x256xf32>
    %52 = vector.shape_cast %51 : vector<1x1x256xf32> to vector<1x256xf32>
    %53 = vector.broadcast %52 : vector<1x256xf32> to vector<32x256xf32>
    %54 = arith.mulf %50, %53 : vector<32x256xf32>
    %55 = arith.truncf %54 : vector<32x256xf32> to vector<32x256xbf16>
    %c256 = arith.constant 256 : index
    %c0_40 = arith.constant 0 : index
    %56 = vector.load %arg9[%c256, %c0_40] : memref<288x256xbf16, #tpu.memory_space<vmem>>, vector<32x256xbf16>
    tpu.vector_store %arg9[%c256, %c0_40], %55 {strides = array<i32>} : memref<288x256xbf16, #tpu.memory_space<vmem>>, vector<32x256xbf16>,
    %c0_41 = arith.constant 0 : index
    %c0_42 = arith.constant 0 : index
    %c0_43 = arith.constant 0 : index
    %57 = vector.load %arg2[%c0_41, %c0_42, %c0_43] : memref<5x32x288xbf16, #tpu.memory_space<vmem>>, vector<1x32x288xbf16>
    %58 = vector.shape_cast %57 : vector<1x32x288xbf16> to vector<32x288xbf16>
    %c0_44 = arith.constant 0 : index
    %c0_45 = arith.constant 0 : index
    %59 = vector.load %arg9[%c0_44, %c0_45] : memref<288x256xbf16, #tpu.memory_space<vmem>>, vector<288x256xbf16>
    %cst_46 = arith.constant dense<0.000000e+00> : vector<32x256xf32>
    %60 = tpu.matmul %58, %59, %cst_46 {dimension_numbers = #tpu.dot_dimension_numbers<[1], [0], [0], [1], [0, 0, 1, 1], [], []>} : vector<32x288xbf16>, vector<288x256xbf16>, vector<32x256xf32> -> vector<32x256xf32>
    %c0_47 = arith.constant 0 : index
    %c0_48 = arith.constant 0 : index
    %c0_49 = arith.constant 0 : index
    %61 = vector.load %arg3[%c0_47, %c0_48, %c0_49] : memref<5x32x1xf32, #tpu.memory_space<vmem>>, vector<1x32x1xf32>
    %62 = vector.shape_cast %61 : vector<1x32x1xf32> to vector<32x1xf32>
    %63 = vector.broadcast %62 : vector<32x1xf32> to vector<32x256xf32>
    %64 = arith.addf %60, %63 : vector<32x256xf32>
    %65 = arith.negf %64 : vector<32x256xf32>
    %66 = math.exp %65 : vector<32x256xf32>
    %cst_50 = arith.constant 1.000000e+00 : f32
    %67 = vector.broadcast %cst_50 : f32 to vector<32x256xf32>
    %68 = arith.addf %67, %66 : vector<32x256xf32>
    %69 = arith.divf %67, %68 : vector<32x256xf32>
    %70 = arith.mulf %64, %69 : vector<32x256xf32>
    %c0_51 = arith.constant 0 : index
    %c17_52 = arith.constant 17 : index
    %71 = vector.load %arg8[%c0_51, %c17_52] : memref<32x290xf32, #tpu.memory_space<vmem>>, vector<32x256xf32>
    tpu.vector_store %arg8[%c0_51, %c17_52], %70 {strides = array<i32>} : memref<32x290xf32, #tpu.memory_space<vmem>>, vector<32x256xf32>,
    %c0_53 = arith.constant 0 : index
    %c0_54 = arith.constant 0 : index
    %72 = vector.load %arg8[%c0_53, %c0_54] : memref<32x290xf32, #tpu.memory_space<vmem>>, vector<32x256xf32>
    %c0_55 = arith.constant 0 : index
    %c0_56 = arith.constant 0 : index
    %c0_57 = arith.constant 0 : index
    %73 = vector.load %arg6[%c0_55, %c0_56, %c0_57] : memref<9x1x256xf32, #tpu.memory_space<vmem>>, vector<1x1x256xf32>
    %74 = vector.shape_cast %73 : vector<1x1x256xf32> to vector<1x256xf32>
    %75 = vector.broadcast %74 : vector<1x256xf32> to vector<32x256xf32>
    %76 = arith.mulf %72, %75 : vector<32x256xf32>
    %77 = arith.truncf %76 : vector<32x256xf32> to vector<32x256xbf16>
    %c0_58 = arith.constant 0 : index
    %c0_59 = arith.constant 0 : index
    %78 = vector.load %arg9[%c0_58, %c0_59] : memref<288x256xbf16, #tpu.memory_space<vmem>>, vector<32x256xbf16>
    tpu.vector_store %arg9[%c0_58, %c0_59], %77 {strides = array<i32>} : memref<288x256xbf16, #tpu.memory_space<vmem>>, vector<32x256xbf16>,
    %c0_60 = arith.constant 0 : index
    %c1_61 = arith.constant 1 : index
    %79 = vector.load %arg8[%c0_60, %c1_61] : memref<32x290xf32, #tpu.memory_space<vmem>>, vector<32x256xf32>
    %80 = arith.truncf %79 : vector<32x256xf32> to vector<32x256xbf16>
    %c32_62 = arith.constant 32 : index
    %c0_63 = arith.constant 0 : index
    %81 = vector.load %arg9[%c32_62, %c0_63] : memref<288x256xbf16, #tpu.memory_space<vmem>>, vector<32x256xbf16>
    tpu.vector_store %arg9[%c32_62, %c0_63], %80 {strides = array<i32>} : memref<288x256xbf16, #tpu.memory_space<vmem>>, vector<32x256xbf16>,
    %c0_64 = arith.constant 0 : index
    %c2_65 = arith.constant 2 : index
    %82 = vector.load %arg8[%c0_64, %c2_65] : memref<32x290xf32, #tpu.memory_space<vmem>>, vector<32x256xf32>
    %c2_66 = arith.constant 2 : index
    %c0_67 = arith.constant 0 : index
    %c0_68 = arith.constant 0 : index
    %83 = vector.load %arg6[%c2_66, %c0_67, %c0_68] : memref<9x1x256xf32, #tpu.memory_space<vmem>>, vector<1x1x256xf32>
    %84 = vector.shape_cast %83 : vector<1x1x256xf32> to vector<1x256xf32>
    %85 = vector.broadcast %84 : vector<1x256xf32> to vector<32x256xf32>
    %86 = arith.mulf %82, %85 : vector<32x256xf32>
    %87 = arith.truncf %86 : vector<32x256xf32> to vector<32x256xbf16>
    %c64_69 = arith.constant 64 : index
    %c0_70 = arith.constant 0 : index
    %88 = vector.load %arg9[%c64_69, %c0_70] : memref<288x256xbf16, #tpu.memory_space<vmem>>, vector<32x256xbf16>
    tpu.vector_store %arg9[%c64_69, %c0_70], %87 {strides = array<i32>} : memref<288x256xbf16, #tpu.memory_space<vmem>>, vector<32x256xbf16>,
    %c0_71 = arith.constant 0 : index
    %c16_72 = arith.constant 16 : index
    %89 = vector.load %arg8[%c0_71, %c16_72] : memref<32x290xf32, #tpu.memory_space<vmem>>, vector<32x256xf32>
    %c3_73 = arith.constant 3 : index
    %c0_74 = arith.constant 0 : index
    %c0_75 = arith.constant 0 : index
    %90 = vector.load %arg6[%c3_73, %c0_74, %c0_75] : memref<9x1x256xf32, #tpu.memory_space<vmem>>, vector<1x1x256xf32>
    %91 = vector.shape_cast %90 : vector<1x1x256xf32> to vector<1x256xf32>
    %92 = vector.broadcast %91 : vector<1x256xf32> to vector<32x256xf32>
    %93 = arith.mulf %89, %92 : vector<32x256xf32>
    %94 = arith.truncf %93 : vector<32x256xf32> to vector<32x256xbf16>
    %c96_76 = arith.constant 96 : index
    %c0_77 = arith.constant 0 : index
    %95 = vector.load %arg9[%c96_76, %c0_77] : memref<288x256xbf16, #tpu.memory_space<vmem>>, vector<32x256xbf16>
    tpu.vector_store %arg9[%c96_76, %c0_77], %94 {strides = array<i32>} : memref<288x256xbf16, #tpu.memory_space<vmem>>, vector<32x256xbf16>,
    %c0_78 = arith.constant 0 : index
    %c17_79 = arith.constant 17 : index
    %96 = vector.load %arg8[%c0_78, %c17_79] : memref<32x290xf32, #tpu.memory_space<vmem>>, vector<32x256xf32>
    %97 = arith.truncf %96 : vector<32x256xf32> to vector<32x256xbf16>
    %c128_80 = arith.constant 128 : index
    %c0_81 = arith.constant 0 : index
    %98 = vector.load %arg9[%c128_80, %c0_81] : memref<288x256xbf16, #tpu.memory_space<vmem>>, vector<32x256xbf16>
    tpu.vector_store %arg9[%c128_80, %c0_81], %97 {strides = array<i32>} : memref<288x256xbf16, #tpu.memory_space<vmem>>, vector<32x256xbf16>,
    %c0_82 = arith.constant 0 : index
    %c18_83 = arith.constant 18 : index
    %99 = vector.load %arg8[%c0_82, %c18_83] : memref<32x290xf32, #tpu.memory_space<vmem>>, vector<32x256xf32>
    %c5_84 = arith.constant 5 : index
    %c0_85 = arith.constant 0 : index
    %c0_86 = arith.constant 0 : index
    %100 = vector.load %arg6[%c5_84, %c0_85, %c0_86] : memref<9x1x256xf32, #tpu.memory_space<vmem>>, vector<1x1x256xf32>
    %101 = vector.shape_cast %100 : vector<1x1x256xf32> to vector<1x256xf32>
    %102 = vector.broadcast %101 : vector<1x256xf32> to vector<32x256xf32>
    %103 = arith.mulf %99, %102 : vector<32x256xf32>
    %104 = arith.truncf %103 : vector<32x256xf32> to vector<32x256xbf16>
    %c160_87 = arith.constant 160 : index
    %c0_88 = arith.constant 0 : index
    %105 = vector.load %arg9[%c160_87, %c0_88] : memref<288x256xbf16, #tpu.memory_space<vmem>>, vector<32x256xbf16>
    tpu.vector_store %arg9[%c160_87, %c0_88], %104 {strides = array<i32>} : memref<288x256xbf16, #tpu.memory_space<vmem>>, vector<32x256xbf16>,
    %c0_89 = arith.constant 0 : index
    %c32_90 = arith.constant 32 : index
    %106 = vector.load %arg8[%c0_89, %c32_90] : memref<32x290xf32, #tpu.memory_space<vmem>>, vector<32x256xf32>
    %c6_91 = arith.constant 6 : index
    %c0_92 = arith.constant 0 : index
    %c0_93 = arith.constant 0 : index
    %107 = vector.load %arg6[%c6_91, %c0_92, %c0_93] : memref<9x1x256xf32, #tpu.memory_space<vmem>>, vector<1x1x256xf32>
    %108 = vector.shape_cast %107 : vector<1x1x256xf32> to vector<1x256xf32>
    %109 = vector.broadcast %108 : vector<1x256xf32> to vector<32x256xf32>
    %110 = arith.mulf %106, %109 : vector<32x256xf32>
    %111 = arith.truncf %110 : vector<32x256xf32> to vector<32x256xbf16>
    %c192_94 = arith.constant 192 : index
    %c0_95 = arith.constant 0 : index
    %112 = vector.load %arg9[%c192_94, %c0_95] : memref<288x256xbf16, #tpu.memory_space<vmem>>, vector<32x256xbf16>
    tpu.vector_store %arg9[%c192_94, %c0_95], %111 {strides = array<i32>} : memref<288x256xbf16, #tpu.memory_space<vmem>>, vector<32x256xbf16>,
    %c0_96 = arith.constant 0 : index
    %c33_97 = arith.constant 33 : index
    %113 = vector.load %arg8[%c0_96, %c33_97] : memref<32x290xf32, #tpu.memory_space<vmem>>, vector<32x256xf32>
    %114 = arith.truncf %113 : vector<32x256xf32> to vector<32x256xbf16>
    %c224_98 = arith.constant 224 : index
    %c0_99 = arith.constant 0 : index
    %115 = vector.load %arg9[%c224_98, %c0_99] : memref<288x256xbf16, #tpu.memory_space<vmem>>, vector<32x256xbf16>
    tpu.vector_store %arg9[%c224_98, %c0_99], %114 {strides = array<i32>} : memref<288x256xbf16, #tpu.memory_space<vmem>>, vector<32x256xbf16>,
    %c0_100 = arith.constant 0 : index
    %c34_101 = arith.constant 34 : index
    %116 = vector.load %arg8[%c0_100, %c34_101] : memref<32x290xf32, #tpu.memory_space<vmem>>, vector<32x256xf32>
    %c8_102 = arith.constant 8 : index
    %c0_103 = arith.constant 0 : index
    %c0_104 = arith.constant 0 : index
    %117 = vector.load %arg6[%c8_102, %c0_103, %c0_104] : memref<9x1x256xf32, #tpu.memory_space<vmem>>, vector<1x1x256xf32>
    %118 = vector.shape_cast %117 : vector<1x1x256xf32> to vector<1x256xf32>
    %119 = vector.broadcast %118 : vector<1x256xf32> to vector<32x256xf32>
    %120 = arith.mulf %116, %119 : vector<32x256xf32>
    %121 = arith.truncf %120 : vector<32x256xf32> to vector<32x256xbf16>
    %c256_105 = arith.constant 256 : index
    %c0_106 = arith.constant 0 : index
    %122 = vector.load %arg9[%c256_105, %c0_106] : memref<288x256xbf16, #tpu.memory_space<vmem>>, vector<32x256xbf16>
    tpu.vector_store %arg9[%c256_105, %c0_106], %121 {strides = array<i32>} : memref<288x256xbf16, #tpu.memory_space<vmem>>, vector<32x256xbf16>,
    %c1_107 = arith.constant 1 : index
    %c0_108 = arith.constant 0 : index
    %c0_109 = arith.constant 0 : index
    %123 = vector.load %arg2[%c1_107, %c0_108, %c0_109] : memref<5x32x288xbf16, #tpu.memory_space<vmem>>, vector<1x32x288xbf16>
    %124 = vector.shape_cast %123 : vector<1x32x288xbf16> to vector<32x288xbf16>
    %c0_110 = arith.constant 0 : index
    %c0_111 = arith.constant 0 : index
    %125 = vector.load %arg9[%c0_110, %c0_111] : memref<288x256xbf16, #tpu.memory_space<vmem>>, vector<288x256xbf16>
    %cst_112 = arith.constant dense<0.000000e+00> : vector<32x256xf32>
    %126 = tpu.matmul %124, %125, %cst_112 {dimension_numbers = #tpu.dot_dimension_numbers<[1], [0], [0], [1], [0, 0, 1, 1], [], []>} : vector<32x288xbf16>, vector<288x256xbf16>, vector<32x256xf32> -> vector<32x256xf32>
    %c1_113 = arith.constant 1 : index
    %c0_114 = arith.constant 0 : index
    %c0_115 = arith.constant 0 : index
    %127 = vector.load %arg3[%c1_113, %c0_114, %c0_115] : memref<5x32x1xf32, #tpu.memory_space<vmem>>, vector<1x32x1xf32>
    %128 = vector.shape_cast %127 : vector<1x32x1xf32> to vector<32x1xf32>
    %129 = vector.broadcast %128 : vector<32x1xf32> to vector<32x256xf32>
    %130 = arith.addf %126, %129 : vector<32x256xf32>
    %131 = arith.negf %130 : vector<32x256xf32>
    %132 = math.exp %131 : vector<32x256xf32>
    %cst_116 = arith.constant 1.000000e+00 : f32
    %133 = vector.broadcast %cst_116 : f32 to vector<32x256xf32>
    %134 = arith.addf %133, %132 : vector<32x256xf32>
    %135 = arith.divf %133, %134 : vector<32x256xf32>
    %136 = arith.mulf %130, %135 : vector<32x256xf32>
    %c0_117 = arith.constant 0 : index
    %c17_118 = arith.constant 17 : index
    %137 = vector.load %arg8[%c0_117, %c17_118] : memref<32x290xf32, #tpu.memory_space<vmem>>, vector<32x256xf32>
    tpu.vector_store %arg8[%c0_117, %c17_118], %136 {strides = array<i32>} : memref<32x290xf32, #tpu.memory_space<vmem>>, vector<32x256xf32>,
    %c0_119 = arith.constant 0 : index
    %c0_120 = arith.constant 0 : index
    %138 = vector.load %arg8[%c0_119, %c0_120] : memref<32x290xf32, #tpu.memory_space<vmem>>, vector<32x256xf32>
    %c0_121 = arith.constant 0 : index
    %c0_122 = arith.constant 0 : index
    %c0_123 = arith.constant 0 : index
    %139 = vector.load %arg6[%c0_121, %c0_122, %c0_123] : memref<9x1x256xf32, #tpu.memory_space<vmem>>, vector<1x1x256xf32>
    %140 = vector.shape_cast %139 : vector<1x1x256xf32> to vector<1x256xf32>
    %141 = vector.broadcast %140 : vector<1x256xf32> to vector<32x256xf32>
    %142 = arith.mulf %138, %141 : vector<32x256xf32>
    %143 = arith.truncf %142 : vector<32x256xf32> to vector<32x256xbf16>
    %c0_124 = arith.constant 0 : index
    %c0_125 = arith.constant 0 : index
    %144 = vector.load %arg9[%c0_124, %c0_125] : memref<288x256xbf16, #tpu.memory_space<vmem>>, vector<32x256xbf16>
    tpu.vector_store %arg9[%c0_124, %c0_125], %143 {strides = array<i32>} : memref<288x256xbf16, #tpu.memory_space<vmem>>, vector<32x256xbf16>,
    %c0_126 = arith.constant 0 : index
    %c1_127 = arith.constant 1 : index
    %145 = vector.load %arg8[%c0_126, %c1_127] : memref<32x290xf32, #tpu.memory_space<vmem>>, vector<32x256xf32>
    %146 = arith.truncf %145 : vector<32x256xf32> to vector<32x256xbf16>
    %c32_128 = arith.constant 32 : index
    %c0_129 = arith.constant 0 : index
    %147 = vector.load %arg9[%c32_128, %c0_129] : memref<288x256xbf16, #tpu.memory_space<vmem>>, vector<32x256xbf16>
    tpu.vector_store %arg9[%c32_128, %c0_129], %146 {strides = array<i32>} : memref<288x256xbf16, #tpu.memory_space<vmem>>, vector<32x256xbf16>,
    %c0_130 = arith.constant 0 : index
    %c2_131 = arith.constant 2 : index
    %148 = vector.load %arg8[%c0_130, %c2_131] : memref<32x290xf32, #tpu.memory_space<vmem>>, vector<32x256xf32>
    %c2_132 = arith.constant 2 : index
    %c0_133 = arith.constant 0 : index
    %c0_134 = arith.constant 0 : index
    %149 = vector.load %arg6[%c2_132, %c0_133, %c0_134] : memref<9x1x256xf32, #tpu.memory_space<vmem>>, vector<1x1x256xf32>
    %150 = vector.shape_cast %149 : vector<1x1x256xf32> to vector<1x256xf32>
    %151 = vector.broadcast %150 : vector<1x256xf32> to vector<32x256xf32>
    %152 = arith.mulf %148, %151 : vector<32x256xf32>
    %153 = arith.truncf %152 : vector<32x256xf32> to vector<32x256xbf16>
    %c64_135 = arith.constant 64 : index
    %c0_136 = arith.constant 0 : index
    %154 = vector.load %arg9[%c64_135, %c0_136] : memref<288x256xbf16, #tpu.memory_space<vmem>>, vector<32x256xbf16>
    tpu.vector_store %arg9[%c64_135, %c0_136], %153 {strides = array<i32>} : memref<288x256xbf16, #tpu.memory_space<vmem>>, vector<32x256xbf16>,
    %c0_137 = arith.constant 0 : index
    %c16_138 = arith.constant 16 : index
    %155 = vector.load %arg8[%c0_137, %c16_138] : memref<32x290xf32, #tpu.memory_space<vmem>>, vector<32x256xf32>
    %c3_139 = arith.constant 3 : index
    %c0_140 = arith.constant 0 : index
    %c0_141 = arith.constant 0 : index
    %156 = vector.load %arg6[%c3_139, %c0_140, %c0_141] : memref<9x1x256xf32, #tpu.memory_space<vmem>>, vector<1x1x256xf32>
    %157 = vector.shape_cast %156 : vector<1x1x256xf32> to vector<1x256xf32>
    %158 = vector.broadcast %157 : vector<1x256xf32> to vector<32x256xf32>
    %159 = arith.mulf %155, %158 : vector<32x256xf32>
    %160 = arith.truncf %159 : vector<32x256xf32> to vector<32x256xbf16>
    %c96_142 = arith.constant 96 : index
    %c0_143 = arith.constant 0 : index
    %161 = vector.load %arg9[%c96_142, %c0_143] : memref<288x256xbf16, #tpu.memory_space<vmem>>, vector<32x256xbf16>
    tpu.vector_store %arg9[%c96_142, %c0_143], %160 {strides = array<i32>} : memref<288x256xbf16, #tpu.memory_space<vmem>>, vector<32x256xbf16>,
    %c0_144 = arith.constant 0 : index
    %c17_145 = arith.constant 17 : index
    %162 = vector.load %arg8[%c0_144, %c17_145] : memref<32x290xf32, #tpu.memory_space<vmem>>, vector<32x256xf32>
    %163 = arith.truncf %162 : vector<32x256xf32> to vector<32x256xbf16>
    %c128_146 = arith.constant 128 : index
    %c0_147 = arith.constant 0 : index
    %164 = vector.load %arg9[%c128_146, %c0_147] : memref<288x256xbf16, #tpu.memory_space<vmem>>, vector<32x256xbf16>
    tpu.vector_store %arg9[%c128_146, %c0_147], %163 {strides = array<i32>} : memref<288x256xbf16, #tpu.memory_space<vmem>>, vector<32x256xbf16>,
    %c0_148 = arith.constant 0 : index
    %c18_149 = arith.constant 18 : index
    %165 = vector.load %arg8[%c0_148, %c18_149] : memref<32x290xf32, #tpu.memory_space<vmem>>, vector<32x256xf32>
    %c5_150 = arith.constant 5 : index
    %c0_151 = arith.constant 0 : index
    %c0_152 = arith.constant 0 : index
    %166 = vector.load %arg6[%c5_150, %c0_151, %c0_152] : memref<9x1x256xf32, #tpu.memory_space<vmem>>, vector<1x1x256xf32>
    %167 = vector.shape_cast %166 : vector<1x1x256xf32> to vector<1x256xf32>
    %168 = vector.broadcast %167 : vector<1x256xf32> to vector<32x256xf32>
    %169 = arith.mulf %165, %168 : vector<32x256xf32>
    %170 = arith.truncf %169 : vector<32x256xf32> to vector<32x256xbf16>
    %c160_153 = arith.constant 160 : index
    %c0_154 = arith.constant 0 : index
    %171 = vector.load %arg9[%c160_153, %c0_154] : memref<288x256xbf16, #tpu.memory_space<vmem>>, vector<32x256xbf16>
    tpu.vector_store %arg9[%c160_153, %c0_154], %170 {strides = array<i32>} : memref<288x256xbf16, #tpu.memory_space<vmem>>, vector<32x256xbf16>,
    %c0_155 = arith.constant 0 : index
    %c32_156 = arith.constant 32 : index
    %172 = vector.load %arg8[%c0_155, %c32_156] : memref<32x290xf32, #tpu.memory_space<vmem>>, vector<32x256xf32>
    %c6_157 = arith.constant 6 : index
    %c0_158 = arith.constant 0 : index
    %c0_159 = arith.constant 0 : index
    %173 = vector.load %arg6[%c6_157, %c0_158, %c0_159] : memref<9x1x256xf32, #tpu.memory_space<vmem>>, vector<1x1x256xf32>
    %174 = vector.shape_cast %173 : vector<1x1x256xf32> to vector<1x256xf32>
    %175 = vector.broadcast %174 : vector<1x256xf32> to vector<32x256xf32>
    %176 = arith.mulf %172, %175 : vector<32x256xf32>
    %177 = arith.truncf %176 : vector<32x256xf32> to vector<32x256xbf16>
    %c192_160 = arith.constant 192 : index
    %c0_161 = arith.constant 0 : index
    %178 = vector.load %arg9[%c192_160, %c0_161] : memref<288x256xbf16, #tpu.memory_space<vmem>>, vector<32x256xbf16>
    tpu.vector_store %arg9[%c192_160, %c0_161], %177 {strides = array<i32>} : memref<288x256xbf16, #tpu.memory_space<vmem>>, vector<32x256xbf16>,
    %c0_162 = arith.constant 0 : index
    %c33_163 = arith.constant 33 : index
    %179 = vector.load %arg8[%c0_162, %c33_163] : memref<32x290xf32, #tpu.memory_space<vmem>>, vector<32x256xf32>
    %180 = arith.truncf %179 : vector<32x256xf32> to vector<32x256xbf16>
    %c224_164 = arith.constant 224 : index
    %c0_165 = arith.constant 0 : index
    %181 = vector.load %arg9[%c224_164, %c0_165] : memref<288x256xbf16, #tpu.memory_space<vmem>>, vector<32x256xbf16>
    tpu.vector_store %arg9[%c224_164, %c0_165], %180 {strides = array<i32>} : memref<288x256xbf16, #tpu.memory_space<vmem>>, vector<32x256xbf16>,
    %c0_166 = arith.constant 0 : index
    %c34_167 = arith.constant 34 : index
    %182 = vector.load %arg8[%c0_166, %c34_167] : memref<32x290xf32, #tpu.memory_space<vmem>>, vector<32x256xf32>
    %c8_168 = arith.constant 8 : index
    %c0_169 = arith.constant 0 : index
    %c0_170 = arith.constant 0 : index
    %183 = vector.load %arg6[%c8_168, %c0_169, %c0_170] : memref<9x1x256xf32, #tpu.memory_space<vmem>>, vector<1x1x256xf32>
    %184 = vector.shape_cast %183 : vector<1x1x256xf32> to vector<1x256xf32>
    %185 = vector.broadcast %184 : vector<1x256xf32> to vector<32x256xf32>
    %186 = arith.mulf %182, %185 : vector<32x256xf32>
    %187 = arith.truncf %186 : vector<32x256xf32> to vector<32x256xbf16>
    %c256_171 = arith.constant 256 : index
    %c0_172 = arith.constant 0 : index
    %188 = vector.load %arg9[%c256_171, %c0_172] : memref<288x256xbf16, #tpu.memory_space<vmem>>, vector<32x256xbf16>
    tpu.vector_store %arg9[%c256_171, %c0_172], %187 {strides = array<i32>} : memref<288x256xbf16, #tpu.memory_space<vmem>>, vector<32x256xbf16>,
    %c2_173 = arith.constant 2 : index
    %c0_174 = arith.constant 0 : index
    %c0_175 = arith.constant 0 : index
    %189 = vector.load %arg2[%c2_173, %c0_174, %c0_175] : memref<5x32x288xbf16, #tpu.memory_space<vmem>>, vector<1x32x288xbf16>
    %190 = vector.shape_cast %189 : vector<1x32x288xbf16> to vector<32x288xbf16>
    %c0_176 = arith.constant 0 : index
    %c0_177 = arith.constant 0 : index
    %191 = vector.load %arg9[%c0_176, %c0_177] : memref<288x256xbf16, #tpu.memory_space<vmem>>, vector<288x256xbf16>
    %cst_178 = arith.constant dense<0.000000e+00> : vector<32x256xf32>
    %192 = tpu.matmul %190, %191, %cst_178 {dimension_numbers = #tpu.dot_dimension_numbers<[1], [0], [0], [1], [0, 0, 1, 1], [], []>} : vector<32x288xbf16>, vector<288x256xbf16>, vector<32x256xf32> -> vector<32x256xf32>
    %c2_179 = arith.constant 2 : index
    %c0_180 = arith.constant 0 : index
    %c0_181 = arith.constant 0 : index
    %193 = vector.load %arg3[%c2_179, %c0_180, %c0_181] : memref<5x32x1xf32, #tpu.memory_space<vmem>>, vector<1x32x1xf32>
    %194 = vector.shape_cast %193 : vector<1x32x1xf32> to vector<32x1xf32>
    %195 = vector.broadcast %194 : vector<32x1xf32> to vector<32x256xf32>
    %196 = arith.addf %192, %195 : vector<32x256xf32>
    %197 = arith.negf %196 : vector<32x256xf32>
    %198 = math.exp %197 : vector<32x256xf32>
    %cst_182 = arith.constant 1.000000e+00 : f32
    %199 = vector.broadcast %cst_182 : f32 to vector<32x256xf32>
    %200 = arith.addf %199, %198 : vector<32x256xf32>
    %201 = arith.divf %199, %200 : vector<32x256xf32>
    %202 = arith.mulf %196, %201 : vector<32x256xf32>
    %c0_183 = arith.constant 0 : index
    %c17_184 = arith.constant 17 : index
    %203 = vector.load %arg8[%c0_183, %c17_184] : memref<32x290xf32, #tpu.memory_space<vmem>>, vector<32x256xf32>
    tpu.vector_store %arg8[%c0_183, %c17_184], %202 {strides = array<i32>} : memref<32x290xf32, #tpu.memory_space<vmem>>, vector<32x256xf32>,
    %c0_185 = arith.constant 0 : index
    %c0_186 = arith.constant 0 : index
    %204 = vector.load %arg8[%c0_185, %c0_186] : memref<32x290xf32, #tpu.memory_space<vmem>>, vector<32x256xf32>
    %c0_187 = arith.constant 0 : index
    %c0_188 = arith.constant 0 : index
    %c0_189 = arith.constant 0 : index
    %205 = vector.load %arg6[%c0_187, %c0_188, %c0_189] : memref<9x1x256xf32, #tpu.memory_space<vmem>>, vector<1x1x256xf32>
    %206 = vector.shape_cast %205 : vector<1x1x256xf32> to vector<1x256xf32>
    %207 = vector.broadcast %206 : vector<1x256xf32> to vector<32x256xf32>
    %208 = arith.mulf %204, %207 : vector<32x256xf32>
    %209 = arith.truncf %208 : vector<32x256xf32> to vector<32x256xbf16>
    %c0_190 = arith.constant 0 : index
    %c0_191 = arith.constant 0 : index
    %210 = vector.load %arg9[%c0_190, %c0_191] : memref<288x256xbf16, #tpu.memory_space<vmem>>, vector<32x256xbf16>
    tpu.vector_store %arg9[%c0_190, %c0_191], %209 {strides = array<i32>} : memref<288x256xbf16, #tpu.memory_space<vmem>>, vector<32x256xbf16>,
    %c0_192 = arith.constant 0 : index
    %c1_193 = arith.constant 1 : index
    %211 = vector.load %arg8[%c0_192, %c1_193] : memref<32x290xf32, #tpu.memory_space<vmem>>, vector<32x256xf32>
    %212 = arith.truncf %211 : vector<32x256xf32> to vector<32x256xbf16>
    %c32_194 = arith.constant 32 : index
    %c0_195 = arith.constant 0 : index
    %213 = vector.load %arg9[%c32_194, %c0_195] : memref<288x256xbf16, #tpu.memory_space<vmem>>, vector<32x256xbf16>
    tpu.vector_store %arg9[%c32_194, %c0_195], %212 {strides = array<i32>} : memref<288x256xbf16, #tpu.memory_space<vmem>>, vector<32x256xbf16>,
    %c0_196 = arith.constant 0 : index
    %c2_197 = arith.constant 2 : index
    %214 = vector.load %arg8[%c0_196, %c2_197] : memref<32x290xf32, #tpu.memory_space<vmem>>, vector<32x256xf32>
    %c2_198 = arith.constant 2 : index
    %c0_199 = arith.constant 0 : index
    %c0_200 = arith.constant 0 : index
    %215 = vector.load %arg6[%c2_198, %c0_199, %c0_200] : memref<9x1x256xf32, #tpu.memory_space<vmem>>, vector<1x1x256xf32>
    %216 = vector.shape_cast %215 : vector<1x1x256xf32> to vector<1x256xf32>
    %217 = vector.broadcast %216 : vector<1x256xf32> to vector<32x256xf32>
    %218 = arith.mulf %214, %217 : vector<32x256xf32>
    %219 = arith.truncf %218 : vector<32x256xf32> to vector<32x256xbf16>
    %c64_201 = arith.constant 64 : index
    %c0_202 = arith.constant 0 : index
    %220 = vector.load %arg9[%c64_201, %c0_202] : memref<288x256xbf16, #tpu.memory_space<vmem>>, vector<32x256xbf16>
    tpu.vector_store %arg9[%c64_201, %c0_202], %219 {strides = array<i32>} : memref<288x256xbf16, #tpu.memory_space<vmem>>, vector<32x256xbf16>,
    %c0_203 = arith.constant 0 : index
    %c16_204 = arith.constant 16 : index
    %221 = vector.load %arg8[%c0_203, %c16_204] : memref<32x290xf32, #tpu.memory_space<vmem>>, vector<32x256xf32>
    %c3_205 = arith.constant 3 : index
    %c0_206 = arith.constant 0 : index
    %c0_207 = arith.constant 0 : index
    %222 = vector.load %arg6[%c3_205, %c0_206, %c0_207] : memref<9x1x256xf32, #tpu.memory_space<vmem>>, vector<1x1x256xf32>
    %223 = vector.shape_cast %222 : vector<1x1x256xf32> to vector<1x256xf32>
    %224 = vector.broadcast %223 : vector<1x256xf32> to vector<32x256xf32>
    %225 = arith.mulf %221, %224 : vector<32x256xf32>
    %226 = arith.truncf %225 : vector<32x256xf32> to vector<32x256xbf16>
    %c96_208 = arith.constant 96 : index
    %c0_209 = arith.constant 0 : index
    %227 = vector.load %arg9[%c96_208, %c0_209] : memref<288x256xbf16, #tpu.memory_space<vmem>>, vector<32x256xbf16>
    tpu.vector_store %arg9[%c96_208, %c0_209], %226 {strides = array<i32>} : memref<288x256xbf16, #tpu.memory_space<vmem>>, vector<32x256xbf16>,
    %c0_210 = arith.constant 0 : index
    %c17_211 = arith.constant 17 : index
    %228 = vector.load %arg8[%c0_210, %c17_211] : memref<32x290xf32, #tpu.memory_space<vmem>>, vector<32x256xf32>
    %229 = arith.truncf %228 : vector<32x256xf32> to vector<32x256xbf16>
    %c128_212 = arith.constant 128 : index
    %c0_213 = arith.constant 0 : index
    %230 = vector.load %arg9[%c128_212, %c0_213] : memref<288x256xbf16, #tpu.memory_space<vmem>>, vector<32x256xbf16>
    tpu.vector_store %arg9[%c128_212, %c0_213], %229 {strides = array<i32>} : memref<288x256xbf16, #tpu.memory_space<vmem>>, vector<32x256xbf16>,
    %c0_214 = arith.constant 0 : index
    %c18_215 = arith.constant 18 : index
    %231 = vector.load %arg8[%c0_214, %c18_215] : memref<32x290xf32, #tpu.memory_space<vmem>>, vector<32x256xf32>
    %c5_216 = arith.constant 5 : index
    %c0_217 = arith.constant 0 : index
    %c0_218 = arith.constant 0 : index
    %232 = vector.load %arg6[%c5_216, %c0_217, %c0_218] : memref<9x1x256xf32, #tpu.memory_space<vmem>>, vector<1x1x256xf32>
    %233 = vector.shape_cast %232 : vector<1x1x256xf32> to vector<1x256xf32>
    %234 = vector.broadcast %233 : vector<1x256xf32> to vector<32x256xf32>
    %235 = arith.mulf %231, %234 : vector<32x256xf32>
    %236 = arith.truncf %235 : vector<32x256xf32> to vector<32x256xbf16>
    %c160_219 = arith.constant 160 : index
    %c0_220 = arith.constant 0 : index
    %237 = vector.load %arg9[%c160_219, %c0_220] : memref<288x256xbf16, #tpu.memory_space<vmem>>, vector<32x256xbf16>
    tpu.vector_store %arg9[%c160_219, %c0_220], %236 {strides = array<i32>} : memref<288x256xbf16, #tpu.memory_space<vmem>>, vector<32x256xbf16>,
    %c0_221 = arith.constant 0 : index
    %c32_222 = arith.constant 32 : index
    %238 = vector.load %arg8[%c0_221, %c32_222] : memref<32x290xf32, #tpu.memory_space<vmem>>, vector<32x256xf32>
    %c6_223 = arith.constant 6 : index
    %c0_224 = arith.constant 0 : index
    %c0_225 = arith.constant 0 : index
    %239 = vector.load %arg6[%c6_223, %c0_224, %c0_225] : memref<9x1x256xf32, #tpu.memory_space<vmem>>, vector<1x1x256xf32>
    %240 = vector.shape_cast %239 : vector<1x1x256xf32> to vector<1x256xf32>
    %241 = vector.broadcast %240 : vector<1x256xf32> to vector<32x256xf32>
    %242 = arith.mulf %238, %241 : vector<32x256xf32>
    %243 = arith.truncf %242 : vector<32x256xf32> to vector<32x256xbf16>
    %c192_226 = arith.constant 192 : index
    %c0_227 = arith.constant 0 : index
    %244 = vector.load %arg9[%c192_226, %c0_227] : memref<288x256xbf16, #tpu.memory_space<vmem>>, vector<32x256xbf16>
    tpu.vector_store %arg9[%c192_226, %c0_227], %243 {strides = array<i32>} : memref<288x256xbf16, #tpu.memory_space<vmem>>, vector<32x256xbf16>,
    %c0_228 = arith.constant 0 : index
    %c33_229 = arith.constant 33 : index
    %245 = vector.load %arg8[%c0_228, %c33_229] : memref<32x290xf32, #tpu.memory_space<vmem>>, vector<32x256xf32>
    %246 = arith.truncf %245 : vector<32x256xf32> to vector<32x256xbf16>
    %c224_230 = arith.constant 224 : index
    %c0_231 = arith.constant 0 : index
    %247 = vector.load %arg9[%c224_230, %c0_231] : memref<288x256xbf16, #tpu.memory_space<vmem>>, vector<32x256xbf16>
    tpu.vector_store %arg9[%c224_230, %c0_231], %246 {strides = array<i32>} : memref<288x256xbf16, #tpu.memory_space<vmem>>, vector<32x256xbf16>,
    %c0_232 = arith.constant 0 : index
    %c34_233 = arith.constant 34 : index
    %248 = vector.load %arg8[%c0_232, %c34_233] : memref<32x290xf32, #tpu.memory_space<vmem>>, vector<32x256xf32>
    %c8_234 = arith.constant 8 : index
    %c0_235 = arith.constant 0 : index
    %c0_236 = arith.constant 0 : index
    %249 = vector.load %arg6[%c8_234, %c0_235, %c0_236] : memref<9x1x256xf32, #tpu.memory_space<vmem>>, vector<1x1x256xf32>
    %250 = vector.shape_cast %249 : vector<1x1x256xf32> to vector<1x256xf32>
    %251 = vector.broadcast %250 : vector<1x256xf32> to vector<32x256xf32>
    %252 = arith.mulf %248, %251 : vector<32x256xf32>
    %253 = arith.truncf %252 : vector<32x256xf32> to vector<32x256xbf16>
    %c256_237 = arith.constant 256 : index
    %c0_238 = arith.constant 0 : index
    %254 = vector.load %arg9[%c256_237, %c0_238] : memref<288x256xbf16, #tpu.memory_space<vmem>>, vector<32x256xbf16>
    tpu.vector_store %arg9[%c256_237, %c0_238], %253 {strides = array<i32>} : memref<288x256xbf16, #tpu.memory_space<vmem>>, vector<32x256xbf16>,
    %c3_239 = arith.constant 3 : index
    %c0_240 = arith.constant 0 : index
    %c0_241 = arith.constant 0 : index
    %255 = vector.load %arg2[%c3_239, %c0_240, %c0_241] : memref<5x32x288xbf16, #tpu.memory_space<vmem>>, vector<1x32x288xbf16>
    %256 = vector.shape_cast %255 : vector<1x32x288xbf16> to vector<32x288xbf16>
    %c0_242 = arith.constant 0 : index
    %c0_243 = arith.constant 0 : index
    %257 = vector.load %arg9[%c0_242, %c0_243] : memref<288x256xbf16, #tpu.memory_space<vmem>>, vector<288x256xbf16>
    %cst_244 = arith.constant dense<0.000000e+00> : vector<32x256xf32>
    %258 = tpu.matmul %256, %257, %cst_244 {dimension_numbers = #tpu.dot_dimension_numbers<[1], [0], [0], [1], [0, 0, 1, 1], [], []>} : vector<32x288xbf16>, vector<288x256xbf16>, vector<32x256xf32> -> vector<32x256xf32>
    %c3_245 = arith.constant 3 : index
    %c0_246 = arith.constant 0 : index
    %c0_247 = arith.constant 0 : index
    %259 = vector.load %arg3[%c3_245, %c0_246, %c0_247] : memref<5x32x1xf32, #tpu.memory_space<vmem>>, vector<1x32x1xf32>
    %260 = vector.shape_cast %259 : vector<1x32x1xf32> to vector<32x1xf32>
    %261 = vector.broadcast %260 : vector<32x1xf32> to vector<32x256xf32>
    %262 = arith.addf %258, %261 : vector<32x256xf32>
    %263 = arith.negf %262 : vector<32x256xf32>
    %264 = math.exp %263 : vector<32x256xf32>
    %cst_248 = arith.constant 1.000000e+00 : f32
    %265 = vector.broadcast %cst_248 : f32 to vector<32x256xf32>
    %266 = arith.addf %265, %264 : vector<32x256xf32>
    %267 = arith.divf %265, %266 : vector<32x256xf32>
    %268 = arith.mulf %262, %267 : vector<32x256xf32>
    %c0_249 = arith.constant 0 : index
    %c17_250 = arith.constant 17 : index
    %269 = vector.load %arg8[%c0_249, %c17_250] : memref<32x290xf32, #tpu.memory_space<vmem>>, vector<32x256xf32>
    tpu.vector_store %arg8[%c0_249, %c17_250], %268 {strides = array<i32>} : memref<32x290xf32, #tpu.memory_space<vmem>>, vector<32x256xf32>,
    %c0_251 = arith.constant 0 : index
    %c0_252 = arith.constant 0 : index
    %270 = vector.load %arg8[%c0_251, %c0_252] : memref<32x290xf32, #tpu.memory_space<vmem>>, vector<32x256xf32>
    %c0_253 = arith.constant 0 : index
    %c0_254 = arith.constant 0 : index
    %c0_255 = arith.constant 0 : index
    %271 = vector.load %arg6[%c0_253, %c0_254, %c0_255] : memref<9x1x256xf32, #tpu.memory_space<vmem>>, vector<1x1x256xf32>
    %272 = vector.shape_cast %271 : vector<1x1x256xf32> to vector<1x256xf32>
    %273 = vector.broadcast %272 : vector<1x256xf32> to vector<32x256xf32>
    %274 = arith.mulf %270, %273 : vector<32x256xf32>
    %275 = arith.truncf %274 : vector<32x256xf32> to vector<32x256xbf16>
    %c0_256 = arith.constant 0 : index
    %c0_257 = arith.constant 0 : index
    %276 = vector.load %arg9[%c0_256, %c0_257] : memref<288x256xbf16, #tpu.memory_space<vmem>>, vector<32x256xbf16>
    tpu.vector_store %arg9[%c0_256, %c0_257], %275 {strides = array<i32>} : memref<288x256xbf16, #tpu.memory_space<vmem>>, vector<32x256xbf16>,
    %c0_258 = arith.constant 0 : index
    %c1_259 = arith.constant 1 : index
    %277 = vector.load %arg8[%c0_258, %c1_259] : memref<32x290xf32, #tpu.memory_space<vmem>>, vector<32x256xf32>
    %278 = arith.truncf %277 : vector<32x256xf32> to vector<32x256xbf16>
    %c32_260 = arith.constant 32 : index
    %c0_261 = arith.constant 0 : index
    %279 = vector.load %arg9[%c32_260, %c0_261] : memref<288x256xbf16, #tpu.memory_space<vmem>>, vector<32x256xbf16>
    tpu.vector_store %arg9[%c32_260, %c0_261], %278 {strides = array<i32>} : memref<288x256xbf16, #tpu.memory_space<vmem>>, vector<32x256xbf16>,
    %c0_262 = arith.constant 0 : index
    %c2_263 = arith.constant 2 : index
    %280 = vector.load %arg8[%c0_262, %c2_263] : memref<32x290xf32, #tpu.memory_space<vmem>>, vector<32x256xf32>
    %c2_264 = arith.constant 2 : index
    %c0_265 = arith.constant 0 : index
    %c0_266 = arith.constant 0 : index
    %281 = vector.load %arg6[%c2_264, %c0_265, %c0_266] : memref<9x1x256xf32, #tpu.memory_space<vmem>>, vector<1x1x256xf32>
    %282 = vector.shape_cast %281 : vector<1x1x256xf32> to vector<1x256xf32>
    %283 = vector.broadcast %282 : vector<1x256xf32> to vector<32x256xf32>
    %284 = arith.mulf %280, %283 : vector<32x256xf32>
    %285 = arith.truncf %284 : vector<32x256xf32> to vector<32x256xbf16>
    %c64_267 = arith.constant 64 : index
    %c0_268 = arith.constant 0 : index
    %286 = vector.load %arg9[%c64_267, %c0_268] : memref<288x256xbf16, #tpu.memory_space<vmem>>, vector<32x256xbf16>
    tpu.vector_store %arg9[%c64_267, %c0_268], %285 {strides = array<i32>} : memref<288x256xbf16, #tpu.memory_space<vmem>>, vector<32x256xbf16>,
    %c0_269 = arith.constant 0 : index
    %c16_270 = arith.constant 16 : index
    %287 = vector.load %arg8[%c0_269, %c16_270] : memref<32x290xf32, #tpu.memory_space<vmem>>, vector<32x256xf32>
    %c3_271 = arith.constant 3 : index
    %c0_272 = arith.constant 0 : index
    %c0_273 = arith.constant 0 : index
    %288 = vector.load %arg6[%c3_271, %c0_272, %c0_273] : memref<9x1x256xf32, #tpu.memory_space<vmem>>, vector<1x1x256xf32>
    %289 = vector.shape_cast %288 : vector<1x1x256xf32> to vector<1x256xf32>
    %290 = vector.broadcast %289 : vector<1x256xf32> to vector<32x256xf32>
    %291 = arith.mulf %287, %290 : vector<32x256xf32>
    %292 = arith.truncf %291 : vector<32x256xf32> to vector<32x256xbf16>
    %c96_274 = arith.constant 96 : index
    %c0_275 = arith.constant 0 : index
    %293 = vector.load %arg9[%c96_274, %c0_275] : memref<288x256xbf16, #tpu.memory_space<vmem>>, vector<32x256xbf16>
    tpu.vector_store %arg9[%c96_274, %c0_275], %292 {strides = array<i32>} : memref<288x256xbf16, #tpu.memory_space<vmem>>, vector<32x256xbf16>,
    %c0_276 = arith.constant 0 : index
    %c17_277 = arith.constant 17 : index
    %294 = vector.load %arg8[%c0_276, %c17_277] : memref<32x290xf32, #tpu.memory_space<vmem>>, vector<32x256xf32>
    %295 = arith.truncf %294 : vector<32x256xf32> to vector<32x256xbf16>
    %c128_278 = arith.constant 128 : index
    %c0_279 = arith.constant 0 : index
    %296 = vector.load %arg9[%c128_278, %c0_279] : memref<288x256xbf16, #tpu.memory_space<vmem>>, vector<32x256xbf16>
    tpu.vector_store %arg9[%c128_278, %c0_279], %295 {strides = array<i32>} : memref<288x256xbf16, #tpu.memory_space<vmem>>, vector<32x256xbf16>,
    %c0_280 = arith.constant 0 : index
    %c18_281 = arith.constant 18 : index
    %297 = vector.load %arg8[%c0_280, %c18_281] : memref<32x290xf32, #tpu.memory_space<vmem>>, vector<32x256xf32>
    %c5_282 = arith.constant 5 : index
    %c0_283 = arith.constant 0 : index
    %c0_284 = arith.constant 0 : index
    %298 = vector.load %arg6[%c5_282, %c0_283, %c0_284] : memref<9x1x256xf32, #tpu.memory_space<vmem>>, vector<1x1x256xf32>
    %299 = vector.shape_cast %298 : vector<1x1x256xf32> to vector<1x256xf32>
    %300 = vector.broadcast %299 : vector<1x256xf32> to vector<32x256xf32>
    %301 = arith.mulf %297, %300 : vector<32x256xf32>
    %302 = arith.truncf %301 : vector<32x256xf32> to vector<32x256xbf16>
    %c160_285 = arith.constant 160 : index
    %c0_286 = arith.constant 0 : index
    %303 = vector.load %arg9[%c160_285, %c0_286] : memref<288x256xbf16, #tpu.memory_space<vmem>>, vector<32x256xbf16>
    tpu.vector_store %arg9[%c160_285, %c0_286], %302 {strides = array<i32>} : memref<288x256xbf16, #tpu.memory_space<vmem>>, vector<32x256xbf16>,
    %c0_287 = arith.constant 0 : index
    %c32_288 = arith.constant 32 : index
    %304 = vector.load %arg8[%c0_287, %c32_288] : memref<32x290xf32, #tpu.memory_space<vmem>>, vector<32x256xf32>
    %c6_289 = arith.constant 6 : index
    %c0_290 = arith.constant 0 : index
    %c0_291 = arith.constant 0 : index
    %305 = vector.load %arg6[%c6_289, %c0_290, %c0_291] : memref<9x1x256xf32, #tpu.memory_space<vmem>>, vector<1x1x256xf32>
    %306 = vector.shape_cast %305 : vector<1x1x256xf32> to vector<1x256xf32>
    %307 = vector.broadcast %306 : vector<1x256xf32> to vector<32x256xf32>
    %308 = arith.mulf %304, %307 : vector<32x256xf32>
    %309 = arith.truncf %308 : vector<32x256xf32> to vector<32x256xbf16>
    %c192_292 = arith.constant 192 : index
    %c0_293 = arith.constant 0 : index
    %310 = vector.load %arg9[%c192_292, %c0_293] : memref<288x256xbf16, #tpu.memory_space<vmem>>, vector<32x256xbf16>
    tpu.vector_store %arg9[%c192_292, %c0_293], %309 {strides = array<i32>} : memref<288x256xbf16, #tpu.memory_space<vmem>>, vector<32x256xbf16>,
    %c0_294 = arith.constant 0 : index
    %c33_295 = arith.constant 33 : index
    %311 = vector.load %arg8[%c0_294, %c33_295] : memref<32x290xf32, #tpu.memory_space<vmem>>, vector<32x256xf32>
    %312 = arith.truncf %311 : vector<32x256xf32> to vector<32x256xbf16>
    %c224_296 = arith.constant 224 : index
    %c0_297 = arith.constant 0 : index
    %313 = vector.load %arg9[%c224_296, %c0_297] : memref<288x256xbf16, #tpu.memory_space<vmem>>, vector<32x256xbf16>
    tpu.vector_store %arg9[%c224_296, %c0_297], %312 {strides = array<i32>} : memref<288x256xbf16, #tpu.memory_space<vmem>>, vector<32x256xbf16>,
    %c0_298 = arith.constant 0 : index
    %c34_299 = arith.constant 34 : index
    %314 = vector.load %arg8[%c0_298, %c34_299] : memref<32x290xf32, #tpu.memory_space<vmem>>, vector<32x256xf32>
    %c8_300 = arith.constant 8 : index
    %c0_301 = arith.constant 0 : index
    %c0_302 = arith.constant 0 : index
    %315 = vector.load %arg6[%c8_300, %c0_301, %c0_302] : memref<9x1x256xf32, #tpu.memory_space<vmem>>, vector<1x1x256xf32>
    %316 = vector.shape_cast %315 : vector<1x1x256xf32> to vector<1x256xf32>
    %317 = vector.broadcast %316 : vector<1x256xf32> to vector<32x256xf32>
    %318 = arith.mulf %314, %317 : vector<32x256xf32>
    %319 = arith.truncf %318 : vector<32x256xf32> to vector<32x256xbf16>
    %c256_303 = arith.constant 256 : index
    %c0_304 = arith.constant 0 : index
    %320 = vector.load %arg9[%c256_303, %c0_304] : memref<288x256xbf16, #tpu.memory_space<vmem>>, vector<32x256xbf16>
    tpu.vector_store %arg9[%c256_303, %c0_304], %319 {strides = array<i32>} : memref<288x256xbf16, #tpu.memory_space<vmem>>, vector<32x256xbf16>,
    %c4 = arith.constant 4 : index
    %c0_305 = arith.constant 0 : index
    %c0_306 = arith.constant 0 : index
    %321 = vector.load %arg2[%c4, %c0_305, %c0_306] : memref<5x32x288xbf16, #tpu.memory_space<vmem>>, vector<1x32x288xbf16>
    %322 = vector.shape_cast %321 : vector<1x32x288xbf16> to vector<32x288xbf16>
    %c0_307 = arith.constant 0 : index
    %c0_308 = arith.constant 0 : index
    %323 = vector.load %arg9[%c0_307, %c0_308] : memref<288x256xbf16, #tpu.memory_space<vmem>>, vector<288x256xbf16>
    %cst_309 = arith.constant dense<0.000000e+00> : vector<32x256xf32>
    %324 = tpu.matmul %322, %323, %cst_309 {dimension_numbers = #tpu.dot_dimension_numbers<[1], [0], [0], [1], [0, 0, 1, 1], [], []>} : vector<32x288xbf16>, vector<288x256xbf16>, vector<32x256xf32> -> vector<32x256xf32>
    %c4_310 = arith.constant 4 : index
    %c0_311 = arith.constant 0 : index
    %c0_312 = arith.constant 0 : index
    %325 = vector.load %arg3[%c4_310, %c0_311, %c0_312] : memref<5x32x1xf32, #tpu.memory_space<vmem>>, vector<1x32x1xf32>
    %326 = vector.shape_cast %325 : vector<1x32x1xf32> to vector<32x1xf32>
    %327 = vector.broadcast %326 : vector<32x1xf32> to vector<32x256xf32>
    %328 = arith.addf %324, %327 : vector<32x256xf32>
    %329 = arith.negf %328 : vector<32x256xf32>
    %330 = math.exp %329 : vector<32x256xf32>
    %cst_313 = arith.constant 1.000000e+00 : f32
    %331 = vector.broadcast %cst_313 : f32 to vector<32x256xf32>
    %332 = arith.addf %331, %330 : vector<32x256xf32>
    %333 = arith.divf %331, %332 : vector<32x256xf32>
    %334 = arith.mulf %328, %333 : vector<32x256xf32>
    %c0_314 = arith.constant 0 : index
    %c17_315 = arith.constant 17 : index
    %335 = vector.load %arg8[%c0_314, %c17_315] : memref<32x290xf32, #tpu.memory_space<vmem>>, vector<32x256xf32>
    tpu.vector_store %arg8[%c0_314, %c17_315], %334 {strides = array<i32>} : memref<32x290xf32, #tpu.memory_space<vmem>>, vector<32x256xf32>,
    %c0_316 = arith.constant 0 : index
    %c17_317 = arith.constant 17 : index
    %336 = vector.load %arg8[%c0_316, %c17_317] : memref<32x290xf32, #tpu.memory_space<vmem>>, vector<32x256xf32>
    %337 = arith.truncf %336 : vector<32x256xf32> to vector<32x256xbf16>
    %c0_318 = arith.constant 0 : index
    %c0_319 = arith.constant 0 : index
    %338 = vector.load %arg4[%c0_318, %c0_319] : memref<10x32xbf16, #tpu.memory_space<vmem>>, vector<10x32xbf16>
    %cst_320 = arith.constant dense<0.000000e+00> : vector<10x256xf32>
    %339 = tpu.matmul %338, %337, %cst_320 {dimension_numbers = #tpu.dot_dimension_numbers<[1], [0], [0], [1], [0, 0, 1, 1], [], []>} : vector<10x32xbf16>, vector<32x256xbf16>, vector<10x256xf32> -> vector<10x256xf32>
    %cst_321 = arith.constant dense<0.000000e+00> : vector<10xf32>
    %340 = vector.multi_reduction <add>, %339, %cst_321 [1] : vector<10x256xf32> to vector<10xf32>
    %341 = vector.shape_cast %340 : vector<10xf32> to vector<10x1xf32>
    %cst_322 = arith.constant 2.560000e+02 : f32
    %342 = vector.broadcast %cst_322 : f32 to vector<10x1xf32>
    %343 = arith.divf %341, %342 : vector<10x1xf32>
    %c0_323 = arith.constant 0 : index
    %c0_324 = arith.constant 0 : index
    %344 = vector.load %arg5[%c0_323, %c0_324] : memref<10x1xf32, #tpu.memory_space<vmem>>, vector<10x1xf32>
    %345 = arith.addf %343, %344 : vector<10x1xf32>
    %c0_325 = arith.constant 0 : index
    %c0_326 = arith.constant 0 : index
    %c0_327 = arith.constant 0 : index
    %346 = vector.load %arg7[%c0_325, %c0_326, %c0_327] : memref<1x10x1xf32, #tpu.memory_space<vmem>>, vector<1x10x1xf32>
    %347 = vector.shape_cast %346 : vector<1x10x1xf32> to vector<10x1xf32>
    %348 = vector.shape_cast %345 : vector<10x1xf32> to vector<1x10x1xf32>
    tpu.vector_store %arg7[%c0_325, %c0_326, %c0_327], %348 {strides = array<i32>} : memref<1x10x1xf32, #tpu.memory_space<vmem>>, vector<1x10x1xf32>,
    return
  }
  func.func @transform_0(%arg0: i32) -> (i32, i32, i32) {
    %c0_i32 = arith.constant 0 : i32
    %c0_i32_0 = arith.constant 0 : i32
    %c0_i32_1 = arith.constant 0 : i32
    return %arg0, %c0_i32, %c0_i32_0 : i32, i32, i32
  }
  func.func @transform_1(%arg0: i32) -> (i32, i32, i32) {
    %c0_i32 = arith.constant 0 : i32
    %c0_i32_0 = arith.constant 0 : i32
    %c0_i32_1 = arith.constant 0 : i32
    %c0_i32_2 = arith.constant 0 : i32
    return %c0_i32, %c0_i32_0, %c0_i32_1 : i32, i32, i32
  }
  func.func @transform_2(%arg0: i32) -> (i32, i32, i32) {
    %c0_i32 = arith.constant 0 : i32
    %c0_i32_0 = arith.constant 0 : i32
    %c0_i32_1 = arith.constant 0 : i32
    %c0_i32_2 = arith.constant 0 : i32
    return %c0_i32, %c0_i32_0, %c0_i32_1 : i32, i32, i32
  }
  func.func @transform_3(%arg0: i32) -> (i32, i32) {
    %c0_i32 = arith.constant 0 : i32
    %c0_i32_0 = arith.constant 0 : i32
    %c0_i32_1 = arith.constant 0 : i32
    return %c0_i32, %c0_i32_0 : i32, i32
  }
  func.func @transform_4(%arg0: i32) -> (i32, i32) {
    %c0_i32 = arith.constant 0 : i32
    %c0_i32_0 = arith.constant 0 : i32
    %c0_i32_1 = arith.constant 0 : i32
    return %c0_i32, %c0_i32_0 : i32, i32
  }
  func.func @transform_5(%arg0: i32) -> (i32, i32, i32) {
    %c0_i32 = arith.constant 0 : i32
    %c0_i32_0 = arith.constant 0 : i32
    %c0_i32_1 = arith.constant 0 : i32
    %c0_i32_2 = arith.constant 0 : i32
    return %c0_i32, %c0_i32_0, %c0_i32_1 : i32, i32, i32
  }
  func.func @transform_6(%arg0: i32) -> (i32, i32, i32) {
    %c0_i32 = arith.constant 0 : i32
    %c0_i32_0 = arith.constant 0 : i32
    %c0_i32_1 = arith.constant 0 : i32
    return %arg0, %c0_i32, %c0_i32_0 : i32, i32, i32
  }
}

</mosaic_0001>

<bundles_post_ra>
// kernel: init_baseline_forward.1
= control target key start
LH: loop header
LB: loop body
LE: loop exit
PB: predicated region body
PF: predicated region fallthrough
CT: control target
= control target key end

     0   :  { %s8764_s21 = smov 0   ;;  %s11642_s0 = inlined_call_operand.vmem [shape: bf16[2,32,256], index: 0, kind: input, shape index: {}]   ;;  %s11643_s1 = inlined_call_operand.vmem [shape: bf16[5,32,288], index: 1, kind: input, shape index: {}]   ;;  %s11644_s2 = inlined_call_operand.vmem [shape: f32[5,32,1], index: 2, kind: input, shape index: {}]   ;;  %s11645_s3 = inlined_call_operand.vmem [shape: bf16[10,32], index: 3, kind: input, shape index: {}]   ;;  %s11646_s4 = inlined_call_operand.vmem [shape: f32[10,1], index: 4, kind: input, shape index: {}]   ;;  %s11647_s5 = inlined_call_operand.vmem [shape: f32[9,1,256], index: 5, kind: input, shape index: {}]   ;;  %s11648_s6 = inlined_call_operand.vmem [shape: f32[2,10,1], index: 6, kind: output, shape index: {}]  }
   0x1 LB: > { %s7410_s22 = sadd.s32 4294967295, %s8711_s21   ;;  %p7414_p0 = scmp.ge.s32.totalorder %s8711_s21, 1  ;;  %s8711_s21 = sphi %s8764_s21, %s16_s21  }
   0x2   : > { %p212_p1 = scmp.lt.s32.totalorder %s8711_s21, 3 }
   0x4   : > { %p213_p2 = pnand %p7414_p0, %p212_p1 }
   0x5   : > { %p242_p3 = scmp.lt.s32.totalorder (!%p213_p2), %s7410_s22, 1  ;;  %s8714_s29 = smov (!%p213_p2), 16  }
   0x6   : > { %216 = sbr.rel (%p213_p2) target bundleno = 3667 (0xe53), region = 44  ;;  %s8715_s8 = smov (!%p213_p2), 17  }
   0x7   : > { %s8716_s11 = smov (!%p213_p2), 2   ;;  %s8717_s14 = smov (!%p213_p2), 32  }
   0x8   : > { %s8718_s17 = smov (!%p213_p2), 18   ;;  %s8719_s18 = smov (!%p213_p2), 34  }
   0x9   : > { %s8720_s19 = smov (!%p213_p2), 127   ;;  %s8721_s20 = smov (!%p213_p2), 95  }
   0xa   : > { %s8723_s26 = smov (!%p213_p2), 112   ;;  %s8724_s27 = smov (!%p213_p2), 126  }
   0xb   : > { %v342_v0 = vlaneseq  ;;  %s11650_s22 = smov (!%p242_p3, %s7410_s22), 1  ;;  %vm255_vm0 = vcmask 277504   ;;  %v7440_v2 = vld [vmem:[%s11647_s5 + $0x6] sm:$0x3]  ;;  %v8713_v3 = vmov 0.0   ;;  %vm302_vm1 = vcmask 138240  }
   0xc   : > { %260 = vst [vmem:[#allocation2 + $0x30] sm:$0xff] %v8713_v3  ;;  %262 = vst.msk [vmem:[#allocation2 + $0x40] sm:$0xff] %vm255_vm0, %v8713_v3  ;;  %s8096_s25 = sshll.u32 %s11650_s22, 5  ;;  %v7431_v22 = vld [vmem:[%s11647_s5 + $0x4] sm:$0x3]  ;;  %vm319_vm2 = vcmask 1047688  }
   0xd   : > { %v343_v1 = vshrl.u32 %v342_v0, 7  ;;  %253 = vst [vmem:[#allocation2] sm:$0xff] %v8713_v3  ;;  %256 = vst.msk [vmem:[#allocation2 + $0x10] sm:$0xff] %vm255_vm0, %v8713_v3  ;;  %s246_s28 = scalar_lea.vmem %s11642_s0, %s8096_s25  ;;  %v7466_v25 = vld [vmem:[%s11647_s5 + $0xc] sm:$0x3]  ;;  %s8722_s25 = smov 111  }
   0xe   : > { %257 = vst [vmem:[#allocation2 + $0x18] sm:$0xff] %v8713_v3  ;;  %259 = vst.msk [vmem:[#allocation2 + $0x28] sm:$0xff] %vm255_vm0, %v8713_v3  ;;  %v268_v8 = vld [vmem:[%s246_s28 + $0x10] sm:$0xff]  ;;  %v266_v9 = vld [vmem:[%s246_s28] sm:$0xff]  ;;  %vm618_vm3 = vcmask 130048   ;;  %vm501_vm4 = vcmask 15360  }
   0xf   : > { %263 = vst [vmem:[#allocation2 + $0x48] sm:$0xff] %v8713_v3  ;;  %265 = vst.msk [vmem:[#allocation2 + $0x58] sm:$0xff] %vm255_vm0, %v8713_v3  ;;  %v8781_v4 = vsub.s32 1, %v343_v1  ;;  %v8783_v5 = vsub.s32 0, %v343_v1  ;;  %v269_v10 = vld [vmem:[%s246_s28 + $0x18] sm:$0xff]  ;;  %v274_v11 = vunpack.c.l.bf16 %v268_v8  ;;  %v275_v12 = vunpack.c.h.bf16 %v268_v8  ;;  %v267_v15 = vld [vmem:[%s246_s28 + $0x8] sm:$0xff] }
  0x10   : > { %v270_v13 = vunpack.c.l.bf16 %v266_v9  ;;  %v271_v14 = vunpack.c.h.bf16 %v266_v9  ;;  %v276_v16 = vunpack.c.l.bf16 %v269_v10  ;;  %v277_v17 = vunpack.c.h.bf16 %v269_v10  ;;  %v7457_v30 = vld [vmem:[%s11647_s5 + $0xa] sm:$0x3]  ;;  %v7483_v33 = vld [vmem:[%s11647_s5 + $0x10] sm:$0x3]  ;;  %v8906_v8 = vld [vmem:[%s11647_s5] sm:$0x3] }
  0x11   : > { %v613_v6 = vrot.slane %v7440_v2, %v8781_v4  ;;  %v609_v7 = vrot.slane %v7440_v2, %v8783_v5  ;;  %v272_v18 = vunpack.c.l.bf16 %v267_v15  ;;  %v273_v19 = vunpack.c.h.bf16 %v267_v15  ;;  %s8725_s28 = smov 96   ;;  %s8726_s30 = smov 110  }
  0x12   : > { %v8482_v20 = vpack.i.bf16 %v275_v12, %v274_v11  ;;  %v8492_v21 = vpack.i.bf16 %v271_v14, %v270_v13  ;;  %v8487_v23 = vpack.i.bf16 %v277_v17, %v276_v16  ;;  %v492_v26 = vrot.slane %v7431_v22, %v8783_v5  ;;  %s8727_s7 = smov 94  }
  0x13   : > { %616 = vrot.lane.b32.xlu1 %v613_v6, %s8714_s29  ;;  %614 = vrot.lane.b32.xlu0 %v609_v7, %s8714_s29  ;;  %v8497_v24 = vpack.i.bf16 %v273_v19, %v272_v18  ;;  %v496_v27 = vrot.slane %v7431_v22, %v8781_v4  ;;  %v928_v28 = vrot.slane %v7466_v25, %v8783_v5  ;;  %vm937_vm5 = vcmask 261120  }
  0x14   : > { %v932_v29 = vrot.slane %v7466_v25, %v8781_v4  ;;  %v811_v31 = vrot.slane %v7457_v30, %v8783_v5  ;;  %v815_v32 = vrot.slane %v7457_v30, %v8781_v4  ;;  %v1130_v34 = vrot.slane %v7483_v33, %v8783_v5 }
  0x15   : > { %v1134_v35 = vrot.slane %v7483_v33, %v8781_v4  ;;  %v349_v9 = vrot.slane %v8906_v8, %v8781_v4  ;;  %vm820_vm6 = vcmask 146432   ;;  %vm456_vm7 = vcmask 1043456  }
  0x16   : > { %vm692_vm8 = vcmask 916480   ;;  %vm575_vm9 = vcmask 1031168   ;;  %vm458_vm10 = vcmask 1039360   ;;  %vm1096_vm11 = vcmask 777216  }
  0x17   : > { %8483 = vrot.lane.b32.xlu0 %v8482_v20, %s8715_s8  ;;  %8493 = vrot.lane.b32.xlu1 %v8492_v21, %s8715_s8  ;;  %vm1011_vm12 = vcmask 785408   ;;  %vm894_vm13 = vcmask 900096   ;;  %vm1212_vm14 = vcmask 769024   ;;  %vm777_vm15 = vcmask 908288  }
  0x1b   : > { %8488 = vrot.lane.b32.xlu0 %v8487_v23, %s8715_s8  ;;  %8498 = vrot.lane.b32.xlu1 %v8497_v24, %s8715_s8 }
  0x1f   : > { %497 = vrot.lane.b32.xlu0 %v492_v26, %s8716_s11  ;;  %499 = vrot.lane.b32.xlu1 %v496_v27, %s8716_s11 }
  0x23   : > { %933 = vrot.lane.b32.xlu0 %v928_v28, %s8717_s14  ;;  %935 = vrot.lane.b32.xlu1 %v932_v29, %s8717_s14 }
  0x27   : > { %816 = vrot.lane.b32.xlu0 %v811_v31, %s8718_s17  ;;  %818 = vrot.lane.b32.xlu1 %v815_v32, %s8718_s17 }
  0x2b   : > { %1135 = vrot.lane.b32.xlu0 %v1130_v34, %s8719_s18  ;;  %1137 = vrot.lane.b32.xlu1 %v1134_v35, %s8719_s18 }
  0x85   : > { %v8825_v36 = vpop.permute.xlu1 %616  ;;  %v8827_v37 = vpop.permute.xlu0 %614 }
  0x86   : > { %v619_v18 = vsel %vm618_vm3, %v8827_v37, %v8825_v36 }
  0x89   : > { %v8484_v38 = vpop.permute.xlu0 %8483  ;;  %v8494_v39 = vpop.permute.xlu1 %8493 }
  0x8a   : > { %v8486_v40 = vunpack.i.h.bf16 %v8484_v38  ;;  %v8485_v41 = vunpack.i.l.bf16 %v8484_v38  ;;  %v8496_v42 = vunpack.i.h.bf16 %v8494_v39  ;;  %v8495_v43 = vunpack.i.l.bf16 %v8494_v39 }
  0x8c   : > { %328 = vst.msk [vmem:[#allocation2 + $0x40] sm:$0xff] %vm302_vm1, %v8486_v40  ;;  %322 = vst.msk [vmem:[#allocation2 + $0x10] sm:$0xff] %vm302_vm1, %v8496_v42  ;;  %v8838_v50 = vsel %vm302_vm1, %v8485_v41, %v8486_v40  ;;  %v8872_v63 = vsel %vm302_vm1, %v8495_v43, %v8496_v42 }
  0x8d   : > { %326 = vst.msk [vmem:[#allocation2 + $0x30] sm:$0xff] %vm319_vm2, %v8485_v41  ;;  %320 = vst.msk [vmem:[#allocation2] sm:$0xff] %vm319_vm2, %v8495_v43  ;;  %v8489_v44 = vpop.permute.xlu0 %8488  ;;  %v8499_v45 = vpop.permute.xlu1 %8498  ;;  %v8916_v11 = vmul.f32 %v349_v9, %v8872_v63  ;;  %v8922_v13 = vmul.f32 %v349_v9, %v8838_v50  ;;  %v630_v19 = vmul.f32 %v619_v18, %v8838_v50 }
  0x8e   : > { %v8491_v46 = vunpack.i.h.bf16 %v8489_v44  ;;  %v8490_v47 = vunpack.i.l.bf16 %v8489_v44  ;;  %v8501_v48 = vunpack.i.h.bf16 %v8499_v45  ;;  %v8500_v49 = vunpack.i.l.bf16 %v8499_v45 }
  0x8f   : > { %v624_v31 = vmul.f32 %v619_v18, %v8872_v63 }
  0x90   : > { %331 = vst.msk [vmem:[#allocation2 + $0x58] sm:$0xff] %vm302_vm1, %v8491_v46  ;;  %325 = vst.msk [vmem:[#allocation2 + $0x28] sm:$0xff] %vm302_vm1, %v8501_v48  ;;  %v8851_v55 = vsel %vm302_vm1, %v8490_v47, %v8491_v46  ;;  %v8891_v6 = vsel %vm302_vm1, %v8500_v49, %v8501_v48 }
  0x91   : > { %329 = vst.msk [vmem:[#allocation2 + $0x48] sm:$0xff] %vm319_vm2, %v8490_v47  ;;  %323 = vst.msk [vmem:[#allocation2 + $0x18] sm:$0xff] %vm319_vm2, %v8500_v49  ;;  %v8913_v10 = vmul.f32 %v349_v9, %v8851_v55  ;;  %v8919_v12 = vmul.f32 %v349_v9, %v8891_v6  ;;  %v633_v24 = vmul.f32 %v619_v18, %v8851_v55  ;;  %v498_v25 = vpop.permute.xlu0 %497  ;;  %v500_v26 = vpop.permute.xlu1 %499 }
  0x92   : > { %v502_v32 = vsel %vm501_vm4, %v498_v25, %v500_v26  ;;  %v627_v39 = vmul.f32 %v619_v18, %v8891_v6 }
  0x93   : > { %v8840_v51 = vld [vmem:[#allocation2 + $0x40] sm:$0xff]  ;;  %v8861_v60 = vld [vmem:[#allocation2 + $0x10] sm:$0xff]  ;;  %v8441_v14 = vpack.c.bf16 %v8913_v10, %v8922_v13  ;;  %v8439_v15 = vpack.c.bf16 %v8919_v12, %v8916_v11  ;;  %v513_v40 = vmul.f32 %v502_v32, %v8838_v50  ;;  %v516_v47 = vmul.f32 %v502_v32, %v8851_v55 }
  0x94   : > { %v8842_v52 = vld [vmem:[#allocation2 + $0x30] sm:$0xff]  ;;  %v8107_v53 = vpack.c.bf16 %v8840_v51, %v8840_v51  ;;  %v8863_v61 = vld [vmem:[#allocation2] sm:$0xff]  ;;  %v8869_v62 = vpack.c.bf16 %v8861_v60, %v8861_v60  ;;  %v631_v16 = vmul.f32 %v8825_v36, %v8840_v51  ;;  %v625_v29 = vmul.f32 %v8825_v36, %v8861_v60 }
  0x95   : > { %v8106_v54 = vpack.c.bf16 %v8838_v50, %v8842_v52  ;;  %v8876_v0 = vpack.c.bf16 %v8872_v63, %v8863_v61  ;;  %v629_v17 = vmul.f32 %v8827_v37, %v8842_v52  ;;  %v623_v30 = vmul.f32 %v8827_v37, %v8863_v61  ;;  %v936_v9 = vpop.permute.xlu1 %935 }
  0x96   : > { %442 = vrot.lane.b32.xlu1 %v8107_v53, %s8720_s19  ;;  %v8123_v20 = vpack.c.bf16 %v631_v16, %v631_v16  ;;  %v8119_v33 = vpack.c.bf16 %v625_v29, %v625_v29  ;;  %v514_v43 = vmul.f32 %v500_v26, %v8840_v51  ;;  %v512_v44 = vmul.f32 %v498_v25, %v8842_v52 }
  0x97   : > { %440 = vrot.lane.b32.xlu0 %v8106_v54, %s8720_s19  ;;  %v8853_v56 = vld [vmem:[#allocation2 + $0x58] sm:$0xff]  ;;  %v8878_v1 = vld [vmem:[#allocation2 + $0x28] sm:$0xff]  ;;  %v8122_v21 = vpack.c.bf16 %v630_v19, %v629_v17  ;;  %v8118_v34 = vpack.c.bf16 %v624_v31, %v623_v30  ;;  %v507_v48 = vmul.f32 %v502_v32, %v8872_v63  ;;  %v510_v16 = vmul.f32 %v502_v32, %v8891_v6 }
  0x98   : > { %v8855_v57 = vld [vmem:[#allocation2 + $0x48] sm:$0xff]  ;;  %v8109_v58 = vpack.c.bf16 %v8853_v56, %v8853_v56  ;;  %v8880_v2 = vld [vmem:[#allocation2 + $0x18] sm:$0xff]  ;;  %v8888_v3 = vpack.c.bf16 %v8878_v1, %v8878_v1  ;;  %v634_v22 = vmul.f32 %v8825_v36, %v8853_v56  ;;  %v628_v35 = vmul.f32 %v8825_v36, %v8878_v1 }
  0x99   : > { %v8108_v59 = vpack.c.bf16 %v8851_v55, %v8855_v57  ;;  %v8895_v7 = vpack.c.bf16 %v8891_v6, %v8880_v2  ;;  %v632_v23 = vmul.f32 %v8827_v37, %v8855_v57  ;;  %v626_v38 = vmul.f32 %v8827_v37, %v8880_v2 }
  0x9a   : > { %446 = vrot.lane.b32.xlu1 %v8109_v58, %s8720_s19  ;;  %v8125_v27 = vpack.c.bf16 %v634_v22, %v634_v22  ;;  %v8121_v41 = vpack.c.bf16 %v628_v35, %v628_v35  ;;  %v8115_v36 = vpack.c.bf16 %v514_v43, %v514_v43  ;;  %v8114_v37 = vpack.c.bf16 %v513_v40, %v512_v44  ;;  %v819_v40 = vpop.permute.xlu1 %818 }
  0x9b   : > { %444 = vrot.lane.b32.xlu0 %v8108_v59, %s8720_s19  ;;  %v8124_v28 = vpack.c.bf16 %v633_v24, %v632_v23  ;;  %v8120_v42 = vpack.c.bf16 %v627_v39, %v626_v38  ;;  %v517_v45 = vmul.f32 %v500_v26, %v8853_v56  ;;  %v515_v46 = vmul.f32 %v498_v25, %v8855_v57 }
  0x9c   : > { %v511_v19 = vmul.f32 %v500_v26, %v8878_v1  ;;  %v950_v22 = vmul.f32 %v936_v9, %v8840_v51  ;;  %v953_v29 = vmul.f32 %v936_v9, %v8853_v56  ;;  %v944_v32 = vmul.f32 %v936_v9, %v8861_v60 }
  0x9d   : > { %v8117_v49 = vpack.c.bf16 %v517_v45, %v517_v45 }
  0x9e   : > { %434 = vrot.lane.b32.xlu1 %v8869_v62, %s8720_s19  ;;  %v8113_v23 = vpack.c.bf16 %v511_v19, %v511_v19 }
  0x9f   : > { %432 = vrot.lane.b32.xlu0 %v8876_v0, %s8720_s19 }
  0xa2   : > { %438 = vrot.lane.b32.xlu1 %v8888_v3, %s8720_s19 }
  0xa3   : > { %436 = vrot.lane.b32.xlu0 %v8895_v7, %s8720_s19 }
  0xa6   : > { %1081 = vrot.lane.b32.xlu1 %v8107_v53, %s8721_s20 }
  0xa7   : > { %1079 = vrot.lane.b32.xlu0 %v8106_v54, %s8721_s20 }
  0xaa   : > { %1085 = vrot.lane.b32.xlu1 %v8109_v58, %s8721_s20 }
  0xab   : > { %1083 = vrot.lane.b32.xlu0 %v8108_v59, %s8721_s20 }
  0xae   : > { %1073 = vrot.lane.b32.xlu1 %v8869_v62, %s8721_s20 }
  0xaf   : > { %1071 = vrot.lane.b32.xlu0 %v8876_v0, %s8721_s20 }
  0xb2   : > { %1077 = vrot.lane.b32.xlu1 %v8888_v3, %s8721_s20 }
  0xb3   : > { %1075 = vrot.lane.b32.xlu0 %v8895_v7, %s8721_s20 }
  0xb6   : > { %762 = vrot.lane.b32.xlu1 %v8107_v53, %s8722_s25  ;;  %v8116_v53 = vpack.c.bf16 %v516_v47, %v515_v46  ;;  %v833_v47 = vmul.f32 %v819_v40, %v8840_v51 }
  0xb7   : > { %760 = vrot.lane.b32.xlu0 %v8106_v54, %s8722_s25  ;;  %v508_v54 = vmul.f32 %v500_v26, %v8861_v60  ;;  %v8147_v26 = vpack.c.bf16 %v950_v22, %v950_v22  ;;  %v1138_v22 = vpop.permute.xlu1 %1137 }
  0xb9   : > { %v8111_v17 = vpack.c.bf16 %v508_v54, %v508_v54  ;;  %v8139_v54 = vpack.c.bf16 %v833_v47, %v833_v47 }
  0xba   : > { %766 = vrot.lane.b32.xlu1 %v8109_v58, %s8722_s25  ;;  %v506_v58 = vmul.f32 %v498_v25, %v8863_v61 }
  0xbb   : > { %764 = vrot.lane.b32.xlu0 %v8108_v59, %s8722_s25  ;;  %v934_v59 = vpop.permute.xlu0 %933 }
  0xbc   : > { %v8110_v18 = vpack.c.bf16 %v507_v48, %v506_v58  ;;  %v951_v30 = vmul.f32 %v934_v59, %v8855_v57  ;;  %v942_v35 = vmul.f32 %v934_v59, %v8863_v61  ;;  %v945_v44 = vmul.f32 %v934_v59, %v8880_v2 }
  0xbe   : > { %677 = vrot.lane.b32.xlu1 %v8123_v20, %s8723_s26  ;;  %v509_v20 = vmul.f32 %v498_v25, %v8880_v2 }
  0xbf   : > { %675 = vrot.lane.b32.xlu0 %v8122_v21, %s8723_s26  ;;  %v938_v21 = vsel %vm937_vm5, %v934_v59, %v936_v9  ;;  %v817_v39 = vpop.permute.xlu0 %816 }
  0xc0   : > { %v8112_v24 = vpack.c.bf16 %v510_v16, %v509_v20  ;;  %v952_v31 = vmul.f32 %v938_v21, %v8851_v55  ;;  %v943_v38 = vmul.f32 %v938_v21, %v8872_v63  ;;  %v831_v48 = vmul.f32 %v817_v39, %v8842_v52 }
  0xc1   : > { %v827_v16 = vmul.f32 %v819_v40, %v8861_v60  ;;  %v825_v19 = vmul.f32 %v817_v39, %v8863_v61 }
  0xc2   : > { %681 = vrot.lane.b32.xlu1 %v8125_v27, %s8723_s26  ;;  %v948_v27 = vmul.f32 %v934_v59, %v8842_v52  ;;  %v8142_v43 = vpack.c.bf16 %v943_v38, %v942_v35  ;;  %v834_v59 = vmul.f32 %v817_v39, %v8855_v57  ;;  %v1154_v38 = vmul.f32 %v1138_v22, %v8853_v56 }
  0xc3   : > { %679 = vrot.lane.b32.xlu0 %v8124_v28, %s8723_s26  ;;  %v949_v28 = vmul.f32 %v938_v21, %v8838_v50 }
  0xc5   : > { %v8146_v25 = vpack.c.bf16 %v949_v28, %v948_v27  ;;  %v830_v27 = vmul.f32 %v819_v40, %v8878_v1  ;;  %v828_v28 = vmul.f32 %v817_v39, %v8880_v2 }
  0xc6   : > { %669 = vrot.lane.b32.xlu1 %v8119_v33, %s8723_s26  ;;  %v8149_v33 = vpack.c.bf16 %v953_v29, %v953_v29  ;;  %v1151_v29 = vmul.f32 %v1138_v22, %v8840_v51  ;;  %v8165_v51 = vpack.c.bf16 %v1154_v38, %v1154_v38 }
  0xc7   : > { %667 = vrot.lane.b32.xlu0 %v8118_v34, %s8723_s26  ;;  %v8148_v34 = vpack.c.bf16 %v952_v31, %v951_v30  ;;  %v8137_v30 = vpack.c.bf16 %v830_v27, %v830_v27 }
  0xca   : > { %673 = vrot.lane.b32.xlu1 %v8121_v41, %s8723_s26  ;;  %v947_v41 = vmul.f32 %v936_v9, %v8878_v1 }
  0xcb   : > { %671 = vrot.lane.b32.xlu0 %v8120_v42, %s8723_s26  ;;  %v8143_v42 = vpack.c.bf16 %v944_v32, %v944_v32 }
  0xcc   : > { %v8145_v45 = vpack.c.bf16 %v947_v41, %v947_v41 }
  0xce   : > { %560 = vrot.lane.b32.xlu1 %v8115_v36, %s8724_s27  ;;  %v946_v36 = vmul.f32 %v938_v21, %v8891_v6  ;;  %v1136_v21 = vpop.permute.xlu0 %1135 }
  0xcf   : > { %558 = vrot.lane.b32.xlu0 %v8114_v37, %s8724_s27  ;;  %v821_v37 = vsel %vm820_vm6, %v817_v39, %v819_v40  ;;  %v1149_v32 = vmul.f32 %v1136_v21, %v8842_v52  ;;  %v1152_v39 = vmul.f32 %v1136_v21, %v8855_v57 }
  0xd0   : > { %v8144_v46 = vpack.c.bf16 %v946_v36, %v945_v44  ;;  %v835_v9 = vmul.f32 %v821_v37, %v8851_v55  ;;  %v826_v20 = vmul.f32 %v821_v37, %v8872_v63  ;;  %v8506_v44 = vld [vmem:[%s11643_s1 + $0x4] ss:$12 sps:$4 sm:$0xff]  }
  0xd1   : > { %1544 = vmatprep.mubr.bf16.mxu0 %v8506_v44 }
  0xd2   : > { %564 = vrot.lane.b32.xlu1 %v8117_v49, %s8724_s27  ;;  %v832_v49 = vmul.f32 %v821_v37, %v8838_v50 }
  0xd3   : > { %562 = vrot.lane.b32.xlu0 %v8116_v53, %s8724_s27  ;;  %v836_v53 = vmul.f32 %v819_v40, %v8853_v56  ;;  %v1145_v56 = vmul.f32 %v1138_v22, %v8861_v60 }
  0xd4   : > { %v8138_v58 = vpack.c.bf16 %v832_v49, %v831_v48  ;;  %v1275_v49 = vld [vmem:[%s11644_s2 + $0x18] sm:$0xff] }
  0xd6   : > { %552 = vrot.lane.b32.xlu1 %v8111_v17, %s8724_s27  ;;  %v8141_v17 = vpack.c.bf16 %v836_v53, %v836_v53  ;;  %v1274_v53 = vld [vmem:[%s11644_s2 + $0x10] sm:$0xff] }
  0xd7   : > { %550 = vrot.lane.b32.xlu0 %v8110_v18, %s8724_s27  ;;  %v8140_v18 = vpack.c.bf16 %v835_v9, %v834_v59  ;;  %v1272_v59 = vld [vmem:[%s11644_s2] sm:$0xff]  ;;  %v1273_v9 = vld [vmem:[%s11644_s2 + $0x8] sm:$0xff] }
  0xda   : > { %556 = vrot.lane.b32.xlu1 %v8113_v23, %s8724_s27  ;;  %v8135_v23 = vpack.c.bf16 %v827_v16, %v827_v16 }
  0xdb   : > { %554 = vrot.lane.b32.xlu0 %v8112_v24, %s8724_s27  ;;  %v8134_v24 = vpack.c.bf16 %v826_v20, %v825_v19 }
  0xde   : > { %996 = vrot.lane.b32.xlu1 %v8147_v26, %s8725_s28  ;;  %v829_v26 = vmul.f32 %v821_v37, %v8891_v6 }
  0xdf   : > { %994 = vrot.lane.b32.xlu0 %v8146_v25, %s8725_s28  ;;  %v1139_v25 = vsel %vm255_vm0, %v1136_v21, %v1138_v22 }
  0xe0   : > { %v8136_v31 = vpack.c.bf16 %v829_v26, %v828_v28  ;;  %v1153_v40 = vmul.f32 %v1139_v25, %v8851_v55 }
  0xe2   : > { %1000 = vrot.lane.b32.xlu1 %v8149_v33, %s8725_s28  ;;  %v1150_v33 = vmul.f32 %v1139_v25, %v8838_v50  ;;  %v8164_v41 = vpack.c.bf16 %v1153_v40, %v1152_v39 }
  0xe3   : > { %998 = vrot.lane.b32.xlu0 %v8148_v34, %s8725_s28  ;;  %v8163_v34 = vpack.c.bf16 %v1151_v29, %v1151_v29 }
  0xe4   : > { %v8162_v35 = vpack.c.bf16 %v1150_v33, %v1149_v32 }
  0xe6   : > { %988 = vrot.lane.b32.xlu1 %v8143_v42, %s8725_s28  ;;  %v1143_v42 = vmul.f32 %v1136_v21, %v8863_v61 }
  0xe7   : > { %986 = vrot.lane.b32.xlu0 %v8142_v43, %s8725_s28  ;;  %v1144_v43 = vmul.f32 %v1139_v25, %v8872_v63  ;;  %v8159_v63 = vpack.c.bf16 %v1145_v56, %v1145_v56 }
  0xe9   : > { %v8158_v37 = vpack.c.bf16 %v1144_v43, %v1143_v42 }
  0xea   : > { %992 = vrot.lane.b32.xlu1 %v8145_v45, %s8725_s28  ;;  %v1147_v45 = vmul.f32 %v1139_v25, %v8891_v6 }
  0xeb   : > { %990 = vrot.lane.b32.xlu0 %v8144_v46, %s8725_s28  ;;  %v8728_v46 = vmov 0  }
  0xec   : > { %1597 = vmatprep.mubr.bf16.mxu1 %v8728_v46  ;;  %8503 = vset.pattern.permute.xlu1 %v8728_v46 }
  0xed   : > { %8502 = vset.pattern.permute.xlu0 %v8728_v46 }
  0xee   : > { %879 = vrot.lane.b32.xlu1 %v8139_v54, %s8726_s30 }
  0xef   : > { %877 = vrot.lane.b32.xlu0 %v8138_v58, %s8726_s30 }
  0xf2   : > { %883 = vrot.lane.b32.xlu1 %v8141_v17, %s8726_s30 }
  0xf3   : > { %881 = vrot.lane.b32.xlu0 %v8140_v18, %s8726_s30 }
  0xf6   : > { %871 = vrot.lane.b32.xlu1 %v8135_v23, %s8726_s30 }
  0xf7   : > { %869 = vrot.lane.b32.xlu0 %v8134_v24, %s8726_s30 }
  0xfa   : > { %875 = vrot.lane.b32.xlu1 %v8137_v30, %s8726_s30 }
  0xfb   : > { %873 = vrot.lane.b32.xlu0 %v8136_v31, %s8726_s30 }
  0xfe   : > { %1197 = vrot.lane.b32.xlu1 %v8163_v34, %s8727_s7 }
  0xff   : > { %1195 = vrot.lane.b32.xlu0 %v8162_v35, %s8727_s7 }
 0x102   : > { %1201 = vrot.lane.b32.xlu1 %v8165_v51, %s8727_s7 }
 0x103   : > { %1199 = vrot.lane.b32.xlu0 %v8164_v41, %s8727_s7 }
 0x106   : > { %754 = vrot.lane.b32.xlu1 %v8869_v62, %s8722_s25  ;;  %v1148_v62 = vmul.f32 %v1138_v22, %v8878_v1 }
 0x107   : > { %752 = vrot.lane.b32.xlu0 %v8876_v0, %s8722_s25  ;;  %v1146_v0 = vmul.f32 %v1136_v21, %v8880_v2 }
 0x108   : > { %v9049_v50 = vpop.permute.xlu1 %442 }
 0x109   : > { %v9051_v55 = vpop.permute.xlu0 %440  ;;  %v8160_v47 = vpack.c.bf16 %v1147_v45, %v1146_v0 }
 0x10a   : > { %758 = vrot.lane.b32.xlu1 %v8888_v3, %s8722_s25 }
 0x10b   : > { %756 = vrot.lane.b32.xlu0 %v8895_v7, %s8722_s25  ;;  %v8161_v7 = vpack.c.bf16 %v1148_v62, %v1148_v62 }
 0x10c   : > { %v9065_v60 = vpop.permute.xlu1 %446 }
 0x10d   : > { %v9067_v36 = vpop.permute.xlu0 %444 }
 0x10e   : > { %1189 = vrot.lane.b32.xlu1 %v8159_v63, %s8727_s7 }
 0x10f   : > { %1187 = vrot.lane.b32.xlu0 %v8158_v37, %s8727_s7 }
 0x110   : > { %v9075_v1 = vpop.permute.xlu1 %434 }
 0x111   : > { %v9077_v3 = vpop.permute.xlu0 %432 }
 0x112   : > { %1193 = vrot.lane.b32.xlu1 %v8161_v7, %s8727_s7 }
 0x113   : > { %1191 = vrot.lane.b32.xlu0 %v8160_v47, %s8727_s7 }
 0x114   : > { %v9081_v6 = vpop.permute.xlu1 %438 }
 0x115   : > { %v9083_v48 = vpop.permute.xlu0 %436 }
 0x116   : > { %1293 = vperm.xlu1 %8503, %v1275_v49  }
 0x117   : > { %1288 = vperm.xlu0 %8502, %v1274_v53  }
 0x118   : > { %v9091_v54 = vpop.permute.xlu1 %1081 }
 0x119   : > { %v9093_v58 = vpop.permute.xlu0 %1079 }
 0x11a   : > { %1278 = vperm.xlu1 %8503, %v1272_v59  }
 0x11b   : > { %1283 = vperm.xlu0 %8502, %v1273_v9  }
 0x11c   : > { %v9101_v16 = vpop.permute.xlu1 %1085 }
 0x11d   : > { %v9103_v17 = vpop.permute.xlu0 %1083 }
 0x120   : > { %v9105_v18 = vpop.permute.xlu1 %1073 }
 0x121   : > { %v9107_v19 = vpop.permute.xlu0 %1071 }
 0x124   : > { %v9109_v20 = vpop.permute.xlu1 %1077 }
 0x125   : > { %v9111_v21 = vpop.permute.xlu0 %1075 }
 0x128   : > { %v9113_v22 = vpop.permute.xlu1 %762 }
 0x129   : > { %v9115_v23 = vpop.permute.xlu0 %760 }
 0x12c   : > { %v9117_v24 = vpop.permute.xlu1 %766 }
 0x12d   : > { %v9119_v27 = vpop.permute.xlu0 %764 }
 0x130   : > { %v678_v28 = vpop.permute.xlu1 %677 }
 0x131   : > { %v676_v26 = vpop.permute.xlu0 %675  ;;  %v688_v25 = vrot.slane %v678_v28, 4 }
 0x132   : > { %v687_v29 = vrot.slane %v676_v26, 4 }
 0x134   : > { %v682_v30 = vpop.permute.xlu1 %681  ;;  %v696_v34 = vsel %vm456_vm7, %v687_v29, %v688_v25 }
 0x135   : > { %v680_v31 = vpop.permute.xlu0 %679  ;;  %v690_v32 = vrot.slane %v682_v30, 4  ;;  %v697_v40 = vsel %vm692_vm8, %v676_v26, %v696_v34  ;;  %v455_v34 = vrot.slane %v9065_v60, 4  ;;  %v451_v60 = vrot.slane %v9081_v6, 4 }
 0x136   : > { %v689_v33 = vrot.slane %v680_v31, 4 }
 0x138   : > { %v698_v35 = vsel %vm456_vm7, %v689_v33, %v690_v32  ;;  %v670_v38 = vpop.permute.xlu1 %669 }
 0x139   : > { %v668_v39 = vpop.permute.xlu0 %667  ;;  %v699_v51 = vsel %vm692_vm8, %v680_v31, %v698_v35  ;;  %v684_v41 = vrot.slane %v670_v38, 4  ;;  %v454_v35 = vrot.slane %v9067_v36, 4 }
 0x13a   : > { %v683_v56 = vrot.slane %v668_v39, 4  ;;  %v7513_v42 = vcombine.high %v697_v40, %v699_v51  ;;  %v7512_v43 = vcombine.low %v697_v40, %v699_v51 }
 0x13c   : > { %1512 = vmatprep.subr.bf16.mxu0 %v7513_v42  ;;  %v674_v44 = vpop.permute.xlu1 %673  ;;  %v691_v0 = vsel %vm456_vm7, %v683_v56, %v684_v41 }
 0x13d   : > { %1513 = vmatpush1.bf16.msra.mxu0 %v7512_v43  ;;  %v672_v62 = vpop.permute.xlu0 %671  ;;  %v686_v63 = vrot.slane %v674_v44, 4  ;;  %v693_v7 = vsel %vm692_vm8, %v668_v39, %v691_v0  ;;  %v453_v44 = vrot.slane %v9049_v50, 4  ;;  %v464_v0 = vsel %vm456_vm7, %v454_v35, %v455_v34 }
 0x13e   : > { %v685_v37 = vrot.slane %v672_v62, 4  ;;  %v449_v50 = vrot.slane %v9075_v1, 4  ;;  %v465_v6 = vsel %vm458_vm10, %v9067_v36, %v464_v0 }
 0x140   : > { %v694_v45 = vsel %vm456_vm7, %v685_v37, %v686_v63  ;;  %v561_v49 = vpop.permute.xlu1 %560 }
 0x141   : > { %v695_v47 = vsel %vm692_vm8, %v672_v62, %v694_v45  ;;  %v559_v53 = vpop.permute.xlu0 %558  ;;  %v571_v59 = vrot.slane %v561_v49, 4  ;;  %v452_v62 = vrot.slane %v9051_v55, 4  ;;  %v450_v45 = vrot.slane %v9083_v48, 4 }
 0x142   : > { %v570_v9 = vrot.slane %v559_v53, 4  ;;  %v7511_v28 = vcombine.high %v693_v7, %v695_v47  ;;  %v7510_v26 = vcombine.low %v693_v7, %v695_v47 }
 0x144   : > { %1514 = vmatprep.subr.bf16.mxu0 %v7511_v28  ;;  %v565_v25 = vpop.permute.xlu1 %564  ;;  %v579_v30 = vsel %vm456_vm7, %v570_v9, %v571_v59  ;;  %v448_v59 = vrot.slane %v9077_v3, 4 }
 0x145   : > { %1515 = vmatpush1.bf16.msra.mxu0 %v7510_v26  ;;  %v563_v29 = vpop.permute.xlu0 %562  ;;  %v573_v31 = vrot.slane %v565_v25, 4  ;;  %v580_v38 = vsel %vm575_vm9, %v559_v53, %v579_v30  ;;  %v462_v53 = vsel %vm456_vm7, %v452_v62, %v453_v44  ;;  %v460_v30 = vsel %vm456_vm7, %v450_v45, %v451_v60 }
 0x146   : > { %v572_v32 = vrot.slane %v563_v29, 4  ;;  %v463_v1 = vsel %vm458_vm10, %v9051_v55, %v462_v53  ;;  %v461_v36 = vsel %vm458_vm10, %v9083_v48, %v460_v30  ;;  %v1093_v48 = vrot.slane %v9103_v17, 4 }
 0x147   : > { %v7505_v34 = vcombine.high %v463_v1, %v465_v6  ;;  %v1091_v62 = vrot.slane %v9093_v58, 4 }
 0x148   : > { %v581_v33 = vsel %vm456_vm7, %v572_v32, %v573_v31  ;;  %v553_v40 = vpop.permute.xlu1 %552 }
 0x149   : > { %v582_v39 = vsel %vm575_vm9, %v563_v29, %v581_v33  ;;  %v551_v51 = vpop.permute.xlu0 %550  ;;  %v567_v41 = vrot.slane %v553_v40, 4  ;;  %v457_v33 = vsel %vm456_vm7, %v448_v59, %v449_v50  ;;  %v7504_v40 = vcombine.low %v463_v1, %v465_v6 }
 0x14a   : > { %v566_v56 = vrot.slane %v551_v51, 4  ;;  %v7509_v42 = vcombine.high %v580_v38, %v582_v39  ;;  %v7508_v43 = vcombine.low %v580_v38, %v582_v39  ;;  %v459_v39 = vsel %vm458_vm10, %v9077_v3, %v457_v33 }
 0x14b   : > { %v1092_v3 = vrot.slane %v9091_v54, 4 }
 0x14c   : > { %1516 = vmatprep.subr.bf16.mxu0 %v7509_v42  ;;  %v557_v63 = vpop.permute.xlu1 %556  ;;  %v574_v7 = vsel %vm456_vm7, %v566_v56, %v567_v41  ;;  %v345_v56 = vrot.slane %v8906_v8, %v8783_v5  ;;  %v1094_v42 = vrot.slane %v9101_v16, 4  ;;  %v1090_v8 = vrot.slane %v9109_v20, 4 }
 0x14d   : > { %1517 = vmatpush1.bf16.msra.mxu0 %v7508_v43  ;;  %v555_v37 = vpop.permute.xlu0 %554  ;;  %v569_v47 = vrot.slane %v557_v63, 4  ;;  %v576_v28 = vsel %vm575_vm9, %v551_v51, %v574_v7  ;;  %v7503_v51 = vcombine.high %v459_v39, %v461_v36  ;;  %v7502_v43 = vcombine.low %v459_v39, %v461_v36 }
 0x14e   : > { %v568_v49 = vrot.slane %v555_v37, 4  ;;  %v358_v44 = vmul.f32 %v8855_v57, %v345_v56  ;;  %v356_v63 = vmul.f32 %v8842_v52, %v345_v56  ;;  %v1089_v16 = vrot.slane %v9111_v21, 4 }
 0x14f   : > { %v352_v54 = vmul.f32 %v8863_v61, %v345_v56  ;;  %v354_v45 = vmul.f32 %v8880_v2, %v345_v56  ;;  %v1100_v7 = vsel %vm456_vm7, %v1091_v62, %v1092_v3  ;;  %v1088_v52 = vrot.slane %v9105_v18, 4 }
 0x150   : > { %v577_v9 = vsel %vm456_vm7, %v568_v49, %v569_v47  ;;  %v9149_v25 = vpop.permute.xlu1 %996  ;;  %v8440_v57 = vpack.c.bf16 %v358_v44, %v356_v63  ;;  %v1087_v47 = vrot.slane %v9107_v19, 4  ;;  %v1098_v10 = vsel %vm456_vm7, %v1089_v16, %v1090_v8 }
 0x151   : > { %v578_v26 = vsel %vm575_vm9, %v555_v37, %v577_v9  ;;  %v9151_v29 = vpop.permute.xlu0 %994  ;;  %v1102_v37 = vsel %vm456_vm7, %v1093_v48, %v1094_v42  ;;  %v1101_v2 = vsel %vm1096_vm11, %v9093_v58, %v1100_v7  ;;  %v1099_v9 = vsel %vm1096_vm11, %v9111_v21, %v1098_v10 }
 0x152   : > { %v7507_v31 = vcombine.high %v576_v28, %v578_v26  ;;  %v7506_v32 = vcombine.low %v576_v28, %v578_v26  ;;  %v1103_v20 = vsel %vm1096_vm11, %v9103_v17, %v1102_v37  ;;  %v1095_v18 = vsel %vm456_vm7, %v1087_v47, %v1088_v52 }
 0x153   : > { %v1007_v17 = vrot.slane %v9149_v25, 4  ;;  %v1006_v50 = vrot.slane %v9151_v29, 4  ;;  %v7529_v59 = vcombine.high %v1101_v2, %v1103_v20  ;;  %v1097_v58 = vsel %vm1096_vm11, %v9107_v19, %v1095_v18 }
 0x154   : > { %1518 = vmatprep.subr.bf16.mxu0 %v7507_v31  ;;  %v1001_v35 = vpop.permute.xlu1 %1000  ;;  %v7528_v26 = vcombine.low %v1101_v2, %v1103_v20  ;;  %v7527_v21 = vcombine.high %v1097_v58, %v1099_v9  ;;  %v7526_v39 = vcombine.low %v1097_v58, %v1099_v9 }
 0x155   : > { %1519 = vmatpush1.bf16.msra.mxu0 %v7506_v32  ;;  %v999_v38 = vpop.permute.xlu0 %998  ;;  %v1009_v13 = vrot.slane %v1001_v35, 4  ;;  %v1015_v25 = vsel %vm456_vm7, %v1006_v50, %v1007_v17 }
 0x156   : > { %1520 = vmatprep.subr.bf16.mxu0 %v7505_v34  ;;  %v1008_v61 = vrot.slane %v999_v38, 4  ;;  %v1016_v19 = vsel %vm1011_vm12, %v9151_v29, %v1015_v25 }
 0x158   : > { %v9161_v41 = vpop.permute.xlu1 %988  ;;  %v1017_v11 = vsel %vm456_vm7, %v1008_v61, %v1009_v13 }
 0x159   : > { %1521 = vmatpush1.bf16.msra.mxu0 %v7504_v40  ;;  %v9163_v55 = vpop.permute.xlu0 %986  ;;  %v1003_v30 = vrot.slane %v9161_v41, 4  ;;  %v1018_v32 = vsel %vm1011_vm12, %v999_v38, %v1017_v11 }
 0x15a   : > { %1522 = vmatprep.subr.bf16.mxu0 %v7503_v51  ;;  %v1002_v31 = vrot.slane %v9163_v55, 4  ;;  %v7525_v56 = vcombine.high %v1016_v19, %v1018_v32  ;;  %v7524_v62 = vcombine.low %v1016_v19, %v1018_v32 }
 0x15c   : > { %v993_v0 = vpop.permute.xlu1 %992  ;;  %v1010_v40 = vsel %vm456_vm7, %v1002_v31, %v1003_v30 }
 0x15d   : > { %1523 = vmatpush1.bf16.msra.mxu0 %v7502_v43  ;;  %v991_v60 = vpop.permute.xlu0 %990  ;;  %v1005_v12 = vrot.slane %v993_v0, 4  ;;  %v1012_v29 = vsel %vm1011_vm12, %v9163_v55, %v1010_v40 }
 0x15e   : > { %1524 = vmatprep.subr.bf16.mxu0 %v8441_v14  ;;  %v8438_v14 = vpack.c.bf16 %v354_v45, %v352_v54  ;;  %v774_v45 = vrot.slane %v9119_v27, 4 }
 0x160   : > { %v880_v49 = vpop.permute.xlu1 %879 }
 0x161   : > { %1525 = vmatpush1.bf16.msra.mxu0 %v8440_v57  ;;  %v9186_v53 = vpop.permute.xlu0 %877  ;;  %v890_v51 = vrot.slane %v880_v49, 4  ;;  %v773_v49 = vrot.slane %v9113_v22, 4 }
 0x162   : > { %1526 = vmatprep.subr.bf16.mxu0 %v8439_v15  ;;  %v1004_v15 = vrot.slane %v991_v60, 4  ;;  %v889_v41 = vrot.slane %v9186_v53, 4 }
 0x164   : > { %v884_v6 = vpop.permute.xlu1 %883  ;;  %v1013_v34 = vsel %vm456_vm7, %v1004_v15, %v1005_v12  ;;  %v898_v0 = vsel %vm456_vm7, %v889_v41, %v890_v51 }
 0x165   : > { %v882_v28 = vpop.permute.xlu0 %881  ;;  %1527 = vmatpush1.bf16.msra.mxu0 %v8438_v14  ;;  %v892_v36 = vrot.slane %v884_v6, 4  ;;  %v1014_v38 = vsel %vm1011_vm12, %v991_v60, %v1013_v34  ;;  %v775_v60 = vrot.slane %v9117_v24, 4  ;;  %v899_v47 = vsel %vm894_vm13, %v9186_v53, %v898_v0 }
 0x166   : > { %1528 = vmatprep.subr.bf16.mxu0 %v7529_v59  ;;  %v891_v35 = vrot.slane %v882_v28, 4  ;;  %v7523_v8 = vcombine.high %v1012_v29, %v1014_v38  ;;  %v7522_v20 = vcombine.low %v1012_v29, %v1014_v38  ;;  %v772_v24 = vrot.slane %v9115_v23, 4 }
 0x167   : > { %v783_v18 = vsel %vm456_vm7, %v774_v45, %v775_v60  ;;  %v8509_v45 = vld [vmem:[%s11643_s1 + $0x18] ss:$12 sps:$4 sm:$0xff]  }
 0x168   : > { %v872_v1 = vpop.permute.xlu1 %871  ;;  %v900_v43 = vsel %vm456_vm7, %v891_v35, %v892_v36  ;;  %v781_v9 = vsel %vm456_vm7, %v772_v24, %v773_v49  ;;  %v784_v11 = vsel %vm777_vm15, %v9119_v27, %v783_v18 }
 0x169   : > { %v870_v33 = vpop.permute.xlu0 %869  ;;  %1529 = vmatpush2.bf16.msra.mxu0 %v7528_v26  ;;  %v886_v63 = vrot.slane %v872_v1, 4  ;;  %v901_v16 = vsel %vm894_vm13, %v882_v28, %v900_v43  ;;  %v782_v32 = vsel %vm777_vm15, %v9115_v23, %v781_v9 }
 0x16a   : > { %1530 = vmatprep.subr.bf16.mxu0 %v7527_v21  ;;  %v885_v37 = vrot.slane %v870_v33, 4  ;;  %v7521_v13 = vcombine.high %v899_v47, %v901_v16  ;;  %v7520_v59 = vcombine.low %v899_v47, %v901_v16  ;;  %v7556_v47 = vld [vmem:[%s11647_s5 + $0x4] sm:$0x3] }
 0x16b   : > { %v1883_v24 = vrot.slane %v7556_v47, %v8783_v5 }
 0x16c   : > { %v876_v42 = vpop.permute.xlu1 %875  ;;  %v893_v10 = vsel %vm456_vm7, %v885_v37, %v886_v63 }
 0x16d   : > { %v874_v48 = vpop.permute.xlu0 %873  ;;  %1531 = vmatpush2.bf16.msra.mxu0 %v7526_v39  ;;  %v888_v44 = vrot.slane %v876_v42, 4  ;;  %v895_v22 = vsel %vm894_vm13, %v870_v33, %v893_v10  ;;  %v7517_v33 = vcombine.high %v782_v32, %v784_v11  ;;  %v7516_v39 = vcombine.low %v782_v32, %v784_v11 }
 0x16e   : > { %v887_v3 = vrot.slane %v874_v48, 4  ;;  %1532 = vmatprep.subr.bf16.mxu0 %v7525_v56  ;;  %v1887_v10 = vrot.slane %v7556_v47, %v8781_v4 }
 0x170   : > { %v1198_v57 = vpop.permute.xlu1 %1197  ;;  %v896_v7 = vsel %vm456_vm7, %v887_v3, %v888_v44  ;;  %v8504_v44 = vld [vmem:[%s11643_s1] ss:$12 sps:$4 sm:$0xff]  }
 0x171   : > { %v1196_v54 = vpop.permute.xlu0 %1195  ;;  %1533 = vmatpush2.bf16.msra.mxu0 %v7524_v62  ;;  %v1208_v52 = vrot.slane %v1198_v57, 4  ;;  %v897_v61 = vsel %vm894_vm13, %v874_v48, %v896_v7  ;;  %v8507_v62 = vld [vmem:[%s11643_s1 + $0x1c] ss:$12 sps:$4 sm:$0xff]  }
 0x172   : > { %v1207_v55 = vrot.slane %v1196_v54, 4  ;;  %1534 = vmatprep.subr.bf16.mxu0 %v7523_v8  ;;  %v7519_v6 = vcombine.high %v895_v22, %v897_v61  ;;  %v7518_v1 = vcombine.low %v895_v22, %v897_v61  ;;  %v8510_v7 = vld [vmem:[%s11643_s1 + $0x8] ss:$12 sps:$4 sm:$0xff]  }
 0x174   : > { %v1202_v2 = vpop.permute.xlu1 %1201  ;;  %v1216_v53 = vsel %vm456_vm7, %v1207_v55, %v1208_v52  ;;  %v8511_v52 = vld [vmem:[%s11643_s1 + $0x20] ss:$12 sps:$4 sm:$0xff]   ;;  %v7565_v55 = vld [vmem:[%s11647_s5 + $0x6] sm:$0x3] }
 0x175   : > { %v1200_v14 = vpop.permute.xlu0 %1199  ;;  %1535 = vmatpush2.bf16.msra.mxu0 %v7522_v20  ;;  %v1210_v17 = vrot.slane %v1202_v2, 4  ;;  %v1217_v58 = vsel %vm1212_vm14, %v1196_v54, %v1216_v53  ;;  %v1997_v20 = vrot.slane %v7565_v55, %v8783_v5  ;;  %v2001_v49 = vrot.slane %v7565_v55, %v8781_v4 }
 0x176   : > { %v1209_v50 = vrot.slane %v1200_v14, 4  ;;  %1536 = vmatprep.subr.bf16.mxu0 %v7521_v13  ;;  %v7591_v13 = vld [vmem:[%s11647_s5 + $0xc] sm:$0x3] }
 0x177   : > { %2002 = vrot.lane.b32.xlu1 %v1997_v20, %s8714_s29  ;;  %2004 = vrot.lane.b32.xlu0 %v2001_v49, %s8714_s29  ;;  %v2309_v61 = vrot.slane %v7591_v13, %v8783_v5  ;;  %v2313_v2 = vrot.slane %v7591_v13, %v8781_v4 }
 0x178   : > { %v1218_v28 = vsel %vm456_vm7, %v1209_v50, %v1210_v17  ;;  %v755_v12 = vpop.permute.xlu1 %754 }
 0x179   : > { %v753_v15 = vpop.permute.xlu0 %752  ;;  %1537 = vmatpush2.bf16.msra.mxu0 %v7520_v59  ;;  %v1219_v26 = vsel %vm1212_vm14, %v1200_v14, %v1218_v28  ;;  %v769_v25 = vrot.slane %v755_v12, 4 }
 0x17a   : > { %v768_v30 = vrot.slane %v753_v15, 4  ;;  %1538 = vmatprep.subr.bf16.mxu0 %v7519_v6  ;;  %v7533_v31 = vcombine.high %v1217_v58, %v1219_v26  ;;  %v7532_v21 = vcombine.low %v1217_v58, %v1219_v26 }
 0x17b   : > { %1888 = vrot.lane.b32.xlu1 %v1883_v24, %s8716_s11  ;;  %1890 = vrot.lane.b32.xlu0 %v1887_v10, %s8716_s11 }
 0x17c   : > { %1577 = vmatprep.subr.bf16.mxu1 %v7533_v31  ;;  %v759_v34 = vpop.permute.xlu1 %758  ;;  %v776_v36 = vsel %vm456_vm7, %v768_v30, %v769_v25 }
 0x17d   : > { %1578 = vmatpush1.bf16.msra.mxu1 %v7532_v21  ;;  %v757_v27 = vpop.permute.xlu0 %756  ;;  %1539 = vmatpush2.bf16.msra.mxu0 %v7518_v1  ;;  %v771_v35 = vrot.slane %v759_v34, 4  ;;  %v778_v51 = vsel %vm777_vm15, %v753_v15, %v776_v36 }
 0x17e   : > { %v770_v19 = vrot.slane %v757_v27, 4  ;;  %1540 = vmatprep.subr.bf16.mxu0 %v7517_v33 }
 0x17f   : > { %2314 = vrot.lane.b32.xlu1 %v2309_v61, %s8717_s14  ;;  %2316 = vrot.lane.b32.xlu0 %v2313_v2, %s8717_s14 }
 0x180   : > { %v779_v40 = vsel %vm456_vm7, %v770_v19, %v771_v35  ;;  %v1190_v23 = vpop.permute.xlu1 %1189 }
 0x181   : > { %v780_v41 = vsel %vm777_vm15, %v757_v27, %v779_v40  ;;  %v1188_v56 = vpop.permute.xlu0 %1187  ;;  %1541 = vmatpush2.bf16.msra.mxu0 %v7516_v39  ;;  %v1204_v38 = vrot.slane %v1190_v23, 4 }
 0x182   : > { %v1203_v42 = vrot.slane %v1188_v56, 4  ;;  %v7515_v48 = vcombine.high %v778_v51, %v780_v41  ;;  %v7514_v43 = vcombine.low %v778_v51, %v780_v41 }
 0x184   : > { %1542 = vmatprep.subr.bf16.mxu0 %v7515_v48  ;;  %v1194_v3 = vpop.permute.xlu1 %1193  ;;  %v1211_v0 = vsel %vm456_vm7, %v1203_v42, %v1204_v38 }
 0x185   : > { %v1192_v29 = vpop.permute.xlu0 %1191  ;;  %1543 = vmatpush2.bf16.msra.mxu0 %v7514_v43  ;;  %v1206_v63 = vrot.slane %v1194_v3, 4  ;;  %v1213_v60 = vsel %vm1212_vm14, %v1188_v56, %v1211_v0 }
 0x186   : > { %v1205_v37 = vrot.slane %v1192_v29, 4 }
 0x188   : > { %v1214_v8 = vsel %vm456_vm7, %v1205_v37, %v1206_v63  ;;  %1545 = vmatmul.mubr.bf16.vlgmr.msra.gmra.mxu0 %v8504_v44 }
 0x189   : > { %v1215_v16 = vsel %vm1212_vm14, %v1192_v29, %v1214_v8  ;;  %1554 = vmatprep.mubr.bf16.mxu0 %v8507_v62 }
 0x18a   : > { %v7531_v57 = vcombine.high %v1213_v60, %v1215_v16  ;;  %v7530_v54 = vcombine.low %v1213_v60, %v1215_v16 }
 0x18c   : > { %1579 = vmatprep.subr.bf16.mxu1 %v7531_v57 }
 0x18d   : > { %1580 = vmatpush1.bf16.msra.mxu1 %v7530_v54 }
 0x190   : > { %1555 = vmatmul.mubr.bf16.gmra.mxu0 %v8509_v45  ;;  %7534 = vmatmul.mubr.msk.bf16.vlgmr.msra.gmra.mxu1 %vm937_vm5, %v8510_v7 }
 0x191   : > { %1607 = vmatprep.mubr.bf16.mxu1 %v8728_v46  ;;  %2975 = vmatprep.mubr.bf16.mxu0 %v8728_v46  ;;  %v1294_v14 = vpop.permute.xlu1 %1293 }
 0x192   : > { %v1289_v17 = vpop.permute.xlu0 %1288 }
 0x195   : > { %v1279_v53 = vpop.permute.xlu1 %1278 }
 0x196   : > { %v1284_v9 = vpop.permute.xlu0 %1283 }
 0x198   : > { %7535 = vmatmul.mubr.msk.bf16.gmra.mxu1 %vm937_vm5, %v8511_v52 }
 0x248   : > { %v1546_v18 = vpop.f32.mrf.mxu0 }
 0x249   : > { %v1547_v6 = vadd.f32 %v1546_v18, %v1279_v53 }
 0x24a   : > { %v1548_v50 = vpop.f32.mrf.mxu0 }
 0x24b   : > { %v1549_v15 = vadd.f32 %v1548_v50, %v1279_v53 }
 0x24c   : > { %v1550_v22 = vpop.f32.mrf.mxu0 }
 0x24d   : > { %v1551_v31 = vadd.f32 %v1550_v22, %v1284_v9 }
 0x24e   : > { %v1552_v59 = vpop.f32.mrf.mxu0 }
 0x24f   : > { %v1553_v21 = vadd.f32 %v1552_v59, %v1284_v9 }
 0x250   : > { %v1556_v28 = vpop.f32.mrf.mxu0  ;;  %v1599_v11 = vpop.f32.mrf.mxu1 }
 0x251   : > { %v9285_v12 = vadd.f32 %v1599_v11, %v1547_v6  ;;  %v1557_v1 = vadd.f32 %v1556_v28, %v1289_v17 }
 0x252   : > { %v1558_v58 = vpop.f32.mrf.mxu0  ;;  %v1601_v26 = vpop.f32.mrf.mxu1 }
 0x253   : > { %v7536_v25 = vmul.f32 -1.442695, %v9285_v12  ;;  %v9288_v30 = vadd.f32 %v1601_v26, %v1549_v15  ;;  %v1559_v35 = vadd.f32 %v1558_v58, %v1289_v17  ;;  %v7582_v15 = vld [vmem:[%s11647_s5 + $0xa] sm:$0x3] }
 0x254   : > { %v1603_v32 = vpop.f32.mrf.mxu1  ;;  %v1560_v27 = vpop.f32.mrf.mxu0 }
 0x255   : > { %8545 = vpow2.f32 %v7536_v25  ;;  %v7537_v33 = vmul.f32 -1.442695, %v9288_v30  ;;  %v1604_v34 = vadd.f32 %v1603_v32, %v1551_v31  ;;  %v1561_v38 = vadd.f32 %v1560_v27, %v1294_v14  ;;  %v7608_v31 = vld [vmem:[%s11647_s5 + $0x10] sm:$0x3] }
 0x256   : > { %v1605_v36 = vpop.f32.mrf.mxu1  ;;  %v1562_v23 = vpop.f32.mrf.mxu0  ;;  %v2507_v32 = vrot.slane %v7608_v31, %v8783_v5 }
 0x257   : > { %8547 = vpow2.f32 %v7537_v33  ;;  %v7538_v19 = vmul.f32 -1.442695, %v1604_v34  ;;  %v1606_v39 = vadd.f32 %v1605_v36, %v1553_v21  ;;  %v1563_v44 = vadd.f32 %v1562_v23, %v1294_v14  ;;  %v9315_v33 = vpop.permute.xlu1 %2002 }
 0x258   : > { %v1609_v40 = vpop.f32.mrf.mxu1  ;;  %v2199_v21 = vrot.slane %v7582_v15, %v8781_v4 }
 0x259   : > { %8549 = vpow2.f32 %v7538_v19  ;;  %v7539_v51 = vmul.f32 -1.442695, %v1606_v39  ;;  %v1610_v41 = vadd.f32 %v1609_v40, %v1557_v1  ;;  %v2511_v1 = vrot.slane %v7608_v31, %v8781_v4  ;;  %v9331_v40 = vld [vmem:[%s11647_s5] sm:$0x3] }
 0x25a   : > { %v1611_v56 = vpop.f32.mrf.mxu1  ;;  %v1743_v23 = vrot.slane %v9331_v40, %v8781_v4 }
 0x25b   : > { %8551 = vpow2.f32 %v7539_v51  ;;  %v7540_v42 = vmul.f32 -1.442695, %v1610_v41  ;;  %v1612_v48 = vadd.f32 %v1611_v56, %v1559_v35  ;;  %v9319_v27 = vpop.permute.xlu1 %1888 }
 0x25c   : > { %v1613_v43 = vpop.f32.mrf.mxu1 }
 0x25d   : > { %8553 = vpow2.f32 %v7540_v42  ;;  %v7541_v3 = vmul.f32 -1.442695, %v1612_v48  ;;  %v1614_v29 = vadd.f32 %v1613_v43, %v1561_v38 }
 0x25e   : > { %v1615_v62 = vpop.f32.mrf.mxu1 }
 0x25f   : > { %8555 = vpow2.f32 %v7541_v3  ;;  %v7542_v0 = vmul.f32 -1.442695, %v1614_v29  ;;  %v1616_v63 = vadd.f32 %v1615_v62, %v1563_v44  ;;  %v9323_v35 = vpop.permute.xlu1 %2314 }
 0x261   : > { %8557 = vpow2.f32 %v7542_v0  ;;  %v7543_v37 = vmul.f32 -1.442695, %v1616_v63 }
 0x262   : > { %v8546_v8 = vpop.eup %8545 }
 0x263   : > { %v1642_v60 = vadd.f32 1.0, %v8546_v8  ;;  %8559 = vpow2.f32 %v7543_v37 }
 0x264   : > { %v8548_v16 = vpop.eup %8547 }
 0x265   : > { %8561 = vrcp.f32 %v1642_v60  ;;  %v1643_v57 = vadd.f32 1.0, %v8548_v16 }
 0x266   : > { %v8550_v54 = vpop.eup %8549 }
 0x267   : > { %8563 = vrcp.f32 %v1643_v57  ;;  %v1644_v45 = vadd.f32 1.0, %v8550_v54 }
 0x268   : > { %v8552_v7 = vpop.eup %8551 }
 0x269   : > { %8565 = vrcp.f32 %v1644_v45  ;;  %v1645_v52 = vadd.f32 1.0, %v8552_v7 }
 0x26a   : > { %v8554_v55 = vpop.eup %8553 }
 0x26b   : > { %8567 = vrcp.f32 %v1645_v52  ;;  %v1646_v47 = vadd.f32 1.0, %v8554_v55 }
 0x26c   : > { %v8556_v20 = vpop.eup %8555 }
 0x26d   : > { %8569 = vrcp.f32 %v1646_v47  ;;  %v1647_v49 = vadd.f32 1.0, %v8556_v20 }
 0x26e   : > { %v8558_v24 = vpop.eup %8557 }
 0x26f   : > { %8571 = vrcp.f32 %v1647_v49  ;;  %v1648_v10 = vadd.f32 1.0, %v8558_v24 }
 0x270   : > { %v8560_v13 = vpop.eup %8559 }
 0x271   : > { %8573 = vrcp.f32 %v1648_v10  ;;  %v1649_v61 = vadd.f32 1.0, %v8560_v13 }
 0x272   : > { %v8562_v2 = vpop.eup %8561 }
 0x273   : > { %v1666_v14 = vmul.f32 %v8562_v2, %v9285_v12  ;;  %8575 = vrcp.f32 %v1649_v61 }
 0x274   : > { %v8564_v18 = vpop.eup %8563 }
 0x275   : > { %v1667_v17 = vmul.f32 %v8564_v18, %v9288_v30  ;;  %1682 = vrot.lane.b32.xlu1 %v1666_v14, %s8715_s8  ;;  %v2195_v30 = vrot.slane %v7582_v15, %v8783_v5 }
 0x276   : > { %v8566_v50 = vpop.eup %8565 }
 0x277   : > { %v1668_v53 = vmul.f32 %v8566_v50, %v1604_v34  ;;  %1684 = vrot.lane.b32.xlu0 %v1667_v17, %s8715_s8  ;;  %v9317_v34 = vpop.permute.xlu0 %2004 }
 0x278   : > { %v8568_v22 = vpop.eup %8567  ;;  %v9376_v16 = vsel %vm618_vm3, %v9315_v33, %v9317_v34 }
 0x279   : > { %v1669_v59 = vmul.f32 %v8568_v22, %v1606_v39  ;;  %1686 = vrot.lane.b32.xlu1 %v1668_v53, %s8715_s8 }
 0x27a   : > { %v8570_v9 = vpop.eup %8569 }
 0x27b   : > { %v1670_v6 = vmul.f32 %v8570_v9, %v1610_v41  ;;  %1688 = vrot.lane.b32.xlu0 %v1669_v59, %s8715_s8  ;;  %v9321_v36 = vpop.permute.xlu0 %1890 }
 0x27c   : > { %v8572_v28 = vpop.eup %8571  ;;  %v9392_v55 = vsel %vm501_vm4, %v9319_v27, %v9321_v36 }
 0x27d   : > { %v1671_v11 = vmul.f32 %v8572_v28, %v1612_v48  ;;  %1690 = vrot.lane.b32.xlu1 %v1670_v6, %s8715_s8 }
 0x27e   : > { %v8574_v12 = vpop.eup %8573 }
 0x27f   : > { %v1672_v58 = vmul.f32 %v8574_v12, %v1614_v29  ;;  %1692 = vrot.lane.b32.xlu0 %v1671_v11, %s8715_s8  ;;  %v9325_v19 = vpop.permute.xlu0 %2316 }
 0x280   : > { %v8576_v26 = vpop.eup %8575 }
 0x281   : > { %v1673_v25 = vmul.f32 %v8576_v26, %v1616_v63  ;;  %1694 = vrot.lane.b32.xlu1 %v1672_v58, %s8715_s8 }
 0x283   : > { %1696 = vrot.lane.b32.xlu0 %v1673_v25, %s8715_s8 }
 0x285   : > { %2200 = vrot.lane.b32.xlu1 %v2195_v30, %s8718_s17 }
 0x287   : > { %2202 = vrot.lane.b32.xlu0 %v2199_v21, %s8718_s17 }
 0x289   : > { %2512 = vrot.lane.b32.xlu1 %v2507_v32, %s8719_s18 }
 0x28b   : > { %2514 = vrot.lane.b32.xlu0 %v2511_v1, %s8719_s18 }
 0x2e7   : > { %v1683_v39 = vpop.permute.xlu1 %1682 }
 0x2e8   : > { %1714 = vst.msk [vmem:[#allocation2] sm:$0xff] %vm319_vm2, %v1683_v39 }
 0x2e9   : > { %v1685_v51 = vpop.permute.xlu0 %1684 }
 0x2ea   : > { %1716 = vst.msk [vmem:[#allocation2 + $0x10] sm:$0xff] %vm302_vm1, %v1685_v51  ;;  %v9337_v56 = vsel %vm302_vm1, %v1683_v39, %v1685_v51 }
 0x2eb   : > { %v1687_v41 = vpop.permute.xlu1 %1686  ;;  %v9347_v44 = vmul.f32 %v1743_v23, %v9337_v56  ;;  %v2011_v45 = vmul.f32 %v9376_v16, %v9337_v56  ;;  %v1897_v49 = vmul.f32 %v9392_v55, %v9337_v56 }
 0x2ec   : > { %1717 = vst.msk [vmem:[#allocation2 + $0x18] sm:$0xff] %vm319_vm2, %v1687_v41 }
 0x2ed   : > { %v1689_v38 = vpop.permute.xlu0 %1688 }
 0x2ee   : > { %v9341_v42 = vsel %vm302_vm1, %v1687_v41, %v1689_v38  ;;  %1719 = vst.msk [vmem:[#allocation2 + $0x28] sm:$0xff] %vm302_vm1, %v1689_v38 }
 0x2ef   : > { %v1691_v48 = vpop.permute.xlu1 %1690  ;;  %v9344_v43 = vld [vmem:[#allocation2] sm:$0xff]  ;;  %v9350_v3 = vmul.f32 %v1743_v23, %v9341_v42  ;;  %v2014_v50 = vmul.f32 %v9376_v16, %v9341_v42  ;;  %v1900_v11 = vmul.f32 %v9392_v55, %v9341_v42 }
 0x2f0   : > { %1720 = vst.msk [vmem:[#allocation2 + $0x30] sm:$0xff] %vm319_vm2, %v1691_v48  ;;  %v9355_v29 = vpack.c.bf16 %v9337_v56, %v9344_v43  ;;  %v2010_v60 = vmul.f32 %v9315_v33, %v9344_v43  ;;  %v1896_v52 = vmul.f32 %v9319_v27, %v9344_v43 }
 0x2f1   : > { %v1693_v62 = vpop.permute.xlu0 %1692  ;;  %v9357_v0 = vld [vmem:[#allocation2 + $0x10] sm:$0xff]  ;;  %v8443_v63 = vpack.c.bf16 %v9350_v3, %v9347_v44 }
 0x2f2   : > { %1722 = vst.msk [vmem:[#allocation2 + $0x40] sm:$0xff] %vm302_vm1, %v1693_v62  ;;  %v9364_v37 = vpack.c.bf16 %v9357_v0, %v9357_v0  ;;  %1826 = vrot.lane.b32.xlu1 %v9355_v29, %s8720_s19  ;;  %v2012_v54 = vmul.f32 %v9317_v34, %v9357_v0  ;;  %v8186_v7 = vpack.c.bf16 %v2011_v45, %v2010_v60 }
 0x2f3   : > { %v1695_v8 = vpop.permute.xlu1 %1694  ;;  %v1898_v20 = vmul.f32 %v9321_v36, %v9357_v0  ;;  %v8178_v24 = vpack.c.bf16 %v1897_v49, %v1896_v52  ;;  %v9400_v10 = vld [vmem:[#allocation2 + $0x18] sm:$0xff]  ;;  %v9427_v53 = vsel %vm302_vm1, %v1691_v48, %v1693_v62 }
 0x2f4   : > { %1723 = vst.msk [vmem:[#allocation2 + $0x48] sm:$0xff] %vm319_vm2, %v1695_v8  ;;  %1828 = vrot.lane.b32.xlu0 %v9364_v37, %s8720_s19  ;;  %v8187_v47 = vpack.c.bf16 %v2012_v54, %v2012_v54  ;;  %v9408_v2 = vpack.c.bf16 %v9341_v42, %v9400_v10  ;;  %v2013_v18 = vmul.f32 %v9315_v33, %v9400_v10 }
 0x2f5   : > { %v1697_v57 = vpop.permute.xlu0 %1696  ;;  %v8179_v13 = vpack.c.bf16 %v1898_v20, %v1898_v20  ;;  %v9403_v61 = vld [vmem:[#allocation2 + $0x28] sm:$0xff]  ;;  %v1899_v9 = vmul.f32 %v9319_v27, %v9400_v10  ;;  %v9442_v12 = vmul.f32 %v1743_v23, %v9427_v53  ;;  %v2017_v51 = vmul.f32 %v9376_v16, %v9427_v53 }
 0x2f6   : > { %1725 = vst.msk [vmem:[#allocation2 + $0x58] sm:$0xff] %vm302_vm1, %v1697_v57  ;;  %2450 = vrot.lane.b32.xlu1 %v9355_v29, %s8721_s20  ;;  %v9412_v14 = vpack.c.bf16 %v9403_v61, %v9403_v61  ;;  %v2015_v17 = vmul.f32 %v9317_v34, %v9403_v61  ;;  %v9430_v22 = vsel %vm302_vm1, %v1695_v8, %v1697_v57 }
 0x2f7   : > { %v8188_v59 = vpack.c.bf16 %v2014_v50, %v2013_v18  ;;  %v1901_v28 = vmul.f32 %v9321_v36, %v9403_v61  ;;  %v9445_v15 = vmul.f32 %v1743_v23, %v9430_v22  ;;  %v8180_v58 = vpack.c.bf16 %v1900_v11, %v1899_v9  ;;  %v9448_v26 = vld [vmem:[#allocation2 + $0x30] sm:$0xff] }
 0x2f8   : > { %2452 = vrot.lane.b32.xlu0 %v9364_v37, %s8721_s20  ;;  %v8189_v6 = vpack.c.bf16 %v2015_v17, %v2015_v17  ;;  %v9458_v21 = vpack.c.bf16 %v9427_v53, %v9448_v26  ;;  %v2016_v1 = vmul.f32 %v9315_v33, %v9448_v26  ;;  %v1902_v23 = vmul.f32 %v9319_v27, %v9448_v26 }
 0x2f9   : > { %v8445_v25 = vpack.c.bf16 %v9445_v15, %v9442_v12  ;;  %v8181_v30 = vpack.c.bf16 %v1901_v28, %v1901_v28  ;;  %v9453_v31 = vld [vmem:[#allocation2 + $0x40] sm:$0xff]  ;;  %v1903_v62 = vmul.f32 %v9392_v55, %v9427_v53  ;;  %v2328_v60 = vmul.f32 %v9323_v35, %v9448_v26  ;;  %v2203_v11 = vpop.permute.xlu0 %2202 }
 0x2fa   : > { %2054 = vrot.lane.b32.xlu1 %v8186_v7, %s8723_s26  ;;  %v9462_v32 = vpack.c.bf16 %v9453_v31, %v9453_v31  ;;  %v2018_v39 = vmul.f32 %v9317_v34, %v9453_v31  ;;  %v8190_v41 = vpack.c.bf16 %v2017_v51, %v2016_v1  ;;  %v1904_v48 = vmul.f32 %v9321_v36, %v9453_v31 }
 0x2fb   : > { %v8182_v8 = vpack.c.bf16 %v1903_v62, %v1902_v23  ;;  %v9491_v57 = vsel %vm937_vm5, %v9323_v35, %v9325_v19  ;;  %v2330_v45 = vmul.f32 %v9325_v19, %v9453_v31  ;;  %v2020_v50 = vmul.f32 %v9376_v16, %v9430_v22 }
 0x2fc   : > { %2056 = vrot.lane.b32.xlu0 %v8187_v47, %s8723_s26  ;;  %v8191_v38 = vpack.c.bf16 %v2018_v39, %v2018_v39  ;;  %v8183_v54 = vpack.c.bf16 %v1904_v48, %v1904_v48  ;;  %v2329_v7 = vmul.f32 %v9491_v57, %v9427_v53  ;;  %v9499_v47 = vld [vmem:[#allocation2 + $0x48] sm:$0xff]  ;;  %v2322_v9 = vmul.f32 %v9323_v35, %v9344_v43 }
 0x2fd   : > { %v8215_v20 = vpack.c.bf16 %v2330_v45, %v2330_v45  ;;  %v9502_v49 = vld [vmem:[#allocation2 + $0x58] sm:$0xff]  ;;  %v2019_v18 = vmul.f32 %v9315_v33, %v9499_v47  ;;  %v2323_v28 = vmul.f32 %v9491_v57, %v9337_v56  ;;  %v1905_v16 = vmul.f32 %v9319_v27, %v9499_v47 }
 0x2fe   : > { %1940 = vrot.lane.b32.xlu1 %v8178_v24, %s8724_s27  ;;  %v8214_v52 = vpack.c.bf16 %v2329_v7, %v2328_v60  ;;  %v9507_v24 = vpack.c.bf16 %v9430_v22, %v9499_v47  ;;  %v2021_v17 = vmul.f32 %v9317_v34, %v9502_v49  ;;  %v1907_v33 = vmul.f32 %v9321_v36, %v9502_v49  ;;  %v2201_v36 = vpop.permute.xlu1 %2200 }
 0x2ff   : > { %v8210_v34 = vpack.c.bf16 %v2323_v28, %v2322_v9  ;;  %v1906_v1 = vmul.f32 %v9392_v55, %v9430_v22  ;;  %v2325_v51 = vmul.f32 %v9323_v35, %v9400_v10  ;;  %v2324_v23 = vmul.f32 %v9325_v19, %v9357_v0 }
 0x300   : > { %1942 = vrot.lane.b32.xlu0 %v8179_v13, %s8724_s27  ;;  %v9511_v13 = vpack.c.bf16 %v9502_v49, %v9502_v49  ;;  %v2214_v60 = vmul.f32 %v2201_v36, %v9448_v26  ;;  %v2210_v28 = vmul.f32 %v2203_v11, %v9357_v0 }
 0x301   : > { %v8184_v39 = vpack.c.bf16 %v1906_v1, %v1905_v16  ;;  %v8211_v62 = vpack.c.bf16 %v2324_v23, %v2324_v23  ;;  %v2331_v23 = vmul.f32 %v9323_v35, %v9499_v47 }
 0x302   : > { %1830 = vrot.lane.b32.xlu1 %v9408_v2, %s8720_s19 }
 0x304   : > { %1832 = vrot.lane.b32.xlu0 %v9412_v14, %s8720_s19 }
 0x306   : > { %2454 = vrot.lane.b32.xlu1 %v9408_v2, %s8721_s20 }
 0x308   : > { %2456 = vrot.lane.b32.xlu0 %v9412_v14, %s8721_s20 }
 0x30a   : > { %2058 = vrot.lane.b32.xlu1 %v8188_v59, %s8723_s26  ;;  %v8192_v59 = vpack.c.bf16 %v2020_v50, %v2019_v18  ;;  %v2219_v50 = vmul.f32 %v2203_v11, %v9502_v49 }
 0x30c   : > { %2060 = vrot.lane.b32.xlu0 %v8189_v6, %s8723_s26  ;;  %v8193_v6 = vpack.c.bf16 %v2021_v17, %v2021_v17 }
 0x30e   : > { %1944 = vrot.lane.b32.xlu1 %v8180_v58, %s8724_s27  ;;  %v8185_v58 = vpack.c.bf16 %v1907_v33, %v1907_v33  ;;  %v8209_v33 = vpack.c.bf16 %v2219_v50, %v2219_v50  ;;  %v7626_v50 = vld [vmem:[%s11644_s2 + $0x28] sm:$0xff] }
 0x310   : > { %1946 = vrot.lane.b32.xlu0 %v8181_v30, %s8724_s27  ;;  %v2333_v30 = vmul.f32 %v9325_v19, %v9502_v49 }
 0x312   : > { %1834 = vrot.lane.b32.xlu1 %v9458_v21, %s8720_s19  ;;  %v8217_v27 = vpack.c.bf16 %v2333_v30, %v2333_v30  ;;  %v2213_v30 = vmul.f32 %v2203_v11, %v9403_v61 }
 0x314   : > { %1836 = vrot.lane.b32.xlu0 %v9462_v32, %s8720_s19 }
 0x316   : > { %2458 = vrot.lane.b32.xlu1 %v9458_v21, %s8721_s20 }
 0x318   : > { %2460 = vrot.lane.b32.xlu0 %v9462_v32, %s8721_s20 }
 0x31a   : > { %2062 = vrot.lane.b32.xlu1 %v8190_v41, %s8723_s26  ;;  %v2204_v41 = vsel %vm820_vm6, %v2201_v36, %v2203_v11 }
 0x31b   : > { %v2215_v48 = vmul.f32 %v2204_v41, %v9427_v53  ;;  %v2209_v45 = vmul.f32 %v2204_v41, %v9337_v56  ;;  %v2212_v17 = vmul.f32 %v2204_v41, %v9341_v42  ;;  %v2218_v35 = vmul.f32 %v2204_v41, %v9430_v22 }
 0x31c   : > { %2064 = vrot.lane.b32.xlu0 %v8191_v38, %s8723_s26  ;;  %v2326_v38 = vmul.f32 %v9491_v57, %v9341_v42 }
 0x31e   : > { %1948 = vrot.lane.b32.xlu1 %v8182_v8, %s8724_s27  ;;  %v8212_v55 = vpack.c.bf16 %v2326_v38, %v2325_v51  ;;  %v2327_v8 = vmul.f32 %v9325_v19, %v9403_v61 }
 0x320   : > { %1950 = vrot.lane.b32.xlu0 %v8183_v54, %s8724_s27  ;;  %v8206_v54 = vpack.c.bf16 %v2215_v48, %v2214_v60  ;;  %v8213_v7 = vpack.c.bf16 %v2327_v8, %v2327_v8 }
 0x322   : > { %2374 = vrot.lane.b32.xlu1 %v8214_v52, %s8725_s28  ;;  %v2216_v52 = vmul.f32 %v2203_v11, %v9453_v31  ;;  %v2217_v11 = vmul.f32 %v2201_v36, %v9499_v47 }
 0x324   : > { %2376 = vrot.lane.b32.xlu0 %v8215_v20, %s8725_s28  ;;  %v2208_v20 = vmul.f32 %v2201_v36, %v9344_v43  ;;  %v8207_v19 = vpack.c.bf16 %v2216_v52, %v2216_v52 }
 0x326   : > { %1838 = vrot.lane.b32.xlu1 %v9507_v24, %s8720_s19  ;;  %v8202_v18 = vpack.c.bf16 %v2209_v45, %v2208_v20 }
 0x328   : > { %1840 = vrot.lane.b32.xlu0 %v9511_v13, %s8720_s19 }
 0x32a   : > { %2462 = vrot.lane.b32.xlu1 %v9507_v24, %s8721_s20 }
 0x32c   : > { %2464 = vrot.lane.b32.xlu0 %v9511_v13, %s8721_s20 }
 0x32e   : > { %2066 = vrot.lane.b32.xlu1 %v8192_v59, %s8723_s26  ;;  %v2211_v59 = vmul.f32 %v2201_v36, %v9400_v10 }
 0x330   : > { %2068 = vrot.lane.b32.xlu0 %v8193_v6, %s8723_s26  ;;  %v8204_v9 = vpack.c.bf16 %v2212_v17, %v2211_v59  ;;  %v2515_v6 = vpop.permute.xlu0 %2514  ;;  %v7625_v17 = vld [vmem:[%s11644_s2 + $0x20] sm:$0xff] }
 0x331   : > { %v2522_v48 = vmul.f32 %v2515_v6, %v9357_v0  ;;  %v2525_v0 = vmul.f32 %v2515_v6, %v9403_v61  ;;  %v7628_v61 = vld [vmem:[%s11644_s2 + $0x38] sm:$0xff] }
 0x332   : > { %2366 = vrot.lane.b32.xlu1 %v8210_v34, %s8725_s28  ;;  %v2513_v34 = vpop.permute.xlu1 %2512 }
 0x333   : > { %v2516_v16 = vsel %vm255_vm0, %v2513_v34, %v2515_v6  ;;  %v2526_v51 = vmul.f32 %v2513_v34, %v9448_v26  ;;  %v8227_v60 = vpack.c.bf16 %v2522_v48, %v2522_v48  ;;  %v8229_v52 = vpack.c.bf16 %v2525_v0, %v2525_v0 }
 0x334   : > { %1954 = vrot.lane.b32.xlu0 %v8185_v58, %s8724_s27  ;;  %v8203_v58 = vpack.c.bf16 %v2210_v28, %v2210_v28  ;;  %v2527_v1 = vmul.f32 %v2516_v16, %v9427_v53  ;;  %v2530_v36 = vmul.f32 %v2516_v16, %v9430_v22 }
 0x336   : > { %1952 = vrot.lane.b32.xlu1 %v8184_v39, %s8724_s27  ;;  %v8205_v39 = vpack.c.bf16 %v2213_v30, %v2213_v30 }
 0x338   : > { %2380 = vrot.lane.b32.xlu0 %v8217_v27, %s8725_s28  ;;  %v8230_v27 = vpack.c.bf16 %v2527_v1, %v2526_v51 }
 0x33a   : > { %2370 = vrot.lane.b32.xlu1 %v8212_v55, %s8725_s28 }
 0x33c   : > { %2368 = vrot.lane.b32.xlu0 %v8211_v62, %s8725_s28 }
 0x33e   : > { %2260 = vrot.lane.b32.xlu1 %v8206_v54, %s8726_s30  ;;  %v2523_v54 = vmul.f32 %v2513_v34, %v9400_v10 }
 0x340   : > { %2372 = vrot.lane.b32.xlu0 %v8213_v7, %s8725_s28 }
 0x342   : > { %2252 = vrot.lane.b32.xlu1 %v8202_v18, %s8726_s30 }
 0x344   : > { %2262 = vrot.lane.b32.xlu0 %v8207_v19, %s8726_s30 }
 0x346   : > { %2256 = vrot.lane.b32.xlu1 %v8204_v9, %s8726_s30 }
 0x348   : > { %2266 = vrot.lane.b32.xlu0 %v8209_v33, %s8726_s30 }
 0x34a   : > { %2146 = vrot.lane.b32.xlu1 %v9458_v21, %s8722_s25  ;;  %v2332_v21 = vmul.f32 %v9491_v57, %v9430_v22  ;;  %v2531_v57 = vmul.f32 %v2515_v6, %v9502_v49  ;;  %v2524_v22 = vmul.f32 %v2516_v16, %v9341_v42  ;;  %v7627_v42 = vld [vmem:[%s11644_s2 + $0x30] sm:$0xff] }
 0x34c   : > { %2254 = vrot.lane.b32.xlu0 %v8203_v58, %s8726_s30  ;;  %v8216_v53 = vpack.c.bf16 %v2332_v21, %v2331_v23  ;;  %v8233_v55 = vpack.c.bf16 %v2531_v57, %v2531_v57 }
 0x34e   : > { %2150 = vrot.lane.b32.xlu1 %v9507_v24, %s8722_s25  ;;  %v2528_v24 = vmul.f32 %v2515_v6, %v9453_v31  ;;  %v2521_v31 = vmul.f32 %v2516_v16, %v9337_v56  ;;  %v2529_v56 = vmul.f32 %v2513_v34, %v9499_v47 }
 0x350   : > { %2258 = vrot.lane.b32.xlu0 %v8205_v39, %s8726_s30  ;;  %v8231_v38 = vpack.c.bf16 %v2528_v24, %v2528_v24  ;;  %v8232_v62 = vpack.c.bf16 %v2530_v36, %v2529_v56 }
 0x352   : > { %2572 = vrot.lane.b32.xlu1 %v8230_v27, %s8727_s7 }
 0x354   : > { %2148 = vrot.lane.b32.xlu0 %v9462_v32, %s8722_s25  ;;  %v8208_v32 = vpack.c.bf16 %v2218_v35, %v2217_v11 }
 0x356   : > { %2378 = vrot.lane.b32.xlu1 %v8216_v53, %s8725_s28 }
 0x358   : > { %2152 = vrot.lane.b32.xlu0 %v9511_v13, %s8722_s25  ;;  %v2520_v13 = vmul.f32 %v2513_v34, %v9344_v43 }
 0x35a   : > { %2138 = vrot.lane.b32.xlu1 %v9355_v29, %s8722_s25  ;;  %v8226_v49 = vpack.c.bf16 %v2521_v31, %v2520_v13 }
 0x35c   : > { %2574 = vrot.lane.b32.xlu0 %v8231_v38, %s8727_s7 }
 0x35e   : > { %2264 = vrot.lane.b32.xlu1 %v8208_v32, %s8726_s30 }
 0x360   : > { %2578 = vrot.lane.b32.xlu0 %v8233_v55, %s8727_s7 }
 0x362   : > { %2142 = vrot.lane.b32.xlu1 %v9408_v2, %s8722_s25  ;;  %v8514_v2 = vld [vmem:[%s11643_s1 + $0x34] ss:$12 sps:$4 sm:$0xff]  }
 0x363   : > { %2922 = vmatprep.mubr.bf16.mxu1 %v8514_v2 }
 0x364   : > { %2140 = vrot.lane.b32.xlu0 %v9364_v37, %s8722_s25  ;;  %v9606_v29 = vpop.permute.xlu1 %1826 }
 0x366   : > { %v9609_v41 = vpop.permute.xlu0 %1828  ;;  %2564 = vrot.lane.b32.xlu1 %v8226_v49, %s8727_s7 }
 0x368   : > { %2144 = vrot.lane.b32.xlu0 %v9412_v14, %s8722_s25  ;;  %v9619_v37 = vpop.permute.xlu1 %2450  ;;  %v8228_v14 = vpack.c.bf16 %v2524_v22, %v2523_v54 }
 0x369   : > { %v2466_v12 = vrot.slane %v9619_v37, 4 }
 0x36a   : > { %v9622_v8 = vpop.permute.xlu0 %2452  ;;  %2576 = vrot.lane.b32.xlu1 %v8232_v62, %s8727_s7 }
 0x36c   : > { %2566 = vrot.lane.b32.xlu0 %v8227_v60, %s8727_s7  ;;  %v9628_v45 = vpop.permute.xlu1 %2054 }
 0x36d   : > { %v2070_v48 = vrot.slane %v9628_v45, 4 }
 0x36e   : > { %v2057_v7 = vpop.permute.xlu0 %2056  ;;  %2568 = vrot.lane.b32.xlu1 %v8228_v14, %s8727_s7 }
 0x36f   : > { %v2071_v13 = vrot.slane %v2057_v7, 4 }
 0x370   : > { %2570 = vrot.lane.b32.xlu0 %v8229_v52, %s8727_s7  ;;  %v9635_v20 = vpop.permute.xlu1 %1940 }
 0x371   : > { %v2078_v54 = vsel %vm456_vm7, %v2070_v48, %v2071_v13 }
 0x372   : > { %v9640_v18 = vpop.permute.xlu0 %1942  ;;  %2666 = vperm.xlu1 %8503, %v7627_v42  }
 0x374   : > { %2671 = vperm.xlu0 %8502, %v7628_v61   ;;  %v9645_v19 = vpop.permute.xlu1 %1830 }
 0x376   : > { %v9650_v59 = vpop.permute.xlu0 %1832  ;;  %2656 = vperm.xlu1 %8503, %v7625_v17  }
 0x378   : > { %2661 = vperm.xlu0 %8502, %v7626_v50   ;;  %v9652_v9 = vpop.permute.xlu1 %2454 }
 0x37a   : > { %v9654_v6 = vpop.permute.xlu0 %2456 }
 0x37c   : > { %v2059_v33 = vpop.permute.xlu1 %2058 }
 0x37d   : > { %v2072_v49 = vrot.slane %v2059_v33, 4 }
 0x37e   : > { %v2061_v28 = vpop.permute.xlu0 %2060 }
 0x37f   : > { %v2073_v32 = vrot.slane %v2061_v28, 4 }
 0x380   : > { %v9656_v34 = vpop.permute.xlu1 %1944 }
 0x381   : > { %v2080_v2 = vsel %vm456_vm7, %v2072_v49, %v2073_v32  ;;  %v1957_v49 = vrot.slane %v9640_v18, 4 }
 0x382   : > { %v1947_v16 = vpop.permute.xlu0 %1946  ;;  %v2081_v7 = vsel %vm692_vm8, %v2059_v33, %v2080_v2 }
 0x383   : > { %v1959_v50 = vrot.slane %v1947_v16, 4  ;;  %v1956_v16 = vrot.slane %v9635_v20, 4 }
 0x384   : > { %v9658_v58 = vpop.permute.xlu1 %1834 }
 0x386   : > { %v9660_v30 = vpop.permute.xlu0 %1836 }
 0x388   : > { %v9662_v1 = vpop.permute.xlu1 %2458 }
 0x38a   : > { %v9664_v39 = vpop.permute.xlu0 %2460 }
 0x38c   : > { %v2063_v51 = vpop.permute.xlu1 %2062 }
 0x38d   : > { %v2074_v36 = vrot.slane %v2063_v51, 4 }
 0x38e   : > { %v2065_v27 = vpop.permute.xlu0 %2064 }
 0x38f   : > { %v2075_v55 = vrot.slane %v2065_v27, 4 }
 0x390   : > { %v1949_v23 = vpop.permute.xlu1 %1948 }
 0x391   : > { %v2082_v62 = vsel %vm456_vm7, %v2074_v36, %v2075_v55  ;;  %v1960_v28 = vrot.slane %v1949_v23, 4  ;;  %v2079_v55 = vsel %vm692_vm8, %v9628_v45, %v2078_v54  ;;  %v1964_v54 = vsel %vm456_vm7, %v1956_v16, %v1957_v49 }
 0x392   : > { %v1951_v21 = vpop.permute.xlu0 %1950  ;;  %v2083_v42 = vsel %vm692_vm8, %v2063_v51, %v2082_v62  ;;  %v7648_v48 = vcombine.high %v2079_v55, %v2081_v7  ;;  %v7647_v18 = vcombine.low %v2079_v55, %v2081_v7  ;;  %v1845_v7 = vrot.slane %v9650_v59, 4 }
 0x393   : > { %v1961_v14 = vrot.slane %v1951_v21, 4  ;;  %v1958_v21 = vrot.slane %v9656_v34, 4 }
 0x394   : > { %v9666_v53 = vpop.permute.xlu1 %2374 }
 0x395   : > { %v1968_v36 = vsel %vm456_vm7, %v1960_v28, %v1961_v14  ;;  %v1847_v14 = vrot.slane %v9660_v30, 4  ;;  %v2386_v44 = vrot.slane %v9666_v53, 4 }
 0x396   : > { %v9668_v24 = vpop.permute.xlu0 %2376  ;;  %v1969_v62 = vsel %vm575_vm9, %v1949_v23, %v1968_v36  ;;  %v1846_v23 = vrot.slane %v9658_v58, 4 }
 0x398   : > { %v9670_v11 = vpop.permute.xlu1 %1838 }
 0x39a   : > { %v1841_v35 = vpop.permute.xlu0 %1840 }
 0x39b   : > { %v1849_v2 = vrot.slane %v1841_v35, 4 }
 0x39c   : > { %v9672_v38 = vpop.permute.xlu1 %2462 }
 0x39e   : > { %v9674_v57 = vpop.permute.xlu0 %2464 }
 0x3a0   : > { %v2067_v31 = vpop.permute.xlu1 %2066 }
 0x3a1   : > { %v2076_v60 = vrot.slane %v2067_v31, 4 }
 0x3a2   : > { %v2069_v56 = vpop.permute.xlu0 %2068 }
 0x3a3   : > { %v2077_v22 = vrot.slane %v2069_v56, 4  ;;  %v1966_v56 = vsel %vm456_vm7, %v1958_v21, %v1959_v50  ;;  %v1965_v50 = vsel %vm575_vm9, %v9635_v20, %v1964_v54  ;;  %v1842_v21 = vrot.slane %v9606_v29, 4 }
 0x3a4   : > { %v9679_v0 = vpop.permute.xlu1 %2366  ;;  %v1967_v35 = vsel %vm575_vm9, %v9656_v34, %v1966_v56  ;;  %v1844_v34 = vrot.slane %v9645_v19, 4 }
 0x3a5   : > { %v2084_v52 = vsel %vm456_vm7, %v2076_v60, %v2077_v22  ;;  %v7644_v55 = vcombine.high %v1965_v50, %v1967_v35 }
 0x3a6   : > { %v2085_v61 = vsel %vm692_vm8, %v2067_v31, %v2084_v52  ;;  %v1955_v17 = vpop.permute.xlu0 %1954  ;;  %v1848_v52 = vrot.slane %v9670_v11, 4  ;;  %v1852_v20 = vsel %vm456_vm7, %v1844_v34, %v1845_v7 }
 0x3a7   : > { %v7649_v27 = vcombine.low %v2083_v42, %v2085_v61  ;;  %v7650_v32 = vcombine.high %v2083_v42, %v2085_v61  ;;  %v1963_v33 = vrot.slane %v1955_v17, 4 }
 0x3a8   : > { %v1953_v13 = vpop.permute.xlu1 %1952  ;;  %v1856_v17 = vsel %vm456_vm7, %v1848_v52, %v1849_v2 }
 0x3a9   : > { %2890 = vmatprep.subr.bf16.mxu1 %v7650_v32  ;;  %v1962_v51 = vrot.slane %v1953_v13, 4  ;;  %v1854_v32 = vsel %vm456_vm7, %v1846_v23, %v1847_v14  ;;  %v1857_v59 = vsel %vm458_vm10, %v9670_v11, %v1856_v17  ;;  %v1853_v11 = vsel %vm458_vm10, %v9645_v19, %v1852_v20 }
 0x3aa   : > { %v9691_v31 = vpop.permute.xlu0 %2380  ;;  %2891 = vmatpush1.bf16.msra.mxu1 %v7649_v27  ;;  %v1843_v27 = vrot.slane %v9609_v41, 4  ;;  %v1855_v41 = vsel %vm458_vm10, %v9658_v58, %v1854_v32  ;;  %v2472_v14 = vrot.slane %v9672_v38, 4  ;;  %v2467_v23 = vrot.slane %v9622_v8, 4 }
 0x3ab   : > { %v1970_v45 = vsel %vm456_vm7, %v1962_v51, %v1963_v33  ;;  %2892 = vmatprep.subr.bf16.mxu1 %v7648_v48  ;;  %v7642_v51 = vcombine.high %v1855_v41, %v1857_v59  ;;  %v7641_v56 = vcombine.low %v1855_v41, %v1857_v59  ;;  %v2468_v17 = vrot.slane %v9652_v9, 4 }
 0x3ac   : > { %v1971_v22 = vsel %vm575_vm9, %v1953_v13, %v1970_v45  ;;  %v9698_v60 = vpop.permute.xlu1 %2370  ;;  %v7643_v13 = vcombine.low %v1965_v50, %v1967_v35  ;;  %v1850_v33 = vsel %vm456_vm7, %v1842_v21, %v1843_v27  ;;  %v2469_v35 = vrot.slane %v9654_v6, 4 }
 0x3ad   : > { %v7646_v42 = vcombine.high %v1969_v62, %v1971_v22  ;;  %v7645_v30 = vcombine.low %v1969_v62, %v1971_v22  ;;  %v1851_v16 = vsel %vm458_vm10, %v9606_v29, %v1850_v33  ;;  %v2473_v62 = vrot.slane %v9674_v57, 4 }
 0x3ae   : > { %v9705_v61 = vpop.permute.xlu0 %2368  ;;  %2893 = vmatpush1.bf16.msra.mxu1 %v7647_v18  ;;  %v7640_v45 = vcombine.high %v1851_v16, %v1853_v11  ;;  %v1739_v18 = vrot.slane %v9331_v40, %v8783_v5  ;;  %v7639_v19 = vcombine.low %v1851_v16, %v1853_v11  ;;  %v2471_v29 = vrot.slane %v9664_v39, 4 }
 0x3af   : > { %2894 = vmatprep.subr.bf16.mxu1 %v7646_v42  ;;  %v2470_v40 = vrot.slane %v9662_v1, 4  ;;  %v2480_v57 = vsel %vm456_vm7, %v2472_v14, %v2473_v62  ;;  %v2476_v15 = vsel %vm456_vm7, %v2468_v17, %v2469_v35  ;;  %v2387_v27 = vrot.slane %v9668_v24, 4 }
 0x3b0   : > { %v9712_v28 = vpop.permute.xlu1 %2260  ;;  %v1752_v54 = vmul.f32 %v9499_v47, %v1739_v18  ;;  %v1750_v42 = vmul.f32 %v9448_v26, %v1739_v18  ;;  %v1748_v39 = vmul.f32 %v9400_v10, %v1739_v18  ;;  %v2481_v6 = vsel %vm1096_vm11, %v9672_v38, %v2480_v57 }
 0x3b1   : > { %v2478_v26 = vsel %vm456_vm7, %v2470_v40, %v2471_v29  ;;  %v2474_v38 = vsel %vm456_vm7, %v2466_v12, %v2467_v23  ;;  %v2384_v24 = vrot.slane %v9698_v60, 4  ;;  %v2394_v21 = vsel %vm456_vm7, %v2386_v44, %v2387_v27 }
 0x3b2   : > { %v9719_v49 = vpop.permute.xlu0 %2372  ;;  %2895 = vmatpush1.bf16.msra.mxu1 %v7645_v30  ;;  %v8444_v47 = vpack.c.bf16 %v1752_v54, %v1750_v42  ;;  %v1746_v30 = vmul.f32 %v9344_v43, %v1739_v18  ;;  %v2479_v10 = vsel %vm1096_vm11, %v9662_v1, %v2478_v26  ;;  %v2477_v43 = vsel %vm1096_vm11, %v9652_v9, %v2476_v15 }
 0x3b3   : > { %2896 = vmatprep.subr.bf16.mxu1 %v7644_v55  ;;  %v7666_v34 = vcombine.high %v2479_v10, %v2481_v6  ;;  %v2385_v32 = vrot.slane %v9719_v49, 4  ;;  %v2475_v3 = vsel %vm1096_vm11, %v9619_v37, %v2474_v38  ;;  %v2383_v1 = vrot.slane %v9705_v61, 4 }
 0x3b4   : > { %v9725_v36 = vpop.permute.xlu1 %2252  ;;  %v2389_v9 = vrot.slane %v9691_v31, 4  ;;  %v7664_v20 = vcombine.high %v2475_v3, %v2477_v43  ;;  %v2395_v61 = vsel %vm1011_vm12, %v9666_v53, %v2394_v21  ;;  %v2272_v62 = vrot.slane %v9712_v28, 4 }
 0x3b5   : > { %v2392_v41 = vsel %vm456_vm7, %v2384_v24, %v2385_v32  ;;  %v2268_v23 = vrot.slane %v9725_v36, 4 }
 0x3b6   : > { %v9730_v48 = vpop.permute.xlu0 %2262  ;;  %2897 = vmatpush1.bf16.msra.mxu1 %v7643_v13  ;;  %v2382_v13 = vrot.slane %v9679_v0, 4  ;;  %v2393_v18 = vsel %vm1011_vm12, %v9698_v60, %v2392_v41 }
 0x3b7   : > { %2898 = vmatprep.subr.bf16.mxu1 %v7642_v51  ;;  %v7663_v51 = vcombine.low %v2475_v3, %v2477_v43  ;;  %v2273_v16 = vrot.slane %v9730_v48, 4 }
 0x3b8   : > { %v9734_v2 = vpop.permute.xlu1 %2256  ;;  %v2390_v11 = vsel %vm456_vm7, %v2382_v13, %v2383_v1 }
 0x3b9   : > { %v2391_v53 = vsel %vm1011_vm12, %v9679_v0, %v2390_v11  ;;  %v2280_v29 = vsel %vm456_vm7, %v2272_v62, %v2273_v16  ;;  %v2270_v40 = vrot.slane %v9734_v2, 4 }
 0x3ba   : > { %v9736_v58 = vpop.permute.xlu0 %2266  ;;  %2899 = vmatpush1.bf16.msra.mxu1 %v7641_v56  ;;  %v7660_v42 = vcombine.high %v2391_v53, %v2393_v18  ;;  %v7659_v26 = vcombine.low %v2391_v53, %v2393_v18 }
 0x3bb   : > { %2900 = vmatprep.subr.bf16.mxu1 %v7640_v45  ;;  %v2275_v35 = vrot.slane %v9736_v58, 4 }
 0x3bc   : > { %v9741_v22 = vpop.permute.xlu1 %2146 }
 0x3be   : > { %v9746_v52 = vpop.permute.xlu0 %2254  ;;  %2901 = vmatpush1.bf16.msra.mxu1 %v7639_v19 }
 0x3bf   : > { %2902 = vmatprep.subr.bf16.mxu1 %v8445_v25  ;;  %v8442_v25 = vpack.c.bf16 %v1748_v39, %v1746_v30  ;;  %v2269_v60 = vrot.slane %v9746_v52, 4 }
 0x3c0   : > { %v9755_v7 = vpop.permute.xlu1 %2150 }
 0x3c1   : > { %v2276_v12 = vsel %vm456_vm7, %v2268_v23, %v2269_v60 }
 0x3c2   : > { %v2259_v50 = vpop.permute.xlu0 %2258  ;;  %2903 = vmatpush1.bf16.msra.mxu1 %v8444_v47 }
 0x3c3   : > { %2904 = vmatprep.subr.bf16.mxu1 %v8443_v63  ;;  %v7665_v63 = vcombine.low %v2479_v10, %v2481_v6  ;;  %v2271_v54 = vrot.slane %v2259_v50, 4  ;;  %v2160_v6 = vrot.slane %v9755_v7, 4  ;;  %v2281_v50 = vsel %vm894_vm13, %v9712_v28, %v2280_v29 }
 0x3c4   : > { %v9771_v8 = vpop.permute.xlu1 %2572  ;;  %v2158_v10 = vrot.slane %v9741_v22, 4 }
 0x3c5   : > { %v2278_v17 = vsel %vm456_vm7, %v2270_v40, %v2271_v54  ;;  %v2584_v1 = vrot.slane %v9771_v8, 4 }
 0x3c6   : > { %v9778_v55 = vpop.permute.xlu0 %2148  ;;  %2905 = vmatpush1.bf16.msra.mxu1 %v8442_v25  ;;  %v2279_v27 = vsel %vm894_vm13, %v9734_v2, %v2278_v17  ;;  %v8515_v17 = vld [vmem:[%s11643_s1 + $0x38] ss:$12 sps:$4 sm:$0xff]  }
 0x3c7   : > { %2906 = vmatprep.subr.bf16.mxu1 %v7666_v34  ;;  %v2159_v58 = vrot.slane %v9778_v55, 4  ;;  %v2277_v55 = vsel %vm894_vm13, %v9725_v36, %v2276_v12 }
 0x3c8   : > { %v2379_v59 = vpop.permute.xlu1 %2378  ;;  %v7656_v3 = vcombine.high %v2277_v55, %v2279_v27  ;;  %v7655_v36 = vcombine.low %v2277_v55, %v2279_v27 }
 0x3c9   : > { %v2388_v49 = vrot.slane %v2379_v59, 4  ;;  %v2166_v34 = vsel %vm456_vm7, %v2158_v10, %v2159_v58  ;;  %v7693_v58 = vld [vmem:[%s11647_s5 + $0x4] sm:$0x3] }
 0x3ca   : > { %v2153_v33 = vpop.permute.xlu0 %2152  ;;  %2907 = vmatpush2.bf16.msra.mxu1 %v7665_v63  ;;  %v3265_v12 = vrot.slane %v7693_v58, %v8781_v4 }
 0x3cb   : > { %v2396_v37 = vsel %vm456_vm7, %v2388_v49, %v2389_v9  ;;  %2908 = vmatprep.subr.bf16.mxu1 %v7664_v20  ;;  %v2161_v47 = vrot.slane %v2153_v33, 4  ;;  %v2167_v9 = vsel %vm777_vm15, %v9741_v22, %v2166_v34 }
 0x3cc   : > { %v2397_v31 = vsel %vm1011_vm12, %v2379_v59, %v2396_v37  ;;  %v9795_v56 = vpop.permute.xlu1 %2138 }
 0x3cd   : > { %v7662_v45 = vcombine.high %v2395_v61, %v2397_v31  ;;  %v7661_v48 = vcombine.low %v2395_v61, %v2397_v31  ;;  %v2168_v25 = vsel %vm456_vm7, %v2160_v6, %v2161_v47  ;;  %v2154_v2 = vrot.slane %v9795_v56, 4  ;;  %v8516_v47 = vld [vmem:[%s11643_s1 + $0x4c] ss:$12 sps:$4 sm:$0xff]   ;;  %v7702_v6 = vld [vmem:[%s11647_s5 + $0x6] sm:$0x3] }
 0x3ce   : > { %v2575_v19 = vpop.permute.xlu0 %2574  ;;  %2909 = vmatpush2.bf16.msra.mxu1 %v7663_v51  ;;  %v2169_v63 = vsel %vm777_vm15, %v9755_v7, %v2168_v25 }
 0x3cf   : > { %2910 = vmatprep.subr.bf16.mxu1 %v7662_v45  ;;  %v2585_v43 = vrot.slane %v2575_v19, 4  ;;  %v7654_v13 = vcombine.high %v2167_v9, %v2169_v63  ;;  %v7653_v45 = vcombine.low %v2167_v9, %v2169_v63 }
 0x3d0   : > { %v2265_v14 = vpop.permute.xlu1 %2264 }
 0x3d1   : > { %v2274_v57 = vrot.slane %v2265_v14, 4  ;;  %v2592_v49 = vsel %vm456_vm7, %v2584_v1, %v2585_v43 }
 0x3d2   : > { %v2579_v39 = vpop.permute.xlu0 %2578  ;;  %2911 = vmatpush2.bf16.msra.mxu1 %v7661_v48  ;;  %v2593_v22 = vsel %vm1212_vm14, %v9771_v8, %v2592_v49 }
 0x3d3   : > { %v2282_v0 = vsel %vm456_vm7, %v2274_v57, %v2275_v35  ;;  %2912 = vmatprep.subr.bf16.mxu1 %v7660_v42  ;;  %v2587_v41 = vrot.slane %v2579_v39, 4 }
 0x3d4   : > { %v2283_v52 = vsel %vm894_vm13, %v2265_v14, %v2282_v0  ;;  %v2143_v30 = vpop.permute.xlu1 %2142  ;;  %v8518_v0 = vld [vmem:[%s11643_s1 + $0x48] ss:$12 sps:$4 sm:$0xff]  }
 0x3d5   : > { %v7658_v15 = vcombine.high %v2281_v50, %v2283_v52  ;;  %v7657_v28 = vcombine.low %v2281_v50, %v2283_v52  ;;  %v2156_v59 = vrot.slane %v2143_v30, 4  ;;  %v3375_v50 = vrot.slane %v7702_v6, %v8783_v5 }
 0x3d6   : > { %v2141_v38 = vpop.permute.xlu0 %2140  ;;  %2913 = vmatpush2.bf16.msra.mxu1 %v7659_v26  ;;  %v8519_v26 = vld [vmem:[%s11643_s1 + $0x50] ss:$12 sps:$4 sm:$0xff]   ;;  %v3379_v52 = vrot.slane %v7702_v6, %v8781_v4 }
 0x3d7   : > { %2914 = vmatprep.subr.bf16.mxu1 %v7658_v15  ;;  %v2155_v44 = vrot.slane %v2141_v38, 4  ;;  %3380 = vrot.lane.b32.xlu1 %v3375_v50, %s8714_s29  ;;  %v7728_v15 = vld [vmem:[%s11647_s5 + $0xc] sm:$0x3] }
 0x3d8   : > { %v2565_v32 = vpop.permute.xlu1 %2564  ;;  %3382 = vrot.lane.b32.xlu0 %v3379_v52, %s8714_s29  ;;  %v3687_v10 = vrot.slane %v7728_v15, %v8783_v5  ;;  %v3691_v25 = vrot.slane %v7728_v15, %v8781_v4 }
 0x3d9   : > { %v2162_v7 = vsel %vm456_vm7, %v2154_v2, %v2155_v44  ;;  %v2580_v19 = vrot.slane %v2565_v32, 4 }
 0x3da   : > { %v2145_v24 = vpop.permute.xlu0 %2144  ;;  %2915 = vmatpush2.bf16.msra.mxu1 %v7657_v28  ;;  %v2163_v62 = vsel %vm777_vm15, %v9795_v56, %v2162_v7  ;;  %v8512_v56 = vld [vmem:[%s11643_s1 + $0x30] ss:$12 sps:$4 sm:$0xff]  }
 0x3db   : > { %v2157_v21 = vrot.slane %v2145_v24, 4  ;;  %2916 = vmatprep.subr.bf16.mxu1 %v7656_v3 }
 0x3dc   : > { %v2577_v20 = vpop.permute.xlu1 %2576  ;;  %3268 = vrot.lane.b32.xlu0 %v3265_v12, %s8716_s11 }
 0x3dd   : > { %v2164_v33 = vsel %vm456_vm7, %v2156_v59, %v2157_v21  ;;  %v2586_v51 = vrot.slane %v2577_v20, 4 }
 0x3de   : > { %v2567_v37 = vpop.permute.xlu0 %2566  ;;  %2917 = vmatpush2.bf16.msra.mxu1 %v7655_v36  ;;  %v2165_v61 = vsel %vm777_vm15, %v2143_v30, %v2164_v33  ;;  %v3261_v30 = vrot.slane %v7693_v58, %v8783_v5 }
 0x3df   : > { %v2581_v11 = vrot.slane %v2567_v37, 4  ;;  %v2594_v16 = vsel %vm456_vm7, %v2586_v51, %v2587_v41  ;;  %2918 = vmatprep.subr.bf16.mxu1 %v7654_v13  ;;  %v7652_v53 = vcombine.high %v2163_v62, %v2165_v61  ;;  %v7651_v8 = vcombine.low %v2163_v62, %v2165_v61 }
 0x3e0   : > { %v2595_v31 = vsel %vm1212_vm14, %v2577_v20, %v2594_v16  ;;  %v2569_v18 = vpop.permute.xlu1 %2568  ;;  %3266 = vrot.lane.b32.xlu1 %v3261_v30, %s8716_s11  ;;  %3694 = vrot.lane.b32.xlu0 %v3691_v25, %s8717_s14 }
 0x3e1   : > { %v7669_v54 = vcombine.low %v2593_v22, %v2595_v31  ;;  %v7670_v29 = vcombine.high %v2593_v22, %v2595_v31  ;;  %v2588_v14 = vsel %vm456_vm7, %v2580_v19, %v2581_v11  ;;  %v2582_v35 = vrot.slane %v2569_v18, 4 }
 0x3e2   : > { %v2571_v48 = vpop.permute.xlu0 %2570  ;;  %2919 = vmatpush2.bf16.msra.mxu1 %v7653_v45  ;;  %v2589_v60 = vsel %vm1212_vm14, %v2565_v32, %v2588_v14 }
 0x3e3   : > { %v2583_v42 = vrot.slane %v2571_v48, 4  ;;  %2920 = vmatprep.subr.bf16.mxu1 %v7652_v53  ;;  %2955 = vmatprep.subr.bf16.mxu0 %v7670_v29 }
 0x3e4   : > { %2956 = vmatpush1.bf16.msra.mxu0 %v7669_v54  ;;  %3692 = vrot.lane.b32.xlu1 %v3687_v10, %s8717_s14 }
 0x3e5   : > { %v2590_v40 = vsel %vm456_vm7, %v2582_v35, %v2583_v42 }
 0x3e6   : > { %v2591_v57 = vsel %vm1212_vm14, %v2569_v18, %v2590_v40  ;;  %2921 = vmatpush2.bf16.msra.mxu1 %v7651_v8 }
 0x3e7   : > { %v7667_v39 = vcombine.low %v2589_v60, %v2591_v57  ;;  %v7668_v23 = vcombine.high %v2589_v60, %v2591_v57 }
 0x3e9   : > { %2923 = vmatmul.mubr.bf16.vlgmr.msra.gmra.mxu1 %v8512_v56  ;;  %2957 = vmatprep.subr.bf16.mxu0 %v7668_v23 }
 0x3ea   : > { %2958 = vmatpush1.bf16.msra.mxu0 %v7667_v39  ;;  %2932 = vmatprep.mubr.bf16.mxu1 %v8516_v47 }
 0x3ed   : > { %7671 = vmatmul.mubr.msk.bf16.vlgmr.msra.gmra.mxu0 %vm937_vm5, %v8515_v17  ;;  %v2667_v38 = vpop.permute.xlu1 %2666 }
 0x3ee   : > { %2985 = vmatprep.mubr.bf16.mxu0 %v8728_v46 }
 0x3ef   : > { %v2672_v27 = vpop.permute.xlu0 %2671 }
 0x3f1   : > { %2933 = vmatmul.mubr.bf16.gmra.mxu1 %v8518_v0  ;;  %v2657_v43 = vpop.permute.xlu1 %2656 }
 0x3f3   : > { %v2662_v3 = vpop.permute.xlu0 %2661 }
 0x3f5   : > { %7672 = vmatmul.mubr.msk.bf16.gmra.mxu0 %vm937_vm5, %v8519_v26 }
 0x3f6   : > { %4353 = vmatprep.mubr.bf16.mxu0 %v8728_v46 }
 0x4a9   : > { %v2924_v34 = vpop.f32.mrf.mxu1 }
 0x4aa   : > { %v2925_v32 = vadd.f32 %v2924_v34, %v2657_v43 }
 0x4ab   : > { %v2926_v28 = vpop.f32.mrf.mxu1 }
 0x4ac   : > { %v2927_v63 = vadd.f32 %v2926_v28, %v2657_v43 }
 0x4ad   : > { %v2928_v55 = vpop.f32.mrf.mxu1  ;;  %v2977_v44 = vpop.f32.mrf.mxu0 }
 0x4ae   : > { %v9882_v1 = vadd.f32 %v2977_v44, %v2925_v32  ;;  %v2929_v59 = vadd.f32 %v2928_v55, %v2662_v3 }
 0x4af   : > { %v2930_v24 = vpop.f32.mrf.mxu1  ;;  %v2979_v2 = vpop.f32.mrf.mxu0 }
 0x4b0   : > { %v7673_v21 = vmul.f32 -1.442695, %v9882_v1  ;;  %v9885_v9 = vadd.f32 %v2979_v2, %v2927_v63  ;;  %v2931_v20 = vadd.f32 %v2930_v24, %v2662_v3  ;;  %v7719_v2 = vld [vmem:[%s11647_s5 + $0xa] sm:$0x3] }
 0x4b1   : > { %v2934_v49 = vpop.f32.mrf.mxu1  ;;  %v2981_v36 = vpop.f32.mrf.mxu0 }
 0x4b2   : > { %8577 = vpow2.f32 %v7673_v21  ;;  %v7674_v13 = vmul.f32 -1.442695, %v9885_v9  ;;  %v2982_v41 = vadd.f32 %v2981_v36, %v2929_v59  ;;  %v2935_v51 = vadd.f32 %v2934_v49, %v2667_v38  ;;  %v7745_v36 = vld [vmem:[%s11647_s5 + $0x10] sm:$0x3] }
 0x4b3   : > { %v2936_v7 = vpop.f32.mrf.mxu1  ;;  %v2983_v33 = vpop.f32.mrf.mxu0  ;;  %v3573_v49 = vrot.slane %v7719_v2, %v8783_v5 }
 0x4b4   : > { %8579 = vpow2.f32 %v7674_v13  ;;  %v7675_v37 = vmul.f32 -1.442695, %v2982_v41  ;;  %v2984_v61 = vadd.f32 %v2983_v33, %v2931_v20  ;;  %v2937_v22 = vadd.f32 %v2936_v7, %v2667_v38  ;;  %v9912_v7 = vpop.permute.xlu1 %3380  ;;  %v9914_v33 = vpop.permute.xlu0 %3382 }
 0x4b5   : > { %v2938_v11 = vpop.f32.mrf.mxu1  ;;  %v2987_v16 = vpop.f32.mrf.mxu0  ;;  %v3577_v20 = vrot.slane %v7719_v2, %v8781_v4  ;;  %v3885_v13 = vrot.slane %v7745_v36, %v8783_v5 }
 0x4b6   : > { %8581 = vpow2.f32 %v7675_v37  ;;  %v7676_v31 = vmul.f32 -1.442695, %v2984_v61  ;;  %v2988_v45 = vadd.f32 %v2987_v16, %v2935_v51  ;;  %v2939_v19 = vadd.f32 %v2938_v11, %v2672_v27 }
 0x4b7   : > { %v2940_v18 = vpop.f32.mrf.mxu1  ;;  %v2989_v62 = vpop.f32.mrf.mxu0 }
 0x4b8   : > { %8583 = vpow2.f32 %v7676_v31  ;;  %v7677_v54 = vmul.f32 -1.442695, %v2988_v45  ;;  %v2990_v53 = vadd.f32 %v2989_v62, %v2937_v22  ;;  %v2941_v48 = vadd.f32 %v2940_v18, %v2672_v27  ;;  %v9916_v51 = vpop.permute.xlu1 %3266  ;;  %v9918_v37 = vpop.permute.xlu0 %3268  ;;  %v9928_v22 = vld [vmem:[%s11647_s5] sm:$0x3] }
 0x4b9   : > { %v2991_v29 = vpop.f32.mrf.mxu0  ;;  %v3121_v18 = vrot.slane %v9928_v22, %v8781_v4 }
 0x4ba   : > { %8585 = vpow2.f32 %v7677_v54  ;;  %v7678_v14 = vmul.f32 -1.442695, %v2990_v53  ;;  %v2992_v42 = vadd.f32 %v2991_v29, %v2939_v19 }
 0x4bb   : > { %v2993_v35 = vpop.f32.mrf.mxu0 }
 0x4bc   : > { %8587 = vpow2.f32 %v7678_v14  ;;  %v7679_v8 = vmul.f32 -1.442695, %v2992_v42  ;;  %v2994_v40 = vadd.f32 %v2993_v35, %v2941_v48  ;;  %v9922_v11 = vpop.permute.xlu0 %3694 }
 0x4be   : > { %8589 = vpow2.f32 %v7679_v8  ;;  %v7680_v56 = vmul.f32 -1.442695, %v2994_v40 }
 0x4bf   : > { %v8578_v60 = vpop.eup %8577 }
 0x4c0   : > { %v3020_v57 = vadd.f32 1.0, %v8578_v60  ;;  %8591 = vpow2.f32 %v7680_v56 }
 0x4c1   : > { %v8580_v47 = vpop.eup %8579 }
 0x4c2   : > { %8593 = vrcp.f32 %v3020_v57  ;;  %v3021_v39 = vadd.f32 1.0, %v8580_v47  ;;  %v9973_v47 = vsel %vm618_vm3, %v9912_v7, %v9914_v33 }
 0x4c3   : > { %v8582_v23 = vpop.eup %8581 }
 0x4c4   : > { %8595 = vrcp.f32 %v3021_v39  ;;  %v3022_v17 = vadd.f32 1.0, %v8582_v23 }
 0x4c5   : > { %v8584_v0 = vpop.eup %8583 }
 0x4c6   : > { %8597 = vrcp.f32 %v3022_v17  ;;  %v3023_v26 = vadd.f32 1.0, %v8584_v0 }
 0x4c7   : > { %v8586_v6 = vpop.eup %8585 }
 0x4c8   : > { %8599 = vrcp.f32 %v3023_v26  ;;  %v3024_v58 = vadd.f32 1.0, %v8586_v6  ;;  %v9989_v6 = vsel %vm501_vm4, %v9916_v51, %v9918_v37 }
 0x4c9   : > { %v8588_v50 = vpop.eup %8587 }
 0x4ca   : > { %8601 = vrcp.f32 %v3024_v58  ;;  %v3025_v52 = vadd.f32 1.0, %v8588_v50 }
 0x4cb   : > { %v8590_v30 = vpop.eup %8589 }
 0x4cc   : > { %8603 = vrcp.f32 %v3025_v52  ;;  %v3026_v12 = vadd.f32 1.0, %v8590_v30 }
 0x4cd   : > { %v8592_v15 = vpop.eup %8591 }
 0x4ce   : > { %8605 = vrcp.f32 %v3026_v12  ;;  %v3027_v10 = vadd.f32 1.0, %v8592_v15 }
 0x4cf   : > { %v8594_v25 = vpop.eup %8593 }
 0x4d0   : > { %v3044_v38 = vmul.f32 %v8594_v25, %v9882_v1  ;;  %8607 = vrcp.f32 %v3027_v10 }
 0x4d1   : > { %v8596_v27 = vpop.eup %8595 }
 0x4d2   : > { %v3045_v34 = vmul.f32 %v8596_v27, %v9885_v9  ;;  %3060 = vrot.lane.b32.xlu1 %v3044_v38, %s8715_s8 }
 0x4d3   : > { %v8598_v43 = vpop.eup %8597 }
 0x4d4   : > { %v3046_v28 = vmul.f32 %v8598_v43, %v2982_v41  ;;  %3062 = vrot.lane.b32.xlu0 %v3045_v34, %s8715_s8  ;;  %v3889_v41 = vrot.slane %v7745_v36, %v8781_v4 }
 0x4d5   : > { %v8600_v32 = vpop.eup %8599 }
 0x4d6   : > { %v3047_v55 = vmul.f32 %v8600_v32, %v2984_v61  ;;  %3064 = vrot.lane.b32.xlu1 %v3046_v28, %s8715_s8  ;;  %v9920_v61 = vpop.permute.xlu1 %3692 }
 0x4d7   : > { %v8602_v44 = vpop.eup %8601 }
 0x4d8   : > { %v3048_v3 = vmul.f32 %v8602_v44, %v2988_v45  ;;  %3066 = vrot.lane.b32.xlu0 %v3047_v55, %s8715_s8 }
 0x4d9   : > { %v8604_v63 = vpop.eup %8603 }
 0x4da   : > { %v3049_v1 = vmul.f32 %v8604_v63, %v2990_v53  ;;  %3068 = vrot.lane.b32.xlu1 %v3048_v3, %s8715_s8 }
 0x4db   : > { %v8606_v24 = vpop.eup %8605 }
 0x4dc   : > { %v3050_v59 = vmul.f32 %v8606_v24, %v2992_v42  ;;  %3070 = vrot.lane.b32.xlu0 %v3049_v1, %s8715_s8 }
 0x4dd   : > { %v8608_v21 = vpop.eup %8607 }
 0x4de   : > { %v3051_v9 = vmul.f32 %v8608_v21, %v2994_v40  ;;  %3072 = vrot.lane.b32.xlu1 %v3050_v59, %s8715_s8 }
 0x4e0   : > { %3074 = vrot.lane.b32.xlu0 %v3051_v9, %s8715_s8 }
 0x4e2   : > { %3578 = vrot.lane.b32.xlu1 %v3573_v49, %s8718_s17 }
 0x4e4   : > { %3580 = vrot.lane.b32.xlu0 %v3577_v20, %s8718_s17 }
 0x4e6   : > { %3890 = vrot.lane.b32.xlu1 %v3885_v13, %s8719_s18 }
 0x4e8   : > { %3892 = vrot.lane.b32.xlu0 %v3889_v41, %s8719_s18 }
 0x544   : > { %v3061_v16 = vpop.permute.xlu1 %3060 }
 0x545   : > { %3092 = vst.msk [vmem:[#allocation2] sm:$0xff] %vm319_vm2, %v3061_v16 }
 0x546   : > { %v3063_v31 = vpop.permute.xlu0 %3062 }
 0x547   : > { %3094 = vst.msk [vmem:[#allocation2 + $0x10] sm:$0xff] %vm302_vm1, %v3063_v31  ;;  %v9934_v62 = vsel %vm302_vm1, %v3061_v16, %v3063_v31 }
 0x548   : > { %v3065_v45 = vpop.permute.xlu1 %3064  ;;  %v9944_v48 = vmul.f32 %v3121_v18, %v9934_v62  ;;  %v3389_v17 = vmul.f32 %v9973_v47, %v9934_v62  ;;  %v3275_v52 = vmul.f32 %v9989_v6, %v9934_v62 }
 0x549   : > { %3095 = vst.msk [vmem:[#allocation2 + $0x18] sm:$0xff] %vm319_vm2, %v3065_v45 }
 0x54a   : > { %v3067_v19 = vpop.permute.xlu0 %3066 }
 0x54b   : > { %v9938_v54 = vsel %vm302_vm1, %v3065_v45, %v3067_v19  ;;  %3097 = vst.msk [vmem:[#allocation2 + $0x28] sm:$0xff] %vm302_vm1, %v3067_v19 }
 0x54c   : > { %v3069_v53 = vpop.permute.xlu1 %3068  ;;  %v9941_v29 = vld [vmem:[#allocation2] sm:$0xff]  ;;  %v9947_v14 = vmul.f32 %v3121_v18, %v9938_v54  ;;  %v3392_v43 = vmul.f32 %v9973_v47, %v9938_v54  ;;  %v3278_v1 = vmul.f32 %v9989_v6, %v9938_v54 }
 0x54d   : > { %3098 = vst.msk [vmem:[#allocation2 + $0x30] sm:$0xff] %vm319_vm2, %v3069_v53  ;;  %v9952_v42 = vpack.c.bf16 %v9934_v62, %v9941_v29  ;;  %v3388_v57 = vmul.f32 %v9912_v7, %v9941_v29  ;;  %v3274_v26 = vmul.f32 %v9916_v51, %v9941_v29 }
 0x54e   : > { %v3071_v35 = vpop.permute.xlu0 %3070  ;;  %v9954_v8 = vld [vmem:[#allocation2 + $0x10] sm:$0xff]  ;;  %v8447_v40 = vpack.c.bf16 %v9947_v14, %v9944_v48 }
 0x54f   : > { %3100 = vst.msk [vmem:[#allocation2 + $0x40] sm:$0xff] %vm302_vm1, %v3071_v35  ;;  %v9961_v56 = vpack.c.bf16 %v9954_v8, %v9954_v8  ;;  %3204 = vrot.lane.b32.xlu1 %v9952_v42, %s8720_s19  ;;  %v3390_v23 = vmul.f32 %v9914_v33, %v9954_v8  ;;  %v8254_v0 = vpack.c.bf16 %v3389_v17, %v3388_v57 }
 0x550   : > { %v3073_v60 = vpop.permute.xlu1 %3072  ;;  %v3276_v50 = vmul.f32 %v9918_v37, %v9954_v8  ;;  %v8246_v30 = vpack.c.bf16 %v3275_v52, %v3274_v26  ;;  %v9997_v12 = vld [vmem:[#allocation2 + $0x18] sm:$0xff]  ;;  %v10024_v28 = vsel %vm302_vm1, %v3069_v53, %v3071_v35 }
 0x551   : > { %3101 = vst.msk [vmem:[#allocation2 + $0x48] sm:$0xff] %vm319_vm2, %v3073_v60  ;;  %3206 = vrot.lane.b32.xlu0 %v9961_v56, %s8720_s19  ;;  %v8255_v58 = vpack.c.bf16 %v3390_v23, %v3390_v23  ;;  %v10005_v25 = vpack.c.bf16 %v9938_v54, %v9997_v12  ;;  %v3391_v27 = vmul.f32 %v9912_v7, %v9997_v12 }
 0x552   : > { %v3075_v39 = vpop.permute.xlu0 %3074  ;;  %v8247_v15 = vpack.c.bf16 %v3276_v50, %v3276_v50  ;;  %v10000_v10 = vld [vmem:[#allocation2 + $0x28] sm:$0xff]  ;;  %v3277_v44 = vmul.f32 %v9916_v51, %v9997_v12  ;;  %v10039_v24 = vmul.f32 %v3121_v18, %v10024_v28  ;;  %v3395_v31 = vmul.f32 %v9973_v47, %v10024_v28 }
 0x553   : > { %3103 = vst.msk [vmem:[#allocation2 + $0x58] sm:$0xff] %vm302_vm1, %v3075_v39  ;;  %3828 = vrot.lane.b32.xlu1 %v9952_v42, %s8721_s20  ;;  %v10009_v38 = vpack.c.bf16 %v10000_v10, %v10000_v10  ;;  %v3393_v34 = vmul.f32 %v9914_v33, %v10000_v10  ;;  %v10027_v32 = vsel %vm302_vm1, %v3073_v60, %v3075_v39 }
 0x554   : > { %v8256_v55 = vpack.c.bf16 %v3392_v43, %v3391_v27  ;;  %v3279_v63 = vmul.f32 %v9918_v37, %v10000_v10  ;;  %v10042_v2 = vmul.f32 %v3121_v18, %v10027_v32  ;;  %v8248_v59 = vpack.c.bf16 %v3278_v1, %v3277_v44  ;;  %v10045_v21 = vld [vmem:[#allocation2 + $0x30] sm:$0xff] }
 0x555   : > { %3830 = vrot.lane.b32.xlu0 %v9961_v56, %s8721_s20  ;;  %v8257_v3 = vpack.c.bf16 %v3393_v34, %v3393_v34  ;;  %v10055_v20 = vpack.c.bf16 %v10024_v28, %v10045_v21  ;;  %v3394_v41 = vmul.f32 %v9912_v7, %v10045_v21  ;;  %v3280_v18 = vmul.f32 %v9916_v51, %v10045_v21 }
 0x556   : > { %v8449_v9 = vpack.c.bf16 %v10042_v2, %v10039_v24  ;;  %v8249_v49 = vpack.c.bf16 %v3279_v63, %v3279_v63  ;;  %v10050_v36 = vld [vmem:[#allocation2 + $0x40] sm:$0xff]  ;;  %v3281_v35 = vmul.f32 %v9989_v6, %v10024_v28  ;;  %v3706_v57 = vmul.f32 %v9920_v61, %v10045_v21  ;;  %v3581_v1 = vpop.permute.xlu0 %3580 }
 0x557   : > { %3432 = vrot.lane.b32.xlu1 %v8254_v0, %s8723_s26  ;;  %v10059_v13 = vpack.c.bf16 %v10050_v36, %v10050_v36  ;;  %v3396_v16 = vmul.f32 %v9914_v33, %v10050_v36  ;;  %v8258_v45 = vpack.c.bf16 %v3395_v31, %v3394_v41  ;;  %v3282_v53 = vmul.f32 %v9918_v37, %v10050_v36 }
 0x558   : > { %v8250_v60 = vpack.c.bf16 %v3281_v35, %v3280_v18  ;;  %v10088_v39 = vsel %vm937_vm5, %v9920_v61, %v9922_v11  ;;  %v3708_v17 = vmul.f32 %v9922_v11, %v10050_v36  ;;  %v3398_v43 = vmul.f32 %v9973_v47, %v10027_v32 }
 0x559   : > { %3434 = vrot.lane.b32.xlu0 %v8255_v58, %s8723_s26  ;;  %v8259_v19 = vpack.c.bf16 %v3396_v16, %v3396_v16  ;;  %v8251_v23 = vpack.c.bf16 %v3282_v53, %v3282_v53  ;;  %v3707_v0 = vmul.f32 %v10088_v39, %v10024_v28  ;;  %v10096_v58 = vld [vmem:[#allocation2 + $0x48] sm:$0xff]  ;;  %v3700_v44 = vmul.f32 %v9920_v61, %v9941_v29 }
 0x55a   : > { %v8283_v50 = vpack.c.bf16 %v3708_v17, %v3708_v17  ;;  %v10099_v52 = vld [vmem:[#allocation2 + $0x58] sm:$0xff]  ;;  %v3397_v27 = vmul.f32 %v9912_v7, %v10096_v58  ;;  %v3701_v63 = vmul.f32 %v10088_v39, %v9934_v62  ;;  %v3283_v47 = vmul.f32 %v9916_v51, %v10096_v58 }
 0x55b   : > { %3318 = vrot.lane.b32.xlu1 %v8246_v30, %s8724_s27  ;;  %v8282_v26 = vpack.c.bf16 %v3707_v0, %v3706_v57  ;;  %v10104_v30 = vpack.c.bf16 %v10027_v32, %v10096_v58  ;;  %v3399_v34 = vmul.f32 %v9914_v33, %v10099_v52  ;;  %v3285_v7 = vmul.f32 %v9918_v37, %v10099_v52  ;;  %v3579_v37 = vpop.permute.xlu1 %3578 }
 0x55c   : > { %v8278_v33 = vpack.c.bf16 %v3701_v63, %v3700_v44  ;;  %v3284_v41 = vmul.f32 %v9989_v6, %v10027_v32  ;;  %v3703_v31 = vmul.f32 %v9920_v61, %v9997_v12  ;;  %v3702_v18 = vmul.f32 %v9922_v11, %v9954_v8 }
 0x55d   : > { %3320 = vrot.lane.b32.xlu0 %v8247_v15, %s8724_s27  ;;  %v10108_v15 = vpack.c.bf16 %v10099_v52, %v10099_v52  ;;  %v3592_v57 = vmul.f32 %v3579_v37, %v10045_v21  ;;  %v3588_v63 = vmul.f32 %v3581_v1, %v9954_v8 }
 0x55e   : > { %v8252_v16 = vpack.c.bf16 %v3284_v41, %v3283_v47  ;;  %v8279_v35 = vpack.c.bf16 %v3702_v18, %v3702_v18  ;;  %v3709_v18 = vmul.f32 %v9920_v61, %v10096_v58 }
 0x55f   : > { %3208 = vrot.lane.b32.xlu1 %v10005_v25, %s8720_s19 }
 0x561   : > { %3210 = vrot.lane.b32.xlu0 %v10009_v38, %s8720_s19 }
 0x563   : > { %3832 = vrot.lane.b32.xlu1 %v10005_v25, %s8721_s20 }
 0x565   : > { %3834 = vrot.lane.b32.xlu0 %v10009_v38, %s8721_s20 }
 0x567   : > { %3436 = vrot.lane.b32.xlu1 %v8256_v55, %s8723_s26  ;;  %v8260_v55 = vpack.c.bf16 %v3398_v43, %v3397_v27  ;;  %v3597_v43 = vmul.f32 %v3581_v1, %v10099_v52 }
 0x569   : > { %3438 = vrot.lane.b32.xlu0 %v8257_v3, %s8723_s26  ;;  %v8261_v3 = vpack.c.bf16 %v3399_v34, %v3399_v34 }
 0x56b   : > { %3322 = vrot.lane.b32.xlu1 %v8248_v59, %s8724_s27  ;;  %v8253_v59 = vpack.c.bf16 %v3285_v7, %v3285_v7  ;;  %v8277_v7 = vpack.c.bf16 %v3597_v43, %v3597_v43  ;;  %v7763_v43 = vld [vmem:[%s11644_s2 + $0x48] sm:$0xff] }
 0x56d   : > { %3324 = vrot.lane.b32.xlu0 %v8249_v49, %s8724_s27  ;;  %v3711_v49 = vmul.f32 %v9922_v11, %v10099_v52 }
 0x56f   : > { %3212 = vrot.lane.b32.xlu1 %v10055_v20, %s8720_s19  ;;  %v8285_v51 = vpack.c.bf16 %v3711_v49, %v3711_v49  ;;  %v3591_v49 = vmul.f32 %v3581_v1, %v10000_v10 }
 0x571   : > { %3214 = vrot.lane.b32.xlu0 %v10059_v13, %s8720_s19 }
 0x573   : > { %3836 = vrot.lane.b32.xlu1 %v10055_v20, %s8721_s20 }
 0x575   : > { %3838 = vrot.lane.b32.xlu0 %v10059_v13, %s8721_s20 }
 0x577   : > { %3440 = vrot.lane.b32.xlu1 %v8258_v45, %s8723_s26  ;;  %v3582_v45 = vsel %vm820_vm6, %v3579_v37, %v3581_v1 }
 0x578   : > { %v3593_v53 = vmul.f32 %v3582_v45, %v10024_v28  ;;  %v3587_v17 = vmul.f32 %v3582_v45, %v9934_v62  ;;  %v3590_v34 = vmul.f32 %v3582_v45, %v9938_v54  ;;  %v3596_v61 = vmul.f32 %v3582_v45, %v10027_v32 }
 0x579   : > { %3442 = vrot.lane.b32.xlu0 %v8259_v19, %s8723_s26  ;;  %v3704_v19 = vmul.f32 %v10088_v39, %v9938_v54 }
 0x57b   : > { %3326 = vrot.lane.b32.xlu1 %v8250_v60, %s8724_s27  ;;  %v8280_v6 = vpack.c.bf16 %v3704_v19, %v3703_v31  ;;  %v3705_v60 = vmul.f32 %v9922_v11, %v10000_v10 }
 0x57d   : > { %3328 = vrot.lane.b32.xlu0 %v8251_v23, %s8724_s27  ;;  %v8274_v23 = vpack.c.bf16 %v3593_v53, %v3592_v57  ;;  %v8281_v0 = vpack.c.bf16 %v3705_v60, %v3705_v60 }
 0x57f   : > { %3752 = vrot.lane.b32.xlu1 %v8282_v26, %s8725_s28  ;;  %v3594_v26 = vmul.f32 %v3581_v1, %v10050_v36  ;;  %v3595_v1 = vmul.f32 %v3579_v37, %v10096_v58 }
 0x581   : > { %3754 = vrot.lane.b32.xlu0 %v8283_v50, %s8725_s28  ;;  %v3586_v50 = vmul.f32 %v3579_v37, %v9941_v29  ;;  %v8275_v11 = vpack.c.bf16 %v3594_v26, %v3594_v26 }
 0x583   : > { %3216 = vrot.lane.b32.xlu1 %v10104_v30, %s8720_s19  ;;  %v8270_v27 = vpack.c.bf16 %v3587_v17, %v3586_v50 }
 0x585   : > { %3218 = vrot.lane.b32.xlu0 %v10108_v15, %s8720_s19 }
 0x587   : > { %3840 = vrot.lane.b32.xlu1 %v10104_v30, %s8721_s20 }
 0x589   : > { %3842 = vrot.lane.b32.xlu0 %v10108_v15, %s8721_s20 }
 0x58b   : > { %3444 = vrot.lane.b32.xlu1 %v8260_v55, %s8723_s26  ;;  %v3589_v55 = vmul.f32 %v3579_v37, %v9997_v12 }
 0x58d   : > { %3446 = vrot.lane.b32.xlu0 %v8261_v3, %s8723_s26  ;;  %v8272_v44 = vpack.c.bf16 %v3590_v34, %v3589_v55  ;;  %v3893_v3 = vpop.permute.xlu0 %3892  ;;  %v7762_v34 = vld [vmem:[%s11644_s2 + $0x40] sm:$0xff] }
 0x58e   : > { %v3900_v53 = vmul.f32 %v3893_v3, %v9954_v8  ;;  %v3903_v8 = vmul.f32 %v3893_v3, %v10000_v10  ;;  %v7765_v10 = vld [vmem:[%s11644_s2 + $0x58] sm:$0xff] }
 0x58f   : > { %3744 = vrot.lane.b32.xlu1 %v8278_v33, %s8725_s28  ;;  %v3891_v33 = vpop.permute.xlu1 %3890 }
 0x590   : > { %v3894_v47 = vsel %vm255_vm0, %v3891_v33, %v3893_v3  ;;  %v3904_v31 = vmul.f32 %v3891_v33, %v10045_v21  ;;  %v8295_v57 = vpack.c.bf16 %v3900_v53, %v3900_v53  ;;  %v8297_v26 = vpack.c.bf16 %v3903_v8, %v3903_v8 }
 0x591   : > { %3332 = vrot.lane.b32.xlu0 %v8253_v59, %s8724_s27  ;;  %v8271_v59 = vpack.c.bf16 %v3588_v63, %v3588_v63  ;;  %v3905_v41 = vmul.f32 %v3894_v47, %v10024_v28  ;;  %v3908_v37 = vmul.f32 %v3894_v47, %v10027_v32 }
 0x593   : > { %3330 = vrot.lane.b32.xlu1 %v8252_v16, %s8724_s27  ;;  %v8273_v16 = vpack.c.bf16 %v3591_v49, %v3591_v49 }
 0x595   : > { %3758 = vrot.lane.b32.xlu0 %v8285_v51, %s8725_s28  ;;  %v8298_v51 = vpack.c.bf16 %v3905_v41, %v3904_v31 }
 0x597   : > { %3748 = vrot.lane.b32.xlu1 %v8280_v6, %s8725_s28 }
 0x599   : > { %3746 = vrot.lane.b32.xlu0 %v8279_v35, %s8725_s28 }
 0x59b   : > { %3638 = vrot.lane.b32.xlu1 %v8274_v23, %s8726_s30  ;;  %v3901_v23 = vmul.f32 %v3891_v33, %v9997_v12 }
 0x59d   : > { %3750 = vrot.lane.b32.xlu0 %v8281_v0, %s8725_s28 }
 0x59f   : > { %3630 = vrot.lane.b32.xlu1 %v8270_v27, %s8726_s30 }
 0x5a1   : > { %3640 = vrot.lane.b32.xlu0 %v8275_v11, %s8726_s30 }
 0x5a3   : > { %3634 = vrot.lane.b32.xlu1 %v8272_v44, %s8726_s30 }
 0x5a5   : > { %3644 = vrot.lane.b32.xlu0 %v8277_v7, %s8726_s30 }
 0x5a7   : > { %3524 = vrot.lane.b32.xlu1 %v10055_v20, %s8722_s25  ;;  %v3710_v20 = vmul.f32 %v10088_v39, %v10027_v32  ;;  %v3909_v39 = vmul.f32 %v3893_v3, %v10099_v52  ;;  %v3902_v32 = vmul.f32 %v3894_v47, %v9938_v54  ;;  %v7764_v54 = vld [vmem:[%s11644_s2 + $0x50] sm:$0xff] }
 0x5a9   : > { %3632 = vrot.lane.b32.xlu0 %v8271_v59, %s8726_s30  ;;  %v8284_v28 = vpack.c.bf16 %v3710_v20, %v3709_v18  ;;  %v8301_v6 = vpack.c.bf16 %v3909_v39, %v3909_v39 }
 0x5ab   : > { %3528 = vrot.lane.b32.xlu1 %v10104_v30, %s8722_s25  ;;  %v3906_v30 = vmul.f32 %v3893_v3, %v10050_v36  ;;  %v3899_v36 = vmul.f32 %v3894_v47, %v9934_v62  ;;  %v3907_v62 = vmul.f32 %v3891_v33, %v10096_v58 }
 0x5ad   : > { %3636 = vrot.lane.b32.xlu0 %v8273_v16, %s8726_s30  ;;  %v8299_v19 = vpack.c.bf16 %v3906_v30, %v3906_v30  ;;  %v8300_v35 = vpack.c.bf16 %v3908_v37, %v3907_v62 }
 0x5af   : > { %3950 = vrot.lane.b32.xlu1 %v8298_v51, %s8727_s7 }
 0x5b1   : > { %3526 = vrot.lane.b32.xlu0 %v10059_v13, %s8722_s25  ;;  %v8276_v13 = vpack.c.bf16 %v3596_v61, %v3595_v1 }
 0x5b3   : > { %3756 = vrot.lane.b32.xlu1 %v8284_v28, %s8725_s28 }
 0x5b5   : > { %3530 = vrot.lane.b32.xlu0 %v10108_v15, %s8722_s25  ;;  %v3898_v15 = vmul.f32 %v3891_v33, %v9941_v29 }
 0x5b7   : > { %3516 = vrot.lane.b32.xlu1 %v9952_v42, %s8722_s25  ;;  %v8294_v52 = vpack.c.bf16 %v3899_v36, %v3898_v15 }
 0x5b9   : > { %3952 = vrot.lane.b32.xlu0 %v8299_v19, %s8727_s7 }
 0x5bb   : > { %3642 = vrot.lane.b32.xlu1 %v8276_v13, %s8726_s30 }
 0x5bd   : > { %3956 = vrot.lane.b32.xlu0 %v8301_v6, %s8727_s7 }
 0x5bf   : > { %3520 = vrot.lane.b32.xlu1 %v10005_v25, %s8722_s25  ;;  %v8522_v25 = vld [vmem:[%s11643_s1 + $0x64] ss:$12 sps:$4 sm:$0xff]  }
 0x5c0   : > { %4300 = vmatprep.mubr.bf16.mxu1 %v8522_v25 }
 0x5c1   : > { %3518 = vrot.lane.b32.xlu0 %v9961_v56, %s8722_s25  ;;  %v10203_v42 = vpop.permute.xlu1 %3204 }
 0x5c3   : > { %v10206_v45 = vpop.permute.xlu0 %3206  ;;  %3942 = vrot.lane.b32.xlu1 %v8294_v52, %s8727_s7 }
 0x5c5   : > { %3522 = vrot.lane.b32.xlu0 %v10009_v38, %s8722_s25  ;;  %v10216_v56 = vpop.permute.xlu1 %3828  ;;  %v8296_v38 = vpack.c.bf16 %v3902_v32, %v3901_v23 }
 0x5c6   : > { %v3844_v24 = vrot.slane %v10216_v56, 4 }
 0x5c7   : > { %v10219_v60 = vpop.permute.xlu0 %3830  ;;  %3954 = vrot.lane.b32.xlu1 %v8300_v35, %s8727_s7 }
 0x5c9   : > { %3944 = vrot.lane.b32.xlu0 %v8295_v57, %s8727_s7  ;;  %v10225_v17 = vpop.permute.xlu1 %3432 }
 0x5ca   : > { %v3448_v53 = vrot.slane %v10225_v17, 4 }
 0x5cb   : > { %v3435_v0 = vpop.permute.xlu0 %3434  ;;  %3946 = vrot.lane.b32.xlu1 %v8296_v38, %s8727_s7 }
 0x5cc   : > { %v3449_v15 = vrot.slane %v3435_v0, 4 }
 0x5cd   : > { %3948 = vrot.lane.b32.xlu0 %v8297_v26, %s8727_s7  ;;  %v10232_v50 = vpop.permute.xlu1 %3318 }
 0x5ce   : > { %v3456_v23 = vsel %vm456_vm7, %v3448_v53, %v3449_v15 }
 0x5cf   : > { %v10237_v27 = vpop.permute.xlu0 %3320  ;;  %4044 = vperm.xlu1 %8503, %v7764_v54  }
 0x5d1   : > { %4049 = vperm.xlu0 %8502, %v7765_v10   ;;  %v10242_v11 = vpop.permute.xlu1 %3208 }
 0x5d3   : > { %v10247_v55 = vpop.permute.xlu0 %3210  ;;  %4034 = vperm.xlu1 %8503, %v7762_v34  }
 0x5d5   : > { %4039 = vperm.xlu0 %8502, %v7763_v43   ;;  %v10249_v44 = vpop.permute.xlu1 %3832 }
 0x5d7   : > { %v10251_v3 = vpop.permute.xlu0 %3834 }
 0x5d9   : > { %v3437_v7 = vpop.permute.xlu1 %3436 }
 0x5da   : > { %v3450_v52 = vrot.slane %v3437_v7, 4 }
 0x5db   : > { %v3439_v63 = vpop.permute.xlu0 %3438 }
 0x5dc   : > { %v3451_v13 = vrot.slane %v3439_v63, 4 }
 0x5dd   : > { %v10253_v33 = vpop.permute.xlu1 %3322 }
 0x5de   : > { %v3458_v25 = vsel %vm456_vm7, %v3450_v52, %v3451_v13  ;;  %v3335_v52 = vrot.slane %v10237_v27, 4 }
 0x5df   : > { %v3325_v47 = vpop.permute.xlu0 %3324  ;;  %v3459_v0 = vsel %vm692_vm8, %v3437_v7, %v3458_v25 }
 0x5e0   : > { %v3337_v43 = vrot.slane %v3325_v47, 4  ;;  %v3334_v47 = vrot.slane %v10232_v50, 4 }
 0x5e1   : > { %v10255_v59 = vpop.permute.xlu1 %3212 }
 0x5e3   : > { %v10257_v49 = vpop.permute.xlu0 %3214 }
 0x5e5   : > { %v10259_v41 = vpop.permute.xlu1 %3836 }
 0x5e7   : > { %v10261_v16 = vpop.permute.xlu0 %3838 }
 0x5e9   : > { %v3441_v31 = vpop.permute.xlu1 %3440 }
 0x5ea   : > { %v3452_v37 = vrot.slane %v3441_v31, 4 }
 0x5eb   : > { %v3443_v51 = vpop.permute.xlu0 %3442 }
 0x5ec   : > { %v3453_v6 = vrot.slane %v3443_v51, 4 }
 0x5ed   : > { %v3327_v18 = vpop.permute.xlu1 %3326 }
 0x5ee   : > { %v3460_v35 = vsel %vm456_vm7, %v3452_v37, %v3453_v6  ;;  %v3338_v63 = vrot.slane %v3327_v18, 4  ;;  %v3457_v6 = vsel %vm692_vm8, %v10225_v17, %v3456_v23  ;;  %v3342_v23 = vsel %vm456_vm7, %v3334_v47, %v3335_v52 }
 0x5ef   : > { %v3329_v20 = vpop.permute.xlu0 %3328  ;;  %v3461_v54 = vsel %vm692_vm8, %v3441_v31, %v3460_v35  ;;  %v7785_v53 = vcombine.high %v3457_v6, %v3459_v0  ;;  %v7784_v27 = vcombine.low %v3457_v6, %v3459_v0  ;;  %v3223_v0 = vrot.slane %v10247_v55, 4 }
 0x5f0   : > { %v3339_v38 = vrot.slane %v3329_v20, 4  ;;  %v3336_v20 = vrot.slane %v10253_v33, 4 }
 0x5f1   : > { %v10263_v28 = vpop.permute.xlu1 %3752 }
 0x5f2   : > { %v3346_v37 = vsel %vm456_vm7, %v3338_v63, %v3339_v38  ;;  %v3225_v38 = vrot.slane %v10257_v49, 4  ;;  %v3764_v48 = vrot.slane %v10263_v28, 4 }
 0x5f3   : > { %v10265_v30 = vpop.permute.xlu0 %3754  ;;  %v3347_v35 = vsel %vm575_vm9, %v3327_v18, %v3346_v37  ;;  %v3224_v18 = vrot.slane %v10255_v59, 4 }
 0x5f5   : > { %v10267_v1 = vpop.permute.xlu1 %3216 }
 0x5f7   : > { %v3219_v61 = vpop.permute.xlu0 %3218 }
 0x5f8   : > { %v3227_v25 = vrot.slane %v3219_v61, 4 }
 0x5f9   : > { %v10269_v19 = vpop.permute.xlu1 %3840 }
 0x5fb   : > { %v10271_v39 = vpop.permute.xlu0 %3842 }
 0x5fd   : > { %v3445_v36 = vpop.permute.xlu1 %3444 }
 0x5fe   : > { %v3454_v57 = vrot.slane %v3445_v36, 4 }
 0x5ff   : > { %v3447_v62 = vpop.permute.xlu0 %3446 }
 0x600   : > { %v3455_v32 = vrot.slane %v3447_v62, 4  ;;  %v3344_v62 = vsel %vm456_vm7, %v3336_v20, %v3337_v43  ;;  %v3343_v43 = vsel %vm575_vm9, %v10232_v50, %v3342_v23  ;;  %v3220_v20 = vrot.slane %v10203_v42, 4 }
 0x601   : > { %v10276_v8 = vpop.permute.xlu1 %3744  ;;  %v3345_v61 = vsel %vm575_vm9, %v10253_v33, %v3344_v62  ;;  %v3222_v33 = vrot.slane %v10242_v11, 4 }
 0x602   : > { %v3462_v26 = vsel %vm456_vm7, %v3454_v57, %v3455_v32  ;;  %v7781_v6 = vcombine.high %v3343_v43, %v3345_v61 }
 0x603   : > { %v3463_v10 = vsel %vm692_vm8, %v3445_v36, %v3462_v26  ;;  %v3333_v34 = vpop.permute.xlu0 %3332  ;;  %v3226_v26 = vrot.slane %v10267_v1, 4  ;;  %v3230_v50 = vsel %vm456_vm7, %v3222_v33, %v3223_v0 }
 0x604   : > { %v7786_v51 = vcombine.low %v3461_v54, %v3463_v10  ;;  %v7787_v13 = vcombine.high %v3461_v54, %v3463_v10  ;;  %v3341_v7 = vrot.slane %v3333_v34, 4 }
 0x605   : > { %v3331_v15 = vpop.permute.xlu1 %3330  ;;  %v3234_v34 = vsel %vm456_vm7, %v3226_v26, %v3227_v25 }
 0x606   : > { %4268 = vmatprep.subr.bf16.mxu1 %v7787_v13  ;;  %v3340_v31 = vrot.slane %v3331_v15, 4  ;;  %v3232_v13 = vsel %vm456_vm7, %v3224_v18, %v3225_v38  ;;  %v3235_v55 = vsel %vm458_vm10, %v10267_v1, %v3234_v34  ;;  %v3231_v1 = vsel %vm458_vm10, %v10242_v11, %v3230_v50 }
 0x607   : > { %v10288_v36 = vpop.permute.xlu0 %3758  ;;  %4269 = vmatpush1.bf16.msra.mxu1 %v7786_v51  ;;  %v3221_v51 = vrot.slane %v10206_v45, 4  ;;  %v3233_v45 = vsel %vm458_vm10, %v10255_v59, %v3232_v13  ;;  %v3850_v38 = vrot.slane %v10269_v19, 4  ;;  %v3845_v18 = vrot.slane %v10219_v60, 4 }
 0x608   : > { %v3348_v17 = vsel %vm456_vm7, %v3340_v31, %v3341_v7  ;;  %4270 = vmatprep.subr.bf16.mxu1 %v7785_v53  ;;  %v7779_v31 = vcombine.high %v3233_v45, %v3235_v55  ;;  %v7778_v62 = vcombine.low %v3233_v45, %v3235_v55  ;;  %v3846_v34 = vrot.slane %v10249_v44, 4 }
 0x609   : > { %v3349_v32 = vsel %vm575_vm9, %v3331_v15, %v3348_v17  ;;  %v10295_v57 = vpop.permute.xlu1 %3748  ;;  %v7780_v15 = vcombine.low %v3343_v43, %v3345_v61  ;;  %v3228_v7 = vsel %vm456_vm7, %v3220_v20, %v3221_v51  ;;  %v3847_v61 = vrot.slane %v10251_v3, 4 }
 0x60a   : > { %v7783_v54 = vcombine.high %v3347_v35, %v3349_v32  ;;  %v7782_v49 = vcombine.low %v3347_v35, %v3349_v32  ;;  %v3229_v47 = vsel %vm458_vm10, %v10203_v42, %v3228_v7  ;;  %v3851_v35 = vrot.slane %v10271_v39, 4 }
 0x60b   : > { %v10302_v10 = vpop.permute.xlu0 %3746  ;;  %4271 = vmatpush1.bf16.msra.mxu1 %v7784_v27  ;;  %v7777_v17 = vcombine.high %v3229_v47, %v3231_v1  ;;  %v3117_v27 = vrot.slane %v9928_v22, %v8783_v5  ;;  %v7776_v11 = vcombine.low %v3229_v47, %v3231_v1  ;;  %v3849_v42 = vrot.slane %v10261_v16, 4 }
 0x60c   : > { %4272 = vmatprep.subr.bf16.mxu1 %v7783_v54  ;;  %v3848_v22 = vrot.slane %v10259_v41, 4  ;;  %v3858_v39 = vsel %vm456_vm7, %v3850_v38, %v3851_v35  ;;  %v3854_v2 = vsel %vm456_vm7, %v3846_v34, %v3847_v61  ;;  %v3765_v51 = vrot.slane %v10265_v30, 4 }
 0x60d   : > { %v10309_v63 = vpop.permute.xlu1 %3638  ;;  %v3130_v23 = vmul.f32 %v10096_v58, %v3117_v27  ;;  %v3128_v54 = vmul.f32 %v10045_v21, %v3117_v27  ;;  %v3126_v16 = vmul.f32 %v9997_v12, %v3117_v27  ;;  %v3859_v3 = vsel %vm1096_vm11, %v10269_v19, %v3858_v39 }
 0x60e   : > { %v3856_v21 = vsel %vm456_vm7, %v3848_v22, %v3849_v42  ;;  %v3852_v19 = vsel %vm456_vm7, %v3844_v24, %v3845_v18  ;;  %v3762_v30 = vrot.slane %v10295_v57, 4  ;;  %v3772_v20 = vsel %vm456_vm7, %v3764_v48, %v3765_v51 }
 0x60f   : > { %v10316_v52 = vpop.permute.xlu0 %3750  ;;  %4273 = vmatpush1.bf16.msra.mxu1 %v7782_v49  ;;  %v8448_v58 = vpack.c.bf16 %v3130_v23, %v3128_v54  ;;  %v3124_v49 = vmul.f32 %v9941_v29, %v3117_v27  ;;  %v3857_v12 = vsel %vm1096_vm11, %v10259_v41, %v3856_v21  ;;  %v3855_v29 = vsel %vm1096_vm11, %v10249_v44, %v3854_v2 }
 0x610   : > { %4274 = vmatprep.subr.bf16.mxu1 %v7781_v6  ;;  %v7803_v33 = vcombine.high %v3857_v12, %v3859_v3  ;;  %v3763_v13 = vrot.slane %v10316_v52, 4  ;;  %v3853_v14 = vsel %vm1096_vm11, %v10216_v56, %v3852_v19  ;;  %v3761_v41 = vrot.slane %v10302_v10, 4 }
 0x611   : > { %v10322_v37 = vpop.permute.xlu1 %3630  ;;  %v3767_v44 = vrot.slane %v10288_v36, 4  ;;  %v7801_v50 = vcombine.high %v3853_v14, %v3855_v29  ;;  %v3773_v10 = vsel %vm1011_vm12, %v10263_v28, %v3772_v20  ;;  %v3650_v35 = vrot.slane %v10309_v63, 4 }
 0x612   : > { %v3770_v45 = vsel %vm456_vm7, %v3762_v30, %v3763_v13  ;;  %v3646_v18 = vrot.slane %v10322_v37, 4 }
 0x613   : > { %v10327_v53 = vpop.permute.xlu0 %3640  ;;  %4275 = vmatpush1.bf16.msra.mxu1 %v7780_v15  ;;  %v3760_v15 = vrot.slane %v10276_v8, 4  ;;  %v3771_v27 = vsel %vm1011_vm12, %v10295_v57, %v3770_v45 }
 0x614   : > { %4276 = vmatprep.subr.bf16.mxu1 %v7779_v31  ;;  %v7800_v31 = vcombine.low %v3853_v14, %v3855_v29  ;;  %v3651_v47 = vrot.slane %v10327_v53, 4 }
 0x615   : > { %v10331_v25 = vpop.permute.xlu1 %3634  ;;  %v3768_v1 = vsel %vm456_vm7, %v3760_v15, %v3761_v41 }
 0x616   : > { %v3769_v28 = vsel %vm1011_vm12, %v10276_v8, %v3768_v1  ;;  %v3658_v42 = vsel %vm456_vm7, %v3650_v35, %v3651_v47  ;;  %v3648_v22 = vrot.slane %v10331_v25, 4 }
 0x617   : > { %v10333_v59 = vpop.permute.xlu0 %3644  ;;  %4277 = vmatpush1.bf16.msra.mxu1 %v7778_v62  ;;  %v7797_v54 = vcombine.high %v3769_v28, %v3771_v27  ;;  %v7796_v21 = vcombine.low %v3769_v28, %v3771_v27 }
 0x618   : > { %4278 = vmatprep.subr.bf16.mxu1 %v7777_v17  ;;  %v3653_v61 = vrot.slane %v10333_v59, 4 }
 0x619   : > { %v10338_v32 = vpop.permute.xlu1 %3524 }
 0x61b   : > { %v10343_v26 = vpop.permute.xlu0 %3632  ;;  %4279 = vmatpush1.bf16.msra.mxu1 %v7776_v11 }
 0x61c   : > { %4280 = vmatprep.subr.bf16.mxu1 %v8449_v9  ;;  %v8446_v9 = vpack.c.bf16 %v3126_v16, %v3124_v49  ;;  %v3647_v57 = vrot.slane %v10343_v26, 4 }
 0x61d   : > { %v10352_v0 = vpop.permute.xlu1 %3528 }
 0x61e   : > { %v3654_v24 = vsel %vm456_vm7, %v3646_v18, %v3647_v57 }
 0x61f   : > { %v3637_v43 = vpop.permute.xlu0 %3636  ;;  %4281 = vmatpush1.bf16.msra.mxu1 %v8448_v58 }
 0x620   : > { %4282 = vmatprep.subr.bf16.mxu1 %v8447_v40  ;;  %v7802_v40 = vcombine.low %v3857_v12, %v3859_v3  ;;  %v3649_v23 = vrot.slane %v3637_v43, 4  ;;  %v3538_v3 = vrot.slane %v10352_v0, 4  ;;  %v3659_v43 = vsel %vm894_vm13, %v10309_v63, %v3658_v42 }
 0x621   : > { %v10368_v60 = vpop.permute.xlu1 %3950  ;;  %v3536_v12 = vrot.slane %v10338_v32, 4 }
 0x622   : > { %v3656_v34 = vsel %vm456_vm7, %v3648_v22, %v3649_v23  ;;  %v3962_v41 = vrot.slane %v10368_v60, 4 }
 0x623   : > { %v10375_v6 = vpop.permute.xlu0 %3526  ;;  %4283 = vmatpush1.bf16.msra.mxu1 %v8446_v9  ;;  %v3657_v51 = vsel %vm894_vm13, %v10331_v25, %v3656_v34  ;;  %v8523_v34 = vld [vmem:[%s11643_s1 + $0x68] ss:$12 sps:$4 sm:$0xff]  }
 0x624   : > { %4284 = vmatprep.subr.bf16.mxu1 %v7803_v33  ;;  %v3537_v59 = vrot.slane %v10375_v6, 4  ;;  %v3655_v6 = vsel %vm894_vm13, %v10322_v37, %v3654_v24 }
 0x625   : > { %v3757_v55 = vpop.permute.xlu1 %3756  ;;  %v7793_v14 = vcombine.high %v3655_v6, %v3657_v51  ;;  %v7792_v37 = vcombine.low %v3655_v6, %v3657_v51 }
 0x626   : > { %v3766_v52 = vrot.slane %v3757_v55, 4  ;;  %v3544_v33 = vsel %vm456_vm7, %v3536_v12, %v3537_v59 }
 0x627   : > { %v3531_v7 = vpop.permute.xlu0 %3530  ;;  %4285 = vmatpush2.bf16.msra.mxu1 %v7802_v40 }
 0x628   : > { %v3774_v56 = vsel %vm456_vm7, %v3766_v52, %v3767_v44  ;;  %4286 = vmatprep.subr.bf16.mxu1 %v7801_v50  ;;  %v3539_v58 = vrot.slane %v3531_v7, 4  ;;  %v3545_v44 = vsel %vm777_vm15, %v10338_v32, %v3544_v33 }
 0x629   : > { %v3775_v36 = vsel %vm1011_vm12, %v3757_v55, %v3774_v56  ;;  %v10392_v62 = vpop.permute.xlu1 %3516 }
 0x62a   : > { %v7799_v17 = vcombine.high %v3773_v10, %v3775_v36  ;;  %v7798_v53 = vcombine.low %v3773_v10, %v3775_v36  ;;  %v3546_v9 = vsel %vm456_vm7, %v3538_v3, %v3539_v58  ;;  %v3532_v25 = vrot.slane %v10392_v62, 4  ;;  %v8524_v58 = vld [vmem:[%s11643_s1 + $0x7c] ss:$12 sps:$4 sm:$0xff]  }
 0x62b   : > { %v3953_v11 = vpop.permute.xlu0 %3952  ;;  %4287 = vmatpush2.bf16.msra.mxu1 %v7800_v31  ;;  %v3547_v40 = vsel %vm777_vm15, %v10352_v0, %v3546_v9 }
 0x62c   : > { %4288 = vmatprep.subr.bf16.mxu1 %v7799_v17  ;;  %v3963_v29 = vrot.slane %v3953_v11, 4  ;;  %v7791_v15 = vcombine.high %v3545_v44, %v3547_v40  ;;  %v7790_v17 = vcombine.low %v3545_v44, %v3547_v40 }
 0x62d   : > { %v3643_v38 = vpop.permute.xlu1 %3642 }
 0x62e   : > { %v3652_v39 = vrot.slane %v3643_v38, 4  ;;  %v3970_v52 = vsel %vm456_vm7, %v3962_v41, %v3963_v29 }
 0x62f   : > { %v3957_v16 = vpop.permute.xlu0 %3956  ;;  %4289 = vmatpush2.bf16.msra.mxu1 %v7798_v53  ;;  %v3971_v32 = vsel %vm1212_vm14, %v10368_v60, %v3970_v52 }
 0x630   : > { %v3660_v8 = vsel %vm456_vm7, %v3652_v39, %v3653_v61  ;;  %4290 = vmatprep.subr.bf16.mxu1 %v7797_v54  ;;  %v3965_v45 = vrot.slane %v3957_v16, 4 }
 0x631   : > { %v3661_v26 = vsel %vm894_vm13, %v3643_v38, %v3660_v8  ;;  %v3521_v49 = vpop.permute.xlu1 %3520  ;;  %v8526_v8 = vld [vmem:[%s11643_s1 + $0x78] ss:$12 sps:$4 sm:$0xff]  }
 0x632   : > { %v7795_v2 = vcombine.high %v3659_v43, %v3661_v26  ;;  %v7794_v63 = vcombine.low %v3659_v43, %v3661_v26  ;;  %v3534_v55 = vrot.slane %v3521_v49, 4 }
 0x633   : > { %v3519_v19 = vpop.permute.xlu0 %3518  ;;  %4291 = vmatpush2.bf16.msra.mxu1 %v7796_v21  ;;  %v8527_v21 = vld [vmem:[%s11643_s1 + $0x80] ss:$12 sps:$4 sm:$0xff]  }
 0x634   : > { %4292 = vmatprep.subr.bf16.mxu1 %v7795_v2  ;;  %v3533_v48 = vrot.slane %v3519_v19, 4 }
 0x635   : > { %v3943_v13 = vpop.permute.xlu1 %3942 }
 0x636   : > { %v3540_v0 = vsel %vm456_vm7, %v3532_v25, %v3533_v48  ;;  %v3958_v11 = vrot.slane %v3943_v13, 4 }
 0x637   : > { %v3523_v30 = vpop.permute.xlu0 %3522  ;;  %4293 = vmatpush2.bf16.msra.mxu1 %v7794_v63  ;;  %v3541_v35 = vsel %vm777_vm15, %v10392_v62, %v3540_v0  ;;  %v8520_v62 = vld [vmem:[%s11643_s1 + $0x60] ss:$12 sps:$4 sm:$0xff]  }
 0x638   : > { %v3535_v20 = vrot.slane %v3523_v30, 4  ;;  %4294 = vmatprep.subr.bf16.mxu1 %v7793_v14 }
 0x639   : > { %v3955_v50 = vpop.permute.xlu1 %3954 }
 0x63a   : > { %v3542_v7 = vsel %vm456_vm7, %v3534_v55, %v3535_v20  ;;  %v3964_v31 = vrot.slane %v3955_v50, 4 }
 0x63b   : > { %v3945_v56 = vpop.permute.xlu0 %3944  ;;  %4295 = vmatpush2.bf16.msra.mxu1 %v7792_v37  ;;  %v3543_v10 = vsel %vm777_vm15, %v3521_v49, %v3542_v7 }
 0x63c   : > { %v3959_v1 = vrot.slane %v3945_v56, 4  ;;  %v3972_v47 = vsel %vm456_vm7, %v3964_v31, %v3965_v45  ;;  %4296 = vmatprep.subr.bf16.mxu1 %v7791_v15  ;;  %v7789_v28 = vcombine.high %v3541_v35, %v3543_v10  ;;  %v7788_v60 = vcombine.low %v3541_v35, %v3543_v10 }
 0x63d   : > { %v3973_v36 = vsel %vm1212_vm14, %v3955_v50, %v3972_v47  ;;  %v3947_v27 = vpop.permute.xlu1 %3946 }
 0x63e   : > { %v7806_v23 = vcombine.low %v3971_v32, %v3973_v36  ;;  %v7807_v42 = vcombine.high %v3971_v32, %v3973_v36  ;;  %v3966_v38 = vsel %vm456_vm7, %v3958_v11, %v3959_v1  ;;  %v3960_v61 = vrot.slane %v3947_v27, 4 }
 0x63f   : > { %v3949_v53 = vpop.permute.xlu0 %3948  ;;  %4297 = vmatpush2.bf16.msra.mxu1 %v7790_v17  ;;  %v3967_v57 = vsel %vm1212_vm14, %v3943_v13, %v3966_v38 }
 0x640   : > { %v3961_v54 = vrot.slane %v3949_v53, 4  ;;  %4298 = vmatprep.subr.bf16.mxu1 %v7789_v28  ;;  %4333 = vmatprep.subr.bf16.mxu0 %v7807_v42 }
 0x641   : > { %4334 = vmatpush1.bf16.msra.mxu0 %v7806_v23 }
 0x642   : > { %v3968_v22 = vsel %vm456_vm7, %v3960_v61, %v3961_v54 }
 0x643   : > { %v3969_v39 = vsel %vm1212_vm14, %v3947_v27, %v3968_v22  ;;  %4299 = vmatpush2.bf16.msra.mxu1 %v7788_v60 }
 0x644   : > { %v7804_v16 = vcombine.low %v3967_v57, %v3969_v39  ;;  %v7805_v18 = vcombine.high %v3967_v57, %v3969_v39 }
 0x646   : > { %4301 = vmatmul.mubr.bf16.vlgmr.msra.gmra.mxu1 %v8520_v62  ;;  %4335 = vmatprep.subr.bf16.mxu0 %v7805_v18 }
 0x647   : > { %4336 = vmatpush1.bf16.msra.mxu0 %v7804_v16  ;;  %4310 = vmatprep.mubr.bf16.mxu1 %v8524_v58 }
 0x64a   : > { %7808 = vmatmul.mubr.msk.bf16.vlgmr.msra.gmra.mxu0 %vm937_vm5, %v8523_v34  ;;  %v4045_v3 = vpop.permute.xlu1 %4044 }
 0x64b   : > { %4363 = vmatprep.mubr.bf16.mxu0 %v8728_v46 }
 0x64c   : > { %v4050_v59 = vpop.permute.xlu0 %4049 }
 0x64e   : > { %4311 = vmatmul.mubr.bf16.gmra.mxu1 %v8526_v8  ;;  %v4035_v26 = vpop.permute.xlu1 %4034 }
 0x650   : > { %v4040_v9 = vpop.permute.xlu0 %4039 }
 0x652   : > { %7809 = vmatmul.mubr.msk.bf16.gmra.mxu0 %vm937_vm5, %v8527_v21 }
 0x706   : > { %v4302_v43 = vpop.f32.mrf.mxu1 }
 0x707   : > { %v4303_v24 = vadd.f32 %v4302_v43, %v4035_v26 }
 0x708   : > { %v4304_v49 = vpop.f32.mrf.mxu1 }
 0x709   : > { %v4305_v19 = vadd.f32 %v4304_v49, %v4035_v26 }
 0x70a   : > { %v4306_v2 = vpop.f32.mrf.mxu1  ;;  %v4355_v12 = vpop.f32.mrf.mxu0 }
 0x70b   : > { %v10457_v51 = vadd.f32 %v4355_v12, %v4303_v24  ;;  %v4307_v63 = vadd.f32 %v4306_v2, %v4040_v9 }
 0x70c   : > { %v4308_v33 = vpop.f32.mrf.mxu1  ;;  %v4357_v29 = vpop.f32.mrf.mxu0 }
 0x70d   : > { %v7810_v13 = vmul.f32 -1.442695, %v10457_v51  ;;  %v10460_v6 = vadd.f32 %v4357_v29, %v4305_v19  ;;  %v4309_v40 = vadd.f32 %v4308_v33, %v4040_v9  ;;  %v7839_v29 = vld [vmem:[%s11647_s5 + $0x6] sm:$0x3] }
 0x70e   : > { %v4312_v48 = vpop.f32.mrf.mxu1  ;;  %v4359_v14 = vpop.f32.mrf.mxu0 }
 0x70f   : > { %8609 = vpow2.f32 %v7810_v13  ;;  %v7811_v41 = vmul.f32 -1.442695, %v10460_v6  ;;  %v4360_v30 = vadd.f32 %v4359_v14, %v4307_v63  ;;  %v4313_v20 = vadd.f32 %v4312_v48, %v4045_v3  ;;  %v7830_v14 = vld [vmem:[%s11647_s5 + $0x4] sm:$0x3] }
 0x710   : > { %v4314_v25 = vpop.f32.mrf.mxu1  ;;  %v4361_v55 = vpop.f32.mrf.mxu0  ;;  %v4753_v48 = vrot.slane %v7839_v29, %v8783_v5 }
 0x711   : > { %8611 = vpow2.f32 %v7811_v41  ;;  %v7812_v44 = vmul.f32 -1.442695, %v4360_v30  ;;  %v4362_v52 = vadd.f32 %v4361_v55, %v4309_v40  ;;  %v4315_v15 = vadd.f32 %v4314_v25, %v4045_v3 }
 0x712   : > { %v4316_v37 = vpop.f32.mrf.mxu1  ;;  %v4365_v50 = vpop.f32.mrf.mxu0  ;;  %v4757_v40 = vrot.slane %v7839_v29, %v8781_v4  ;;  %v4639_v41 = vrot.slane %v7830_v14, %v8783_v5  ;;  %v4643_v25 = vrot.slane %v7830_v14, %v8781_v4 }
 0x713   : > { %8613 = vpow2.f32 %v7812_v44  ;;  %v7813_v45 = vmul.f32 -1.442695, %v4362_v52  ;;  %v4366_v0 = vadd.f32 %v4365_v50, %v4313_v20  ;;  %v4317_v56 = vadd.f32 %v4316_v37, %v4050_v59  ;;  %v7856_v20 = vld [vmem:[%s11647_s5 + $0xa] sm:$0x3]  ;;  %v7882_v37 = vld [vmem:[%s11647_s5 + $0x10] sm:$0x3] }
 0x714   : > { %v4318_v7 = vpop.f32.mrf.mxu1  ;;  %v4367_v31 = vpop.f32.mrf.mxu0  ;;  %v4955_v50 = vrot.slane %v7856_v20, %v8781_v4 }
 0x715   : > { %8615 = vpow2.f32 %v7813_v45  ;;  %v7814_v10 = vmul.f32 -1.442695, %v4366_v0  ;;  %v4368_v1 = vadd.f32 %v4367_v31, %v4315_v15  ;;  %v4319_v32 = vadd.f32 %v4318_v7, %v4050_v59  ;;  %v10512_v7 = vld [vmem:[%s11647_s5] sm:$0x3] }
 0x716   : > { %v4369_v47 = vpop.f32.mrf.mxu0  ;;  %v5263_v15 = vrot.slane %v7882_v37, %v8783_v5  ;;  %v5267_v45 = vrot.slane %v7882_v37, %v8781_v4 }
 0x717   : > { %8617 = vpow2.f32 %v7814_v10  ;;  %v7815_v36 = vmul.f32 -1.442695, %v4368_v1  ;;  %v4370_v17 = vadd.f32 %v4369_v47, %v4317_v56  ;;  %v4499_v10 = vrot.slane %v10512_v7, %v8781_v4 }
 0x718   : > { %v4371_v27 = vpop.f32.mrf.mxu0 }
 0x719   : > { %8619 = vpow2.f32 %v7815_v36  ;;  %v7816_v35 = vmul.f32 -1.442695, %v4370_v17  ;;  %v4372_v11 = vadd.f32 %v4371_v27, %v4319_v32 }
 0x71b   : > { %8621 = vpow2.f32 %v7816_v35  ;;  %v7817_v23 = vmul.f32 -1.442695, %v4372_v11 }
 0x71c   : > { %v8610_v28 = vpop.eup %8609 }
 0x71d   : > { %v4398_v42 = vadd.f32 1.0, %v8610_v28  ;;  %8623 = vpow2.f32 %v7817_v23 }
 0x71e   : > { %v8612_v53 = vpop.eup %8611 }
 0x71f   : > { %8625 = vrcp.f32 %v4398_v42  ;;  %v4399_v38 = vadd.f32 1.0, %v8612_v53 }
 0x720   : > { %v8614_v54 = vpop.eup %8613 }
 0x721   : > { %8627 = vrcp.f32 %v4399_v38  ;;  %v4400_v61 = vadd.f32 1.0, %v8614_v54 }
 0x722   : > { %v8616_v60 = vpop.eup %8615 }
 0x723   : > { %8629 = vrcp.f32 %v4400_v61  ;;  %v4401_v22 = vadd.f32 1.0, %v8616_v60 }
 0x724   : > { %v8618_v62 = vpop.eup %8617 }
 0x725   : > { %8631 = vrcp.f32 %v4401_v22  ;;  %v4402_v57 = vadd.f32 1.0, %v8618_v62 }
 0x726   : > { %v8620_v39 = vpop.eup %8619 }
 0x727   : > { %8633 = vrcp.f32 %v4402_v57  ;;  %v4403_v58 = vadd.f32 1.0, %v8620_v39 }
 0x728   : > { %v8622_v16 = vpop.eup %8621 }
 0x729   : > { %8635 = vrcp.f32 %v4403_v58  ;;  %v4404_v18 = vadd.f32 1.0, %v8622_v16 }
 0x72a   : > { %v8624_v34 = vpop.eup %8623 }
 0x72b   : > { %8637 = vrcp.f32 %v4404_v18  ;;  %v4405_v8 = vadd.f32 1.0, %v8624_v34 }
 0x72c   : > { %v8626_v21 = vpop.eup %8625 }
 0x72d   : > { %v4422_v3 = vmul.f32 %v8626_v21, %v10457_v51  ;;  %8639 = vrcp.f32 %v4405_v8 }
 0x72e   : > { %v8628_v59 = vpop.eup %8627 }
 0x72f   : > { %v4423_v43 = vmul.f32 %v8628_v59, %v10460_v6  ;;  %4438 = vrot.lane.b32.xlu1 %v4422_v3, %s8715_s8 }
 0x730   : > { %v8630_v26 = vpop.eup %8629 }
 0x731   : > { %v4424_v49 = vmul.f32 %v8630_v26, %v4360_v30  ;;  %4440 = vrot.lane.b32.xlu0 %v4423_v43, %s8715_s8  ;;  %v7865_v30 = vld [vmem:[%s11647_s5 + $0xc] sm:$0x3] }
 0x732   : > { %v8632_v24 = vpop.eup %8631  ;;  %v5065_v55 = vrot.slane %v7865_v30, %v8783_v5  ;;  %v5069_v44 = vrot.slane %v7865_v30, %v8781_v4 }
 0x733   : > { %v4425_v2 = vmul.f32 %v8632_v24, %v4362_v52  ;;  %4442 = vrot.lane.b32.xlu1 %v4424_v49, %s8715_s8  ;;  %v4951_v52 = vrot.slane %v7856_v20, %v8783_v5 }
 0x734   : > { %v8634_v12 = vpop.eup %8633 }
 0x735   : > { %v4426_v9 = vmul.f32 %v8634_v12, %v4366_v0  ;;  %4444 = vrot.lane.b32.xlu0 %v4425_v2, %s8715_s8 }
 0x736   : > { %v8636_v19 = vpop.eup %8635 }
 0x737   : > { %v4427_v51 = vmul.f32 %v8636_v19, %v4368_v1  ;;  %4446 = vrot.lane.b32.xlu1 %v4426_v9, %s8715_s8 }
 0x738   : > { %v8638_v33 = vpop.eup %8637 }
 0x739   : > { %v4428_v63 = vmul.f32 %v8638_v33, %v4370_v17  ;;  %4448 = vrot.lane.b32.xlu0 %v4427_v51, %s8715_s8 }
 0x73a   : > { %v8640_v13 = vpop.eup %8639 }
 0x73b   : > { %v4429_v6 = vmul.f32 %v8640_v13, %v4372_v11  ;;  %4450 = vrot.lane.b32.xlu1 %v4428_v63, %s8715_s8 }
 0x73d   : > { %4452 = vrot.lane.b32.xlu0 %v4429_v6, %s8715_s8 }
 0x73f   : > { %4758 = vrot.lane.b32.xlu1 %v4753_v48, %s8714_s29 }
 0x741   : > { %4760 = vrot.lane.b32.xlu0 %v4757_v40, %s8714_s29 }
 0x743   : > { %4644 = vrot.lane.b32.xlu1 %v4639_v41, %s8716_s11 }
 0x745   : > { %4646 = vrot.lane.b32.xlu0 %v4643_v25, %s8716_s11 }
 0x747   : > { %5070 = vrot.lane.b32.xlu1 %v5065_v55, %s8717_s14 }
 0x749   : > { %5072 = vrot.lane.b32.xlu0 %v5069_v44, %s8717_s14 }
 0x74b   : > { %4956 = vrot.lane.b32.xlu1 %v4951_v52, %s8718_s17 }
 0x74d   : > { %4958 = vrot.lane.b32.xlu0 %v4955_v50, %s8718_s17 }
 0x74f   : > { %5268 = vrot.lane.b32.xlu1 %v5263_v15, %s8719_s18 }
 0x751   : > { %5270 = vrot.lane.b32.xlu0 %v5267_v45, %s8719_s18 }
 0x7a1   : > { %v4439_v0 = vpop.permute.xlu1 %4438 }
 0x7a2   : > { %4470 = vst.msk [vmem:[#allocation2] sm:$0xff] %vm319_vm2, %v4439_v0 }
 0x7a3   : > { %v4441_v31 = vpop.permute.xlu0 %4440 }
 0x7a4   : > { %4472 = vst.msk [vmem:[#allocation2 + $0x10] sm:$0xff] %vm302_vm1, %v4441_v31  ;;  %v10518_v1 = vsel %vm302_vm1, %v4439_v0, %v4441_v31 }
 0x7a5   : > { %v4443_v56 = vpop.permute.xlu1 %4442  ;;  %v10528_v27 = vmul.f32 %v4499_v10, %v10518_v1 }
 0x7a6   : > { %4473 = vst.msk [vmem:[#allocation2 + $0x18] sm:$0xff] %vm319_vm2, %v4443_v56 }
 0x7a7   : > { %v4445_v47 = vpop.permute.xlu0 %4444 }
 0x7a8   : > { %v10522_v32 = vsel %vm302_vm1, %v4443_v56, %v4445_v47  ;;  %4475 = vst.msk [vmem:[#allocation2 + $0x28] sm:$0xff] %vm302_vm1, %v4445_v47 }
 0x7a9   : > { %v4447_v36 = vpop.permute.xlu1 %4446  ;;  %v10525_v17 = vld [vmem:[#allocation2] sm:$0xff]  ;;  %v10531_v35 = vmul.f32 %v4499_v10, %v10522_v32 }
 0x7aa   : > { %4476 = vst.msk [vmem:[#allocation2 + $0x30] sm:$0xff] %vm319_vm2, %v4447_v36  ;;  %v10536_v11 = vpack.c.bf16 %v10518_v1, %v10525_v17 }
 0x7ab   : > { %v4449_v23 = vpop.permute.xlu0 %4448  ;;  %v10538_v28 = vld [vmem:[#allocation2 + $0x10] sm:$0xff]  ;;  %v8451_v42 = vpack.c.bf16 %v10531_v35, %v10528_v27 }
 0x7ac   : > { %4478 = vst.msk [vmem:[#allocation2 + $0x40] sm:$0xff] %vm302_vm1, %v4449_v23  ;;  %v10545_v53 = vpack.c.bf16 %v10538_v28, %v10538_v28  ;;  %4582 = vrot.lane.b32.xlu1 %v10536_v11, %s8720_s19  ;;  %v10550_v54 = vsel %vm302_vm1, %v4447_v36, %v4449_v23 }
 0x7ad   : > { %v4451_v38 = vpop.permute.xlu1 %4450  ;;  %v10562_v62 = vmul.f32 %v4499_v10, %v10550_v54  ;;  %v10602_v51 = vld [vmem:[#allocation2 + $0x18] sm:$0xff] }
 0x7ae   : > { %4479 = vst.msk [vmem:[#allocation2 + $0x48] sm:$0xff] %vm319_vm2, %v4451_v38  ;;  %4584 = vrot.lane.b32.xlu0 %v10545_v53, %s8720_s19  ;;  %v10613_v63 = vpack.c.bf16 %v10522_v32, %v10602_v51 }
 0x7af   : > { %v4453_v61 = vpop.permute.xlu0 %4452  ;;  %v10599_v19 = vld [vmem:[#allocation2 + $0x28] sm:$0xff] }
 0x7b0   : > { %v10556_v60 = vsel %vm302_vm1, %v4451_v38, %v4453_v61  ;;  %4481 = vst.msk [vmem:[#allocation2 + $0x58] sm:$0xff] %vm302_vm1, %v4453_v61  ;;  %v10607_v33 = vpack.c.bf16 %v10599_v19, %v10599_v19 }
 0x7b1   : > { %v10559_v22 = vpop.permute.xlu1 %4758  ;;  %v10565_v57 = vmul.f32 %v4499_v10, %v10556_v60  ;;  %v10634_v44 = vld [vmem:[#allocation2 + $0x30] sm:$0xff] }
 0x7b2   : > { %v4766_v34 = vmul.f32 %v10559_v22, %v10525_v17  ;;  %v4769_v6 = vmul.f32 %v10559_v22, %v10602_v51  ;;  %v10643_v37 = vpack.c.bf16 %v10550_v54, %v10634_v44  ;;  %v4772_v45 = vmul.f32 %v10559_v22, %v10634_v44 }
 0x7b3   : > { %v10567_v39 = vpop.permute.xlu0 %4760  ;;  %v8453_v58 = vpack.c.bf16 %v10565_v57, %v10562_v62  ;;  %v10631_v20 = vld [vmem:[#allocation2 + $0x40] sm:$0xff] }
 0x7b4   : > { %v10574_v16 = vsel %vm618_vm3, %v10559_v22, %v10567_v39  ;;  %v4768_v18 = vmul.f32 %v10567_v39, %v10538_v28  ;;  %v4771_v29 = vmul.f32 %v10567_v39, %v10599_v19  ;;  %v10639_v52 = vpack.c.bf16 %v10631_v20, %v10631_v20 }
 0x7b5   : > { %v4767_v8 = vmul.f32 %v10574_v16, %v10518_v1  ;;  %v10582_v21 = vpop.permute.xlu1 %4644  ;;  %v4770_v13 = vmul.f32 %v10574_v16, %v10522_v32  ;;  %v4774_v50 = vmul.f32 %v10567_v39, %v10631_v20  ;;  %v4773_v15 = vmul.f32 %v10574_v16, %v10550_v54  ;;  %v10670_v61 = vld [vmem:[#allocation2 + $0x48] sm:$0xff] }
 0x7b6   : > { %v8323_v3 = vpack.c.bf16 %v4768_v18, %v4768_v18  ;;  %v4652_v24 = vmul.f32 %v10582_v21, %v10525_v17  ;;  %v8325_v48 = vpack.c.bf16 %v4771_v29, %v4771_v29  ;;  %v4655_v30 = vmul.f32 %v10582_v21, %v10602_v51 }
 0x7b7   : > { %v10584_v59 = vpop.permute.xlu0 %4646  ;;  %v8322_v43 = vpack.c.bf16 %v4767_v8, %v4766_v34  ;;  %v8324_v40 = vpack.c.bf16 %v4770_v13, %v4769_v6  ;;  %v8327_v0 = vpack.c.bf16 %v4774_v50, %v4774_v50  ;;  %v8326_v56 = vpack.c.bf16 %v4773_v15, %v4772_v45  ;;  %v10667_v38 = vld [vmem:[#allocation2 + $0x58] sm:$0xff] }
 0x7b8   : > { %v10589_v26 = vsel %vm501_vm4, %v10582_v21, %v10584_v59  ;;  %4812 = vrot.lane.b32.xlu0 %v8323_v3, %s8723_s26  ;;  %v4654_v49 = vmul.f32 %v10584_v59, %v10538_v28  ;;  %v4657_v14 = vmul.f32 %v10584_v59, %v10599_v19  ;;  %v4660_v31 = vmul.f32 %v10584_v59, %v10631_v20 }
 0x7b9   : > { %4810 = vrot.lane.b32.xlu1 %v8322_v43, %s8723_s26  ;;  %v4653_v2 = vmul.f32 %v10589_v26, %v10518_v1  ;;  %v4656_v41 = vmul.f32 %v10589_v26, %v10522_v32  ;;  %v4659_v10 = vmul.f32 %v10589_v26, %v10550_v54  ;;  %v4658_v47 = vmul.f32 %v10582_v21, %v10634_v44 }
 0x7ba   : > { %v8315_v12 = vpack.c.bf16 %v4654_v49, %v4654_v49  ;;  %v8317_v25 = vpack.c.bf16 %v4657_v14, %v4657_v14  ;;  %v8319_v36 = vpack.c.bf16 %v4660_v31, %v4660_v31  ;;  %v10675_v18 = vpack.c.bf16 %v10667_v38, %v10667_v38 }
 0x7bb   : > { %v8314_v9 = vpack.c.bf16 %v4653_v2, %v4652_v24  ;;  %v8316_v55 = vpack.c.bf16 %v4656_v41, %v4655_v30  ;;  %v8318_v23 = vpack.c.bf16 %v4659_v10, %v4658_v47  ;;  %v10679_v34 = vpack.c.bf16 %v10556_v60, %v10670_v61 }
 0x7bc   : > { %4698 = vrot.lane.b32.xlu0 %v8315_v12, %s8724_s27  ;;  %v4777_v8 = vmul.f32 %v10567_v39, %v10667_v38  ;;  %v4775_v3 = vmul.f32 %v10559_v22, %v10670_v61  ;;  %v4776_v43 = vmul.f32 %v10574_v16, %v10556_v60  ;;  %v4663_v24 = vmul.f32 %v10584_v59, %v10667_v38  ;;  %v5073_v16 = vpop.permute.xlu0 %5072 }
 0x7bd   : > { %4696 = vrot.lane.b32.xlu1 %v8314_v9, %s8724_s27  ;;  %v4662_v22 = vmul.f32 %v10589_v26, %v10556_v60  ;;  %v4661_v12 = vmul.f32 %v10582_v21, %v10670_v61  ;;  %v5071_v9 = vpop.permute.xlu1 %5070  ;;  %v5086_v26 = vmul.f32 %v5073_v16, %v10631_v20  ;;  %v5083_v10 = vmul.f32 %v5073_v16, %v10599_v19 }
 0x7be   : > { %v8329_v49 = vpack.c.bf16 %v4777_v8, %v4777_v8  ;;  %v8328_v2 = vpack.c.bf16 %v4776_v43, %v4775_v3  ;;  %v8321_v39 = vpack.c.bf16 %v4663_v24, %v4663_v24  ;;  %v5074_v29 = vsel %vm937_vm5, %v5071_v9, %v5073_v16 }
 0x7bf   : > { %v8320_v59 = vpack.c.bf16 %v4662_v22, %v4661_v12  ;;  %v5085_v13 = vmul.f32 %v5074_v29, %v10550_v54  ;;  %v5084_v21 = vmul.f32 %v5071_v9, %v10634_v44  ;;  %v8351_v6 = vpack.c.bf16 %v5086_v26, %v5086_v26 }
 0x7c0   : > { %4588 = vrot.lane.b32.xlu0 %v10607_v33, %s8720_s19  ;;  %v4959_v41 = vpop.permute.xlu0 %4958  ;;  %v5078_v30 = vmul.f32 %v5071_v9, %v10525_v17  ;;  %v5082_v45 = vmul.f32 %v5074_v29, %v10522_v32  ;;  %v5081_v31 = vmul.f32 %v5071_v9, %v10602_v51  ;;  %v8349_v8 = vpack.c.bf16 %v5083_v10, %v5083_v10 }
 0x7c1   : > { %4586 = vrot.lane.b32.xlu1 %v10613_v63, %s8720_s19  ;;  %v8350_v14 = vpack.c.bf16 %v5085_v13, %v5084_v21  ;;  %v4957_v50 = vpop.permute.xlu1 %4956  ;;  %v4972_v3 = vmul.f32 %v4959_v41, %v10631_v20  ;;  %v4966_v26 = vmul.f32 %v4959_v41, %v10538_v28  ;;  %v5088_v21 = vmul.f32 %v5074_v29, %v10556_v60 }
 0x7c2   : > { %v8348_v47 = vpack.c.bf16 %v5082_v45, %v5081_v31  ;;  %v4964_v24 = vmul.f32 %v4957_v50, %v10525_v17  ;;  %v4967_v12 = vmul.f32 %v4957_v50, %v10602_v51 }
 0x7c4   : > { %4816 = vrot.lane.b32.xlu0 %v8325_v48, %s8723_s26  ;;  %v5089_v48 = vmul.f32 %v5073_v16, %v10667_v38 }
 0x7c5   : > { %4814 = vrot.lane.b32.xlu1 %v8324_v40, %s8723_s26  ;;  %v5079_v40 = vmul.f32 %v5074_v29, %v10518_v1  ;;  %v4973_v29 = vmul.f32 %v4957_v50, %v10670_v61 }
 0x7c7   : > { %v8346_v15 = vpack.c.bf16 %v5079_v40, %v5078_v30 }
 0x7c8   : > { %4702 = vrot.lane.b32.xlu0 %v8317_v25, %s8724_s27  ;;  %v8353_v25 = vpack.c.bf16 %v5089_v48, %v5089_v48  ;;  %v8339_v48 = vpack.c.bf16 %v4966_v26, %v4966_v26 }
 0x7c9   : > { %4700 = vrot.lane.b32.xlu1 %v8316_v55, %s8724_s27  ;;  %v5080_v55 = vmul.f32 %v5073_v16, %v10538_v28 }
 0x7cc   : > { %4592 = vrot.lane.b32.xlu0 %v10639_v52, %s8720_s19 }
 0x7cd   : > { %4590 = vrot.lane.b32.xlu1 %v10643_v37, %s8720_s19 }
 0x7d0   : > { %5216 = vrot.lane.b32.xlu0 %v10639_v52, %s8721_s20 }
 0x7d1   : > { %5214 = vrot.lane.b32.xlu1 %v10643_v37, %s8721_s20 }
 0x7d4   : > { %4820 = vrot.lane.b32.xlu0 %v8327_v0, %s8723_s26  ;;  %v4960_v0 = vsel %vm820_vm6, %v4957_v50, %v4959_v41 }
 0x7d5   : > { %4818 = vrot.lane.b32.xlu1 %v8326_v56, %s8723_s26  ;;  %v8347_v56 = vpack.c.bf16 %v5080_v55, %v5080_v55  ;;  %v4968_v16 = vmul.f32 %v4960_v0, %v10522_v32 }
 0x7d7   : > { %v8340_v13 = vpack.c.bf16 %v4968_v16, %v4967_v12  ;;  %v7899_v16 = vld [vmem:[%s11644_s2 + $0x60] sm:$0xff] }
 0x7d8   : > { %4706 = vrot.lane.b32.xlu0 %v8319_v36, %s8724_s27  ;;  %v4971_v36 = vmul.f32 %v4960_v0, %v10550_v54 }
 0x7d9   : > { %4704 = vrot.lane.b32.xlu1 %v8318_v23, %s8724_s27  ;;  %v4970_v23 = vmul.f32 %v4957_v50, %v10634_v44 }
 0x7db   : > { %v8342_v43 = vpack.c.bf16 %v4971_v36, %v4970_v23 }
 0x7dc   : > { %4596 = vrot.lane.b32.xlu0 %v10675_v18, %s8720_s19 }
 0x7dd   : > { %4594 = vrot.lane.b32.xlu1 %v10679_v34, %s8720_s19 }
 0x7e0   : > { %5220 = vrot.lane.b32.xlu0 %v10675_v18, %s8721_s20 }
 0x7e1   : > { %5218 = vrot.lane.b32.xlu1 %v10679_v34, %s8721_s20 }
 0x7e4   : > { %4824 = vrot.lane.b32.xlu0 %v8329_v49, %s8723_s26  ;;  %v4965_v49 = vmul.f32 %v4960_v0, %v10518_v1 }
 0x7e5   : > { %4822 = vrot.lane.b32.xlu1 %v8328_v2, %s8723_s26  ;;  %v8343_v2 = vpack.c.bf16 %v4972_v3, %v4972_v3 }
 0x7e6   : > { %v8338_v22 = vpack.c.bf16 %v4965_v49, %v4964_v24  ;;  %v7901_v24 = vld [vmem:[%s11644_s2 + $0x70] sm:$0xff] }
 0x7e8   : > { %4710 = vrot.lane.b32.xlu0 %v8321_v39, %s8724_s27  ;;  %v4975_v39 = vmul.f32 %v4959_v41, %v10667_v38 }
 0x7e9   : > { %5206 = vrot.lane.b32.xlu1 %v10536_v11, %s8721_s20 }
 0x7ec   : > { %5208 = vrot.lane.b32.xlu0 %v10545_v53, %s8721_s20 }
 0x7ed   : > { %4708 = vrot.lane.b32.xlu1 %v8320_v59, %s8724_s27  ;;  %v8345_v59 = vpack.c.bf16 %v4975_v39, %v4975_v39  ;;  %v7900_v39 = vld [vmem:[%s11644_s2 + $0x68] sm:$0xff] }
 0x7f0   : > { %5212 = vrot.lane.b32.xlu0 %v10607_v33, %s8721_s20 }
 0x7f1   : > { %5210 = vrot.lane.b32.xlu1 %v10613_v63, %s8721_s20 }
 0x7f4   : > { %5132 = vrot.lane.b32.xlu0 %v8351_v6, %s8725_s28  ;;  %v5087_v6 = vmul.f32 %v5071_v9, %v10670_v61  ;;  %v5271_v9 = vpop.permute.xlu0 %5270 }
 0x7f5   : > { %5130 = vrot.lane.b32.xlu1 %v8350_v14, %s8725_s28  ;;  %v4969_v14 = vmul.f32 %v4959_v41, %v10599_v19  ;;  %v5269_v41 = vpop.permute.xlu1 %5268  ;;  %v5287_v50 = vmul.f32 %v5271_v9, %v10667_v38 }
 0x7f6   : > { %v8352_v40 = vpack.c.bf16 %v5088_v21, %v5087_v6 }
 0x7f7   : > { %v8341_v30 = vpack.c.bf16 %v4969_v14, %v4969_v14 }
 0x7f8   : > { %5136 = vrot.lane.b32.xlu0 %v8353_v25, %s8725_s28  ;;  %v4974_v25 = vmul.f32 %v4960_v0, %v10556_v60 }
 0x7f9   : > { %5122 = vrot.lane.b32.xlu1 %v8346_v15, %s8725_s28  ;;  %v5272_v15 = vsel %vm255_vm0, %v5269_v41, %v5271_v9 }
 0x7fa   : > { %v8344_v55 = vpack.c.bf16 %v4974_v25, %v4973_v29  ;;  %v5277_v0 = vmul.f32 %v5272_v15, %v10518_v1  ;;  %v5285_v1 = vmul.f32 %v5269_v41, %v10670_v61 }
 0x7fc   : > { %5124 = vrot.lane.b32.xlu0 %v8347_v56, %s8725_s28  ;;  %v5286_v56 = vmul.f32 %v5272_v15, %v10556_v60  ;;  %v5279_v60 = vmul.f32 %v5269_v41, %v10602_v51 }
 0x7fd   : > { %5126 = vrot.lane.b32.xlu1 %v8348_v47, %s8725_s28  ;;  %v5281_v47 = vmul.f32 %v5271_v9, %v10599_v19 }
 0x7fe   : > { %v8368_v23 = vpack.c.bf16 %v5286_v56, %v5285_v1 }
 0x7ff   : > { %v8365_v3 = vpack.c.bf16 %v5281_v47, %v5281_v47 }
 0x800   : > { %5128 = vrot.lane.b32.xlu0 %v8349_v8, %s8725_s28 }
 0x801   : > { %5016 = vrot.lane.b32.xlu1 %v8342_v43, %s8726_s30 }
 0x804   : > { %5018 = vrot.lane.b32.xlu0 %v8343_v2, %s8726_s30 }
 0x805   : > { %5008 = vrot.lane.b32.xlu1 %v8338_v22, %s8726_s30 }
 0x808   : > { %5022 = vrot.lane.b32.xlu0 %v8345_v59, %s8726_s30 }
 0x809   : > { %5012 = vrot.lane.b32.xlu1 %v8340_v13, %s8726_s30 }
 0x80c   : > { %5010 = vrot.lane.b32.xlu0 %v8339_v48, %s8726_s30 }
 0x80d   : > { %5134 = vrot.lane.b32.xlu1 %v8352_v40, %s8725_s28 }
 0x810   : > { %5014 = vrot.lane.b32.xlu0 %v8341_v30, %s8726_s30 }
 0x811   : > { %4902 = vrot.lane.b32.xlu1 %v10643_v37, %s8722_s25  ;;  %v8530_v37 = vld [vmem:[%s11643_s1 + $0x94] ss:$12 sps:$4 sm:$0xff]  }
 0x812   : > { %5678 = vmatprep.mubr.bf16.mxu0 %v8530_v37 }
 0x814   : > { %4904 = vrot.lane.b32.xlu0 %v10639_v52, %s8722_s25  ;;  %v5284_v52 = vmul.f32 %v5271_v9, %v10631_v20  ;;  %v5278_v20 = vmul.f32 %v5271_v9, %v10538_v28  ;;  %v5280_v28 = vmul.f32 %v5272_v15, %v10522_v32  ;;  %v7902_v32 = vld [vmem:[%s11644_s2 + $0x78] sm:$0xff] }
 0x815   : > { %5020 = vrot.lane.b32.xlu1 %v8344_v55, %s8726_s30 }
 0x816   : > { %v8363_v10 = vpack.c.bf16 %v5278_v20, %v5278_v20  ;;  %v8364_v49 = vpack.c.bf16 %v5280_v28, %v5279_v60 }
 0x818   : > { %4908 = vrot.lane.b32.xlu0 %v10675_v18, %s8722_s25  ;;  %v5283_v18 = vmul.f32 %v5272_v15, %v10550_v54 }
 0x819   : > { %4906 = vrot.lane.b32.xlu1 %v10679_v34, %s8722_s25  ;;  %v8367_v34 = vpack.c.bf16 %v5284_v52, %v5284_v52 }
 0x81c   : > { %4896 = vrot.lane.b32.xlu0 %v10545_v53, %s8722_s25  ;;  %v5282_v53 = vmul.f32 %v5269_v41, %v10634_v44 }
 0x81d   : > { %4894 = vrot.lane.b32.xlu1 %v10536_v11, %s8722_s25  ;;  %v5276_v11 = vmul.f32 %v5269_v41, %v10525_v17 }
 0x81e   : > { %v8366_v45 = vpack.c.bf16 %v5283_v18, %v5282_v53 }
 0x81f   : > { %v8362_v31 = vpack.c.bf16 %v5277_v0, %v5276_v11 }
 0x820   : > { %4900 = vrot.lane.b32.xlu0 %v10607_v33, %s8722_s25  ;;  %v10783_v54 = vpop.permute.xlu0 %4584  ;;  %v8369_v33 = vpack.c.bf16 %v5287_v50, %v5287_v50 }
 0x821   : > { %4898 = vrot.lane.b32.xlu1 %v10613_v63, %s8722_s25  ;;  %v10786_v63 = vpop.permute.xlu1 %4582 }
 0x824   : > { %5330 = vrot.lane.b32.xlu0 %v8367_v34, %s8727_s7 }
 0x825   : > { %5328 = vrot.lane.b32.xlu1 %v8366_v45, %s8727_s7 }
 0x828   : > { %5334 = vrot.lane.b32.xlu0 %v8369_v33, %s8727_s7 }
 0x829   : > { %5320 = vrot.lane.b32.xlu1 %v8362_v31, %s8727_s7 }
 0x82a   : > { %v4813_v38 = vpop.permute.xlu0 %4812 }
 0x82b   : > { %v10793_v36 = vpop.permute.xlu1 %4810  ;;  %v4827_v53 = vrot.slane %v4813_v38, 4 }
 0x82c   : > { %5322 = vrot.lane.b32.xlu0 %v8363_v10, %s8727_s7  ;;  %v4826_v34 = vrot.slane %v10793_v36, 4 }
 0x82d   : > { %5332 = vrot.lane.b32.xlu1 %v8368_v23, %s8727_s7 }
 0x82e   : > { %v10799_v8 = vpop.permute.xlu0 %4698  ;;  %v4834_v31 = vsel %vm456_vm7, %v4826_v34, %v4827_v53 }
 0x82f   : > { %v10801_v43 = vpop.permute.xlu1 %4696 }
 0x830   : > { %5326 = vrot.lane.b32.xlu0 %v8365_v3, %s8727_s7 }
 0x831   : > { %5324 = vrot.lane.b32.xlu1 %v8364_v49, %s8727_s7 }
 0x832   : > { %v10808_v19 = vpop.permute.xlu0 %4588 }
 0x833   : > { %v10813_v2 = vpop.permute.xlu1 %4586 }
 0x834   : > { %5427 = vperm.xlu0 %8502, %v7902_v32  }
 0x835   : > { %5422 = vperm.xlu1 %8503, %v7901_v24  }
 0x836   : > { %v4817_v22 = vpop.permute.xlu0 %4816 }
 0x837   : > { %v4815_v12 = vpop.permute.xlu1 %4814  ;;  %v4829_v41 = vrot.slane %v4817_v22, 4  ;;  %v4713_v22 = vrot.slane %v10799_v8, 4 }
 0x838   : > { %5417 = vperm.xlu0 %8502, %v7900_v39   ;;  %v4828_v15 = vrot.slane %v4815_v12, 4  ;;  %v4835_v39 = vsel %vm692_vm8, %v10793_v36, %v4834_v31  ;;  %v4600_v31 = vrot.slane %v10813_v2, 4 }
 0x839   : > { %5412 = vperm.xlu1 %8503, %v7899_v16   ;;  %v4712_v16 = vrot.slane %v10801_v43, 4 }
 0x83a   : > { %v4703_v59 = vpop.permute.xlu0 %4702  ;;  %v4836_v45 = vsel %vm456_vm7, %v4828_v15, %v4829_v41 }
 0x83b   : > { %v4701_v26 = vpop.permute.xlu1 %4700  ;;  %v4837_v56 = vsel %vm692_vm8, %v4815_v12, %v4836_v45  ;;  %v4715_v1 = vrot.slane %v4703_v59, 4  ;;  %v4720_v8 = vsel %vm456_vm7, %v4712_v16, %v4713_v22 }
 0x83c   : > { %v4714_v10 = vrot.slane %v4701_v26, 4  ;;  %v7922_v59 = vcombine.high %v4835_v39, %v4837_v56  ;;  %v7921_v36 = vcombine.low %v4835_v39, %v4837_v56 }
 0x83e   : > { %v10821_v13 = vpop.permute.xlu0 %4592 }
 0x83f   : > { %v10823_v21 = vpop.permute.xlu1 %4590  ;;  %v4603_v53 = vrot.slane %v10821_v13, 4 }
 0x840   : > { %v4602_v34 = vrot.slane %v10823_v21, 4 }
 0x842   : > { %v10825_v6 = vpop.permute.xlu0 %5216 }
 0x843   : > { %v10827_v48 = vpop.permute.xlu1 %5214 }
 0x846   : > { %v4821_v14 = vpop.permute.xlu0 %4820 }
 0x847   : > { %v4819_v40 = vpop.permute.xlu1 %4818  ;;  %v4831_v52 = vrot.slane %v4821_v14, 4  ;;  %v4722_v14 = vsel %vm456_vm7, %v4714_v10, %v4715_v1  ;;  %v4721_v10 = vsel %vm575_vm9, %v10801_v43, %v4720_v8 }
 0x848   : > { %v4830_v18 = vrot.slane %v4819_v40, 4 }
 0x84a   : > { %v4707_v30 = vpop.permute.xlu0 %4706  ;;  %v4838_v33 = vsel %vm456_vm7, %v4830_v18, %v4831_v52 }
 0x84b   : > { %v4705_v25 = vpop.permute.xlu1 %4704  ;;  %v4839_v38 = vsel %vm692_vm8, %v4819_v40, %v4838_v33  ;;  %v4717_v28 = vrot.slane %v4707_v30, 4 }
 0x84c   : > { %v4716_v60 = vrot.slane %v4705_v25, 4 }
 0x84e   : > { %v4597_v29 = vpop.permute.xlu0 %4596  ;;  %v4724_v40 = vsel %vm456_vm7, %v4716_v60, %v4717_v28  ;;  %v4598_v28 = vrot.slane %v10786_v63, 4 }
 0x84f   : > { %v10829_v55 = vpop.permute.xlu1 %4594  ;;  %v4605_v41 = vrot.slane %v4597_v29, 4  ;;  %v4723_v29 = vsel %vm575_vm9, %v4701_v26, %v4722_v14  ;;  %v4610_v26 = vsel %vm456_vm7, %v4602_v34, %v4603_v53 }
 0x850   : > { %v4604_v15 = vrot.slane %v10829_v55, 4  ;;  %v7917_v43 = vcombine.low %v4721_v10, %v4723_v29 }
 0x852   : > { %v10831_v9 = vpop.permute.xlu0 %5220  ;;  %v4612_v13 = vsel %vm456_vm7, %v4604_v15, %v4605_v41 }
 0x853   : > { %v10833_v37 = vpop.permute.xlu1 %5218 }
 0x856   : > { %v4825_v50 = vpop.permute.xlu0 %4824 }
 0x857   : > { %v4833_v0 = vrot.slane %v4825_v50, 4  ;;  %v4823_v11 = vpop.permute.xlu1 %4822 }
 0x858   : > { %v4832_v20 = vrot.slane %v4823_v11, 4 }
 0x85a   : > { %v4840_v47 = vsel %vm456_vm7, %v4832_v20, %v4833_v0  ;;  %v4711_v23 = vpop.permute.xlu0 %4710  ;;  %v4601_v0 = vrot.slane %v10808_v19, 4  ;;  %v4599_v19 = vrot.slane %v10783_v54, 4  ;;  %v4611_v54 = vsel %vm458_vm10, %v10823_v21, %v4610_v26 }
 0x85b   : > { %v4841_v3 = vsel %vm692_vm8, %v4823_v11, %v4840_v47  ;;  %v10843_v49 = vpop.permute.xlu1 %5206  ;;  %v4719_v52 = vrot.slane %v4711_v23, 4  ;;  %v4725_v11 = vsel %vm575_vm9, %v4705_v25, %v4724_v40  ;;  %v7918_v25 = vcombine.high %v4721_v10, %v4723_v29 }
 0x85c   : > { %v7923_v32 = vcombine.low %v4839_v38, %v4841_v3  ;;  %v7924_v24 = vcombine.high %v4839_v38, %v4841_v3  ;;  %v4613_v23 = vsel %vm458_vm10, %v10829_v55, %v4612_v13  ;;  %v4608_v60 = vsel %vm456_vm7, %v4600_v31, %v4601_v0 }
 0x85d   : > { %v4606_v3 = vsel %vm456_vm7, %v4598_v28, %v4599_v19  ;;  %v4609_v55 = vsel %vm458_vm10, %v10813_v2, %v4608_v60  ;;  %v7915_v16 = vcombine.low %v4611_v54, %v4613_v23  ;;  %v4495_v40 = vrot.slane %v10512_v7, %v8783_v5 }
 0x85e   : > { %v10849_v12 = vpop.permute.xlu0 %5208  ;;  %5646 = vmatprep.subr.bf16.mxu0 %v7924_v24  ;;  %v7916_v24 = vcombine.high %v4611_v54, %v4613_v23  ;;  %v4607_v22 = vsel %vm458_vm10, %v10786_v63, %v4606_v3  ;;  %v5228_v2 = vrot.slane %v10833_v37, 4  ;;  %v5226_v63 = vrot.slane %v10827_v48, 4 }
 0x85f   : > { %5647 = vmatpush1.bf16.msra.mxu0 %v7923_v32  ;;  %v4709_v30 = vpop.permute.xlu1 %4708  ;;  %v7914_v14 = vcombine.high %v4607_v22, %v4609_v55  ;;  %v7913_v41 = vcombine.low %v4607_v22, %v4609_v55  ;;  %v4508_v15 = vmul.f32 %v10670_v61, %v4495_v40  ;;  %v4506_v8 = vmul.f32 %v10634_v44, %v4495_v40 }
 0x860   : > { %v4718_v18 = vrot.slane %v4709_v30, 4  ;;  %5648 = vmatprep.subr.bf16.mxu0 %v7922_v59 }
 0x861   : > { %v8452_v61 = vpack.c.bf16 %v4508_v15, %v4506_v8 }
 0x862   : > { %v4726_v50 = vsel %vm456_vm7, %v4718_v18, %v4719_v52  ;;  %v10858_v45 = vpop.permute.xlu0 %5212  ;;  %v5227_v52 = vrot.slane %v10825_v6, 4  ;;  %v4504_v6 = vmul.f32 %v10602_v51, %v4495_v40 }
 0x863   : > { %v4727_v33 = vsel %vm575_vm9, %v4709_v30, %v4726_v50  ;;  %5649 = vmatpush1.bf16.msra.mxu0 %v7921_v36  ;;  %v10864_v20 = vpop.permute.xlu1 %5210  ;;  %v5229_v30 = vrot.slane %v10831_v9, 4  ;;  %v5225_v9 = vrot.slane %v10858_v45, 4  ;;  %v5223_v50 = vrot.slane %v10849_v12, 4 }
 0x864   : > { %v7919_v56 = vcombine.low %v4725_v11, %v4727_v33  ;;  %v7920_v1 = vcombine.high %v4725_v11, %v4727_v33  ;;  %v5224_v53 = vrot.slane %v10864_v20, 4  ;;  %v5234_v34 = vsel %vm456_vm7, %v5226_v63, %v5227_v52 }
 0x865   : > { %v5236_v7 = vsel %vm456_vm7, %v5228_v2, %v5229_v30  ;;  %v4502_v45 = vmul.f32 %v10525_v17, %v4495_v40  ;;  %v5222_v11 = vrot.slane %v10843_v49, 4  ;;  %v5235_v57 = vsel %vm1096_vm11, %v10827_v48, %v5234_v34 }
 0x866   : > { %v10872_v47 = vpop.permute.xlu0 %5132  ;;  %5650 = vmatprep.subr.bf16.mxu0 %v7920_v1  ;;  %v5237_v44 = vsel %vm1096_vm11, %v10833_v37, %v5236_v7  ;;  %v5232_v62 = vsel %vm456_vm7, %v5224_v53, %v5225_v9 }
 0x867   : > { %5651 = vmatpush1.bf16.msra.mxu0 %v7919_v56  ;;  %v10876_v38 = vpop.permute.xlu1 %5130  ;;  %v5230_v51 = vsel %vm456_vm7, %v5222_v11, %v5223_v50  ;;  %v7940_v12 = vcombine.high %v5235_v57, %v5237_v44  ;;  %v5233_v33 = vsel %vm1096_vm11, %v10864_v20, %v5232_v62  ;;  %v5143_v17 = vrot.slane %v10872_v47, 4 }
 0x868   : > { %5652 = vmatprep.subr.bf16.mxu0 %v7918_v25  ;;  %v5142_v31 = vrot.slane %v10876_v38, 4  ;;  %v7939_v27 = vcombine.low %v5235_v57, %v5237_v44  ;;  %v5231_v35 = vsel %vm1096_vm11, %v10843_v49, %v5230_v51 }
 0x869   : > { %v7938_v10 = vcombine.high %v5231_v35, %v5233_v33  ;;  %v7937_v28 = vcombine.low %v5231_v35, %v5233_v33 }
 0x86a   : > { %v10883_v32 = vpop.permute.xlu0 %5136  ;;  %v5150_v19 = vsel %vm456_vm7, %v5142_v31, %v5143_v17 }
 0x86b   : > { %5653 = vmatpush1.bf16.msra.mxu0 %v7917_v43  ;;  %v10887_v39 = vpop.permute.xlu1 %5122  ;;  %v5145_v26 = vrot.slane %v10883_v32, 4  ;;  %v5151_v54 = vsel %vm1011_vm12, %v10876_v38, %v5150_v19 }
 0x86c   : > { %5654 = vmatprep.subr.bf16.mxu0 %v7916_v24  ;;  %v5138_v47 = vrot.slane %v10887_v39, 4 }
 0x86e   : > { %v5125_v59 = vpop.permute.xlu0 %5124 }
 0x86f   : > { %5655 = vmatpush1.bf16.msra.mxu0 %v7915_v16  ;;  %v10891_v21 = vpop.permute.xlu1 %5126 }
 0x870   : > { %5656 = vmatprep.subr.bf16.mxu0 %v7914_v14  ;;  %v5140_v48 = vrot.slane %v10891_v21, 4 }
 0x872   : > { %v5129_v18 = vpop.permute.xlu0 %5128 }
 0x873   : > { %5657 = vmatpush1.bf16.msra.mxu0 %v7913_v41  ;;  %v10900_v36 = vpop.permute.xlu1 %5016  ;;  %v5141_v56 = vrot.slane %v5129_v18, 4 }
 0x874   : > { %5658 = vmatprep.subr.bf16.mxu0 %v8453_v58  ;;  %v8450_v58 = vpack.c.bf16 %v4504_v6, %v4502_v45  ;;  %v5028_v40 = vrot.slane %v10900_v36, 4 }
 0x875   : > { %v5148_v25 = vsel %vm456_vm7, %v5140_v48, %v5141_v56 }
 0x876   : > { %v5019_v0 = vpop.permute.xlu0 %5018  ;;  %v5149_v32 = vsel %vm1011_vm12, %v10891_v21, %v5148_v25 }
 0x877   : > { %5659 = vmatpush1.bf16.msra.mxu0 %v8452_v61  ;;  %v10914_v29 = vpop.permute.xlu1 %5008  ;;  %v5029_v55 = vrot.slane %v5019_v0, 4 }
 0x878   : > { %5660 = vmatprep.subr.bf16.mxu0 %v8451_v42  ;;  %v5139_v42 = vrot.slane %v5125_v59, 4  ;;  %v5024_v15 = vrot.slane %v10914_v29, 4 }
 0x879   : > { %v5036_v21 = vsel %vm456_vm7, %v5028_v40, %v5029_v55 }
 0x87a   : > { %v5023_v37 = vpop.permute.xlu0 %5022  ;;  %v5146_v49 = vsel %vm456_vm7, %v5138_v47, %v5139_v42  ;;  %v5037_v6 = vsel %vm894_vm13, %v10900_v36, %v5036_v21 }
 0x87b   : > { %5661 = vmatpush1.bf16.msra.mxu0 %v8450_v58  ;;  %v5013_v13 = vpop.permute.xlu1 %5012  ;;  %v5147_v14 = vsel %vm1011_vm12, %v10887_v39, %v5146_v49  ;;  %v5031_v63 = vrot.slane %v5023_v37, 4 }
 0x87c   : > { %5662 = vmatprep.subr.bf16.mxu0 %v7940_v12  ;;  %v5026_v30 = vrot.slane %v5013_v13, 4  ;;  %v7934_v38 = vcombine.high %v5147_v14, %v5149_v32  ;;  %v7933_v7 = vcombine.low %v5147_v14, %v5149_v32 }
 0x87e   : > { %v5011_v1 = vpop.permute.xlu0 %5010 }
 0x87f   : > { %5663 = vmatpush2.bf16.msra.mxu0 %v7939_v27  ;;  %v5135_v20 = vpop.permute.xlu1 %5134  ;;  %v5025_v2 = vrot.slane %v5011_v1, 4 }
 0x880   : > { %v5144_v23 = vrot.slane %v5135_v20, 4  ;;  %5664 = vmatprep.subr.bf16.mxu0 %v7938_v10 }
 0x881   : > { %v5032_v39 = vsel %vm456_vm7, %v5024_v15, %v5025_v2 }
 0x882   : > { %v5152_v60 = vsel %vm456_vm7, %v5144_v23, %v5145_v26  ;;  %v5015_v43 = vpop.permute.xlu0 %5014  ;;  %v5033_v58 = vsel %vm894_vm13, %v10914_v29, %v5032_v39 }
 0x883   : > { %v5153_v3 = vsel %vm1011_vm12, %v5135_v20, %v5152_v60  ;;  %5665 = vmatpush2.bf16.msra.mxu0 %v7937_v28  ;;  %v4903_v24 = vpop.permute.xlu1 %4902  ;;  %v5027_v16 = vrot.slane %v5015_v43, 4  ;;  %v8528_v43 = vld [vmem:[%s11643_s1 + $0x90] ss:$12 sps:$4 sm:$0xff]  }
 0x884   : > { %v7935_v22 = vcombine.low %v5151_v54, %v5153_v3  ;;  %v7936_v59 = vcombine.high %v5151_v54, %v5153_v3  ;;  %v4914_v45 = vrot.slane %v4903_v24, 4  ;;  %v8531_v3 = vld [vmem:[%s11643_s1 + $0xac] ss:$12 sps:$4 sm:$0xff]  }
 0x885   : > { %v5034_v18 = vsel %vm456_vm7, %v5026_v30, %v5027_v16 }
 0x886   : > { %v4905_v41 = vpop.permute.xlu0 %4904  ;;  %5666 = vmatprep.subr.bf16.mxu0 %v7936_v59  ;;  %v5035_v44 = vsel %vm894_vm13, %v5013_v13, %v5034_v18 }
 0x887   : > { %5667 = vmatpush2.bf16.msra.mxu0 %v7935_v22  ;;  %v5021_v52 = vpop.permute.xlu1 %5020  ;;  %v4915_v9 = vrot.slane %v4905_v41, 4  ;;  %v7930_v36 = vcombine.high %v5033_v58, %v5035_v44  ;;  %v7929_v27 = vcombine.low %v5033_v58, %v5035_v44  ;;  %v7976_v44 = vld [vmem:[%s11647_s5 + $0x6] sm:$0x3] }
 0x888   : > { %v5030_v8 = vrot.slane %v5021_v52, 4  ;;  %5668 = vmatprep.subr.bf16.mxu0 %v7934_v38  ;;  %v8533_v38 = vld [vmem:[%s11643_s1 + $0xa8] ss:$12 sps:$4 sm:$0xff]  }
 0x889   : > { %v4922_v51 = vsel %vm456_vm7, %v4914_v45, %v4915_v9  ;;  %v7967_v45 = vld [vmem:[%s11647_s5 + $0x4] sm:$0x3] }
 0x88a   : > { %v5038_v53 = vsel %vm456_vm7, %v5030_v8, %v5031_v63  ;;  %v4909_v61 = vpop.permute.xlu0 %4908  ;;  %v4923_v56 = vsel %vm777_vm15, %v4903_v24, %v4922_v51  ;;  %v6021_v58 = vrot.slane %v7967_v45, %v8781_v4  ;;  %v8002_v51 = vld [vmem:[%s11647_s5 + $0xc] sm:$0x3] }
 0x88b   : > { %v5039_v34 = vsel %vm894_vm13, %v5021_v52, %v5038_v53  ;;  %v4917_v50 = vrot.slane %v4909_v61, 4  ;;  %5669 = vmatpush2.bf16.msra.mxu0 %v7933_v7  ;;  %v4907_v0 = vpop.permute.xlu1 %4906 }
 0x88c   : > { %v7931_v11 = vcombine.low %v5037_v6, %v5039_v34  ;;  %v4916_v62 = vrot.slane %v4907_v0, 4  ;;  %v7932_v57 = vcombine.high %v5037_v6, %v5039_v34 }
 0x88e   : > { %v4924_v37 = vsel %vm456_vm7, %v4916_v62, %v4917_v50  ;;  %v4897_v12 = vpop.permute.xlu0 %4896  ;;  %5670 = vmatprep.subr.bf16.mxu0 %v7932_v57  ;;  %v8534_v50 = vld [vmem:[%s11643_s1 + $0x98] ss:$12 sps:$4 sm:$0xff]   ;;  %v6135_v62 = vrot.slane %v7976_v44, %v8781_v4  ;;  %v6017_v57 = vrot.slane %v7967_v45, %v8783_v5 }
 0x88f   : > { %v4925_v33 = vsel %vm777_vm15, %v4907_v0, %v4924_v37  ;;  %5671 = vmatpush2.bf16.msra.mxu0 %v7931_v11  ;;  %v4895_v17 = vpop.permute.xlu1 %4894  ;;  %v4911_v31 = vrot.slane %v4897_v12, 4  ;;  %v8535_v0 = vld [vmem:[%s11643_s1 + $0xb0] ss:$12 sps:$4 sm:$0xff]   ;;  %v6131_v11 = vrot.slane %v7976_v44, %v8783_v5  ;;  %v6443_v37 = vrot.slane %v8002_v51, %v8783_v5 }
 0x890   : > { %v4910_v13 = vrot.slane %v4895_v17, 4  ;;  %5672 = vmatprep.subr.bf16.mxu0 %v7930_v36  ;;  %v7928_v42 = vcombine.high %v4923_v56, %v4925_v33  ;;  %v7927_v19 = vcombine.low %v4923_v56, %v4925_v33  ;;  %6138 = vrot.lane.b32.xlu0 %v6135_v62, %s8714_s29  ;;  %v6447_v12 = vrot.slane %v8002_v51, %v8781_v4 }
 0x891   : > { %6136 = vrot.lane.b32.xlu1 %v6131_v11, %s8714_s29 }
 0x892   : > { %v4901_v35 = vpop.permute.xlu0 %4900  ;;  %v4918_v1 = vsel %vm456_vm7, %v4910_v13, %v4911_v31 }
 0x893   : > { %v4913_v29 = vrot.slane %v4901_v35, 4  ;;  %5673 = vmatpush2.bf16.msra.mxu0 %v7929_v27  ;;  %v4899_v48 = vpop.permute.xlu1 %4898  ;;  %v4919_v47 = vsel %vm777_vm15, %v4895_v17, %v4918_v1 }
 0x894   : > { %v4912_v10 = vrot.slane %v4899_v48, 4  ;;  %5674 = vmatprep.subr.bf16.mxu0 %v7928_v42  ;;  %6024 = vrot.lane.b32.xlu0 %v6021_v58, %s8716_s11 }
 0x895   : > { %6022 = vrot.lane.b32.xlu1 %v6017_v57, %s8716_s11 }
 0x896   : > { %v4920_v20 = vsel %vm456_vm7, %v4912_v10, %v4913_v29  ;;  %v5331_v26 = vpop.permute.xlu0 %5330 }
 0x897   : > { %v4921_v25 = vsel %vm777_vm15, %v4899_v48, %v4920_v20  ;;  %5675 = vmatpush2.bf16.msra.mxu0 %v7927_v19  ;;  %v5329_v23 = vpop.permute.xlu1 %5328  ;;  %v5341_v24 = vrot.slane %v5331_v26, 4 }
 0x898   : > { %v7925_v28 = vcombine.low %v4919_v47, %v4921_v25  ;;  %v7926_v49 = vcombine.high %v4919_v47, %v4921_v25  ;;  %v5340_v32 = vrot.slane %v5329_v23, 4  ;;  %6450 = vrot.lane.b32.xlu0 %v6447_v12, %s8717_s14 }
 0x899   : > { %6448 = vrot.lane.b32.xlu1 %v6443_v37, %s8717_s14 }
 0x89a   : > { %v5335_v60 = vpop.permute.xlu0 %5334  ;;  %5676 = vmatprep.subr.bf16.mxu0 %v7926_v49  ;;  %v5348_v16 = vsel %vm456_vm7, %v5340_v32, %v5341_v24 }
 0x89b   : > { %5677 = vmatpush2.bf16.msra.mxu0 %v7925_v28  ;;  %v5321_v54 = vpop.permute.xlu1 %5320  ;;  %v5343_v59 = vrot.slane %v5335_v60, 4  ;;  %v5349_v15 = vsel %vm1212_vm14, %v5329_v23, %v5348_v16 }
 0x89c   : > { %v5336_v30 = vrot.slane %v5321_v54, 4 }
 0x89e   : > { %v5323_v55 = vpop.permute.xlu0 %5322  ;;  %5679 = vmatmul.mubr.bf16.vlgmr.msra.gmra.mxu0 %v8528_v43 }
 0x89f   : > { %v5333_v22 = vpop.permute.xlu1 %5332  ;;  %5688 = vmatprep.mubr.bf16.mxu0 %v8531_v3  ;;  %v5337_v14 = vrot.slane %v5323_v55, 4 }
 0x8a0   : > { %v5342_v40 = vrot.slane %v5333_v22, 4 }
 0x8a1   : > { %v5344_v18 = vsel %vm456_vm7, %v5336_v30, %v5337_v14 }
 0x8a2   : > { %v5350_v2 = vsel %vm456_vm7, %v5342_v40, %v5343_v59  ;;  %v5327_v41 = vpop.permute.xlu0 %5326  ;;  %v5345_v53 = vsel %vm1212_vm14, %v5321_v54, %v5344_v18 }
 0x8a3   : > { %v5351_v52 = vsel %vm1212_vm14, %v5333_v22, %v5350_v2  ;;  %v5339_v21 = vrot.slane %v5327_v41, 4  ;;  %v5325_v63 = vpop.permute.xlu1 %5324 }
 0x8a4   : > { %v7943_v8 = vcombine.low %v5349_v15, %v5351_v52  ;;  %v5338_v7 = vrot.slane %v5325_v63, 4  ;;  %v7944_v39 = vcombine.high %v5349_v15, %v5351_v52 }
 0x8a6   : > { %v5346_v9 = vsel %vm456_vm7, %v5338_v7, %v5339_v21  ;;  %5689 = vmatmul.mubr.bf16.gmra.mxu0 %v8533_v38  ;;  %5711 = vmatprep.subr.bf16.mxu0 %v7944_v39 }
 0x8a7   : > { %v5347_v61 = vsel %vm1212_vm14, %v5325_v63, %v5346_v9  ;;  %5712 = vmatpush1.bf16.msra.mxu0 %v7943_v8  ;;  %5731 = vmatprep.mubr.bf16.mxu0 %v8728_v46 }
 0x8a8   : > { %v7941_v6 = vcombine.low %v5345_v53, %v5347_v61  ;;  %v7942_v34 = vcombine.high %v5345_v53, %v5347_v61 }
 0x8aa   : > { %5713 = vmatprep.subr.bf16.mxu0 %v7942_v34 }
 0x8ab   : > { %5714 = vmatpush1.bf16.msra.mxu0 %v7941_v6 }
 0x8ae   : > { %7945 = vmatmul.mubr.msk.bf16.vlgmr.msra.gmra.mxu0 %vm937_vm5, %v8534_v50 }
 0x8af   : > { %5741 = vmatprep.mubr.bf16.mxu0 %v8728_v46  ;;  %v5428_v35 = vpop.permute.xlu0 %5427 }
 0x8b0   : > { %v5423_v13 = vpop.permute.xlu1 %5422 }
 0x8b3   : > { %v5418_v26 = vpop.permute.xlu0 %5417 }
 0x8b4   : > { %v5413_v29 = vpop.permute.xlu1 %5412 }
 0x8b6   : > { %7946 = vmatmul.mubr.msk.bf16.gmra.mxu0 %vm937_vm5, %v8535_v0 }
 0x8b7   : > { %7109 = vmatprep.mubr.bf16.mxu0 %v8728_v46 }
 0x95e   : > { %v5680_v36 = vpop.f32.mrf.mxu0 }
 0x95f   : > { %v5681_v1 = vadd.f32 %v5680_v36, %v5413_v29 }
 0x960   : > { %v5682_v33 = vpop.f32.mrf.mxu0 }
 0x961   : > { %v5683_v19 = vadd.f32 %v5682_v33, %v5413_v29 }
 0x962   : > { %v5684_v17 = vpop.f32.mrf.mxu0 }
 0x963   : > { %v5685_v25 = vadd.f32 %v5684_v17, %v5418_v26 }
 0x964   : > { %v5686_v31 = vpop.f32.mrf.mxu0 }
 0x965   : > { %v5687_v60 = vadd.f32 %v5686_v31, %v5418_v26 }
 0x966   : > { %v5690_v56 = vpop.f32.mrf.mxu0 }
 0x967   : > { %v5691_v24 = vadd.f32 %v5690_v56, %v5423_v13 }
 0x968   : > { %v5692_v27 = vpop.f32.mrf.mxu0 }
 0x969   : > { %v5693_v16 = vadd.f32 %v5692_v27, %v5423_v13 }
 0x96a   : > { %v5694_v42 = vpop.f32.mrf.mxu0 }
 0x96b   : > { %v5695_v30 = vadd.f32 %v5694_v42, %v5428_v35 }
 0x96c   : > { %v5696_v48 = vpop.f32.mrf.mxu0 }
 0x96d   : > { %v5697_v15 = vadd.f32 %v5696_v48, %v5428_v35 }
 0x96e   : > { %v5733_v10 = vpop.f32.mrf.mxu0 }
 0x96f   : > { %v5734_v20 = vadd.f32 %v5733_v10, %v5681_v1  ;;  %v7993_v10 = vld [vmem:[%s11647_s5 + $0xa] sm:$0x3] }
 0x970   : > { %v5735_v47 = vpop.f32.mrf.mxu0 }
 0x971   : > { %v7947_v23 = vmul.f32 -1.442695, %v5734_v20  ;;  %v5736_v28 = vadd.f32 %v5735_v47, %v5683_v19  ;;  %v6329_v47 = vrot.slane %v7993_v10, %v8783_v5 }
 0x972   : > { %v5737_v49 = vpop.f32.mrf.mxu0 }
 0x973   : > { %8641 = vpow2.f32 %v7947_v23  ;;  %v7948_v43 = vmul.f32 -1.442695, %v5736_v28  ;;  %v5738_v54 = vadd.f32 %v5737_v49, %v5685_v25  ;;  %v8019_v25 = vld [vmem:[%s11647_s5 + $0x10] sm:$0x3]  ;;  %v6333_v23 = vrot.slane %v7993_v10, %v8781_v4 }
 0x974   : > { %v5739_v3 = vpop.f32.mrf.mxu0  ;;  %v6645_v49 = vrot.slane %v8019_v25, %v8781_v4 }
 0x975   : > { %8643 = vpow2.f32 %v7948_v43  ;;  %v7949_v32 = vmul.f32 -1.442695, %v5738_v54  ;;  %v5740_v55 = vadd.f32 %v5739_v3, %v5687_v60  ;;  %v11036_v60 = vpop.permute.xlu1 %6136  ;;  %v11038_v43 = vpop.permute.xlu0 %6138 }
 0x976   : > { %v5743_v22 = vpop.f32.mrf.mxu0 }
 0x977   : > { %8645 = vpow2.f32 %v7949_v32  ;;  %v7950_v59 = vmul.f32 -1.442695, %v5740_v55  ;;  %v5744_v14 = vadd.f32 %v5743_v22, %v5691_v24  ;;  %v11052_v22 = vld [vmem:[%s11647_s5] sm:$0x3] }
 0x978   : > { %v5745_v40 = vpop.f32.mrf.mxu0 }
 0x979   : > { %8647 = vpow2.f32 %v7950_v59  ;;  %v7951_v2 = vmul.f32 -1.442695, %v5744_v14  ;;  %v5746_v41 = vadd.f32 %v5745_v40, %v5693_v16  ;;  %v11042_v3 = vpop.permute.xlu0 %6024 }
 0x97a   : > { %v5747_v38 = vpop.f32.mrf.mxu0 }
 0x97b   : > { %8649 = vpow2.f32 %v7951_v2  ;;  %v7952_v52 = vmul.f32 -1.442695, %v5746_v41  ;;  %v5748_v21 = vadd.f32 %v5747_v38, %v5695_v30 }
 0x97c   : > { %v5749_v63 = vpop.f32.mrf.mxu0 }
 0x97d   : > { %8651 = vpow2.f32 %v7952_v52  ;;  %v7953_v18 = vmul.f32 -1.442695, %v5748_v21  ;;  %v5750_v8 = vadd.f32 %v5749_v63, %v5697_v15  ;;  %v11046_v32 = vpop.permute.xlu0 %6450 }
 0x97f   : > { %8653 = vpow2.f32 %v7953_v18  ;;  %v7954_v7 = vmul.f32 -1.442695, %v5750_v8 }
 0x980   : > { %v8642_v39 = vpop.eup %8641 }
 0x981   : > { %v5776_v9 = vadd.f32 1.0, %v8642_v39  ;;  %8655 = vpow2.f32 %v7954_v7 }
 0x982   : > { %v8644_v53 = vpop.eup %8643 }
 0x983   : > { %8657 = vrcp.f32 %v5776_v9  ;;  %v5777_v61 = vadd.f32 1.0, %v8644_v53  ;;  %v11097_v9 = vsel %vm618_vm3, %v11036_v60, %v11038_v43 }
 0x984   : > { %v8646_v6 = vpop.eup %8645 }
 0x985   : > { %8659 = vrcp.f32 %v5777_v61  ;;  %v5778_v34 = vadd.f32 1.0, %v8646_v6 }
 0x986   : > { %v8648_v50 = vpop.eup %8647 }
 0x987   : > { %8661 = vrcp.f32 %v5778_v34  ;;  %v5779_v0 = vadd.f32 1.0, %v8648_v50 }
 0x988   : > { %v8650_v44 = vpop.eup %8649 }
 0x989   : > { %8663 = vrcp.f32 %v5779_v0  ;;  %v5780_v45 = vadd.f32 1.0, %v8650_v44 }
 0x98a   : > { %v8652_v11 = vpop.eup %8651 }
 0x98b   : > { %8665 = vrcp.f32 %v5780_v45  ;;  %v5781_v62 = vadd.f32 1.0, %v8652_v11 }
 0x98c   : > { %v8654_v57 = vpop.eup %8653 }
 0x98d   : > { %8667 = vrcp.f32 %v5781_v62  ;;  %v5782_v58 = vadd.f32 1.0, %v8654_v57 }
 0x98e   : > { %v8656_v51 = vpop.eup %8655 }
 0x98f   : > { %8669 = vrcp.f32 %v5782_v58  ;;  %v5783_v37 = vadd.f32 1.0, %v8656_v51 }
 0x990   : > { %v8658_v12 = vpop.eup %8657 }
 0x991   : > { %v5800_v36 = vmul.f32 %v8658_v12, %v5734_v20  ;;  %8671 = vrcp.f32 %v5783_v37 }
 0x992   : > { %v8660_v33 = vpop.eup %8659 }
 0x993   : > { %v5801_v17 = vmul.f32 %v8660_v33, %v5736_v28  ;;  %5816 = vrot.lane.b32.xlu1 %v5800_v36, %s8715_s8  ;;  %v6641_v28 = vrot.slane %v8019_v25, %v8783_v5 }
 0x994   : > { %v8662_v31 = vpop.eup %8661 }
 0x995   : > { %v5802_v13 = vmul.f32 %v8662_v31, %v5738_v54  ;;  %5818 = vrot.lane.b32.xlu0 %v5801_v17, %s8715_s8  ;;  %v11040_v54 = vpop.permute.xlu1 %6022 }
 0x996   : > { %v8664_v56 = vpop.eup %8663  ;;  %v11113_v0 = vsel %vm501_vm4, %v11040_v54, %v11042_v3 }
 0x997   : > { %v5803_v27 = vmul.f32 %v8664_v56, %v5740_v55  ;;  %5820 = vrot.lane.b32.xlu1 %v5802_v13, %s8715_s8 }
 0x998   : > { %v8666_v35 = vpop.eup %8665 }
 0x999   : > { %v5804_v42 = vmul.f32 %v8666_v35, %v5744_v14  ;;  %5822 = vrot.lane.b32.xlu0 %v5803_v27, %s8715_s8  ;;  %v11044_v24 = vpop.permute.xlu1 %6448  ;;  %v5877_v14 = vrot.slane %v11052_v22, %v8781_v4 }
 0x99a   : > { %v8668_v29 = vpop.eup %8667 }
 0x99b   : > { %v5805_v48 = vmul.f32 %v8668_v29, %v5746_v41  ;;  %5824 = vrot.lane.b32.xlu1 %v5804_v42, %s8715_s8 }
 0x99c   : > { %v8670_v1 = vpop.eup %8669 }
 0x99d   : > { %v5806_v19 = vmul.f32 %v8670_v1, %v5748_v21  ;;  %5826 = vrot.lane.b32.xlu0 %v5805_v48, %s8715_s8 }
 0x99e   : > { %v8672_v20 = vpop.eup %8671 }
 0x99f   : > { %v5807_v26 = vmul.f32 %v8672_v20, %v5750_v8  ;;  %5828 = vrot.lane.b32.xlu1 %v5806_v19, %s8715_s8 }
 0x9a1   : > { %5830 = vrot.lane.b32.xlu0 %v5807_v26, %s8715_s8 }
 0x9a3   : > { %6334 = vrot.lane.b32.xlu1 %v6329_v47, %s8718_s17 }
 0x9a5   : > { %6336 = vrot.lane.b32.xlu0 %v6333_v23, %s8718_s17 }
 0x9a7   : > { %6646 = vrot.lane.b32.xlu1 %v6641_v28, %s8719_s18 }
 0x9a9   : > { %6648 = vrot.lane.b32.xlu0 %v6645_v49, %s8719_s18  ;;  %s8097_s18 = sshll.u32 %s11650_s22, 4 }
 0xa05   : > { %v5817_v55 = vpop.permute.xlu1 %5816 }
 0xa06   : > { %5848 = vst.msk [vmem:[#allocation2] sm:$0xff] %vm319_vm2, %v5817_v55 }
 0xa07   : > { %v5819_v16 = vpop.permute.xlu0 %5818 }
 0xa08   : > { %5850 = vst.msk [vmem:[#allocation2 + $0x10] sm:$0xff] %vm302_vm1, %v5819_v16  ;;  %v11058_v40 = vsel %vm302_vm1, %v5817_v55, %v5819_v16 }
 0xa09   : > { %v5821_v59 = vpop.permute.xlu1 %5820  ;;  %v11068_v15 = vmul.f32 %v5877_v14, %v11058_v40  ;;  %v6145_v6 = vmul.f32 %v11097_v9, %v11058_v40  ;;  %v6031_v11 = vmul.f32 %v11113_v0, %v11058_v40 }
 0xa0a   : > { %5851 = vst.msk [vmem:[#allocation2 + $0x18] sm:$0xff] %vm319_vm2, %v5821_v59 }
 0xa0b   : > { %v5823_v30 = vpop.permute.xlu0 %5822 }
 0xa0c   : > { %v11062_v2 = vsel %vm302_vm1, %v5821_v59, %v5823_v30  ;;  %5853 = vst.msk [vmem:[#allocation2 + $0x28] sm:$0xff] %vm302_vm1, %v5823_v30 }
 0xa0d   : > { %v5825_v41 = vpop.permute.xlu1 %5824  ;;  %v11065_v38 = vld [vmem:[#allocation2] sm:$0xff]  ;;  %v11071_v52 = vmul.f32 %v5877_v14, %v11062_v2  ;;  %v6148_v17 = vmul.f32 %v11097_v9, %v11062_v2  ;;  %v6034_v29 = vmul.f32 %v11113_v0, %v11062_v2 }
 0xa0e   : > { %5854 = vst.msk [vmem:[#allocation2 + $0x30] sm:$0xff] %vm319_vm2, %v5825_v41  ;;  %v11076_v4 = vpack.c.bf16 %v11058_v40, %v11065_v38  ;;  %v6144_v39 = vmul.f32 %v11036_v60, %v11065_v38  ;;  %v6030_v50 = vmul.f32 %v11040_v54, %v11065_v38 }
 0xa0f   : > { %v5827_v21 = vpop.permute.xlu0 %5826  ;;  %v11078_v63 = vld [vmem:[#allocation2 + $0x10] sm:$0xff]  ;;  %v8455_v18 = vpack.c.bf16 %v11071_v52, %v11068_v15 }
 0xa10   : > { %5856 = vst.msk [vmem:[#allocation2 + $0x40] sm:$0xff] %vm302_vm1, %v5827_v21  ;;  %v11085_v8 = vpack.c.bf16 %v11078_v63, %v11078_v63  ;;  %5960 = vrot.lane.b32.xlu1 %v11076_v4, %s8720_s19  ;;  %v6146_v61 = vmul.f32 %v11038_v43, %v11078_v63  ;;  %v8390_v34 = vpack.c.bf16 %v6145_v6, %v6144_v39 }
 0xa11   : > { %v5829_v7 = vpop.permute.xlu1 %5828  ;;  %v6032_v45 = vmul.f32 %v11042_v3, %v11078_v63  ;;  %v8382_v62 = vpack.c.bf16 %v6031_v11, %v6030_v50  ;;  %v11121_v57 = vld [vmem:[#allocation2 + $0x18] sm:$0xff]  ;;  %v11148_v31 = vsel %vm302_vm1, %v5825_v41, %v5827_v21  ;;  %v11212_v39 = vsel %vm937_vm5, %v11044_v24, %v11046_v32 }
 0xa12   : > { %5857 = vst.msk [vmem:[#allocation2 + $0x48] sm:$0xff] %vm319_vm2, %v5829_v7  ;;  %5962 = vrot.lane.b32.xlu0 %v11085_v8, %s8720_s19  ;;  %v8391_v44 = vpack.c.bf16 %v6146_v61, %v6146_v61  ;;  %v11129_v37 = vpack.c.bf16 %v11062_v2, %v11121_v57  ;;  %v6147_v36 = vmul.f32 %v11121_v57, %v11036_v60 }
 0xa13   : > { %v5831_v53 = vpop.permute.xlu0 %5830  ;;  %v8383_v58 = vpack.c.bf16 %v6032_v45, %v6032_v45  ;;  %v11124_v51 = vld [vmem:[#allocation2 + $0x28] sm:$0xff]  ;;  %v6033_v27 = vmul.f32 %v11121_v57, %v11040_v54  ;;  %v11163_v48 = vmul.f32 %v5877_v14, %v11148_v31  ;;  %v6151_v55 = vmul.f32 %v11097_v9, %v11148_v31 }
 0xa14   : > { %5859 = vst.msk [vmem:[#allocation2 + $0x58] sm:$0xff] %vm302_vm1, %v5831_v53  ;;  %6584 = vrot.lane.b32.xlu1 %v11076_v4, %s8721_s20  ;;  %v11133_v12 = vpack.c.bf16 %v11124_v51, %v11124_v51  ;;  %v6149_v33 = vmul.f32 %v11038_v43, %v11124_v51  ;;  %v11151_v13 = vsel %vm302_vm1, %v5829_v7, %v5831_v53 }
 0xa15   : > { %v8392_v56 = vpack.c.bf16 %v6148_v17, %v6147_v36  ;;  %v6035_v42 = vmul.f32 %v11042_v3, %v11124_v51  ;;  %v11166_v1 = vmul.f32 %v5877_v14, %v11151_v13  ;;  %v8384_v10 = vpack.c.bf16 %v6034_v29, %v6033_v27  ;;  %v11169_v19 = vld [vmem:[#allocation2 + $0x30] sm:$0xff] }
 0xa16   : > { %6586 = vrot.lane.b32.xlu0 %v11085_v8, %s8721_s20  ;;  %v8393_v35 = vpack.c.bf16 %v6149_v33, %v6149_v33  ;;  %v11179_v25 = vpack.c.bf16 %v11148_v31, %v11169_v19  ;;  %v6150_v28 = vmul.f32 %v11169_v19, %v11036_v60  ;;  %v6036_v59 = vmul.f32 %v11169_v19, %v11040_v54 }
 0xa17   : > { %v8457_v20 = vpack.c.bf16 %v11166_v1, %v11163_v48  ;;  %v8385_v26 = vpack.c.bf16 %v6035_v42, %v6035_v42  ;;  %v11174_v47 = vld [vmem:[#allocation2 + $0x40] sm:$0xff]  ;;  %v6037_v41 = vmul.f32 %v11113_v0, %v11148_v31  ;;  %v6462_v7 = vmul.f32 %v11044_v24, %v11169_v19  ;;  %v6337_v42 = vpop.permute.xlu0 %6336 }
 0xa18   : > { %6188 = vrot.lane.b32.xlu1 %v8390_v34, %s8723_s26  ;;  %v11183_v23 = vpack.c.bf16 %v11174_v47, %v11174_v47  ;;  %v6152_v49 = vmul.f32 %v11038_v43, %v11174_v47  ;;  %v8394_v16 = vpack.c.bf16 %v6151_v55, %v6150_v28  ;;  %v6038_v30 = vmul.f32 %v11042_v3, %v11174_v47 }
 0xa19   : > { %v8386_v21 = vpack.c.bf16 %v6037_v41, %v6036_v59  ;;  %v6464_v61 = vmul.f32 %v11046_v32, %v11174_v47  ;;  %v6463_v6 = vmul.f32 %v11212_v39, %v11148_v31  ;;  %v11220_v50 = vld [vmem:[#allocation2 + $0x48] sm:$0xff]  ;;  %v6154_v33 = vmul.f32 %v11097_v9, %v11151_v13 }
 0xa1a   : > { %6190 = vrot.lane.b32.xlu0 %v8391_v44, %s8723_s26  ;;  %v8395_v14 = vpack.c.bf16 %v6152_v49, %v6152_v49  ;;  %v8387_v53 = vpack.c.bf16 %v6038_v30, %v6038_v30  ;;  %v11228_v11 = vpack.c.bf16 %v11151_v13, %v11220_v50  ;;  %v6039_v9 = vmul.f32 %v11220_v50, %v11040_v54 }
 0xa1b   : > { %v8418_v34 = vpack.c.bf16 %v6463_v6, %v6462_v7  ;;  %v8419_v44 = vpack.c.bf16 %v6464_v61, %v6464_v61  ;;  %v11223_v45 = vld [vmem:[#allocation2 + $0x58] sm:$0xff]  ;;  %v6459_v49 = vmul.f32 %v11044_v24, %v11121_v57  ;;  %v6460_v59 = vmul.f32 %v11212_v39, %v11062_v2 }
 0xa1c   : > { %6074 = vrot.lane.b32.xlu1 %v8382_v62, %s8724_s27  ;;  %v11232_v62 = vpack.c.bf16 %v11223_v45, %v11223_v45  ;;  %v6155_v36 = vmul.f32 %v11038_v43, %v11223_v45 }
 0xa1e   : > { %6076 = vrot.lane.b32.xlu0 %v8383_v58, %s8724_s27  ;;  %v6153_v58 = vmul.f32 %v11220_v50, %v11036_v60  ;;  %v8397_v27 = vpack.c.bf16 %v6155_v36, %v6155_v36  ;;  %v6041_v60 = vmul.f32 %v11042_v3, %v11223_v45  ;;  %v6335_v3 = vpop.permute.xlu1 %6334 }
 0xa1f   : > { %v6338_v55 = vsel %vm820_vm6, %v6335_v3, %v6337_v42  ;;  %v6348_v30 = vmul.f32 %v6335_v3, %v11169_v19  ;;  %v6342_v61 = vmul.f32 %v6335_v3, %v11065_v38  ;;  %v6345_v36 = vmul.f32 %v6335_v3, %v11121_v57 }
 0xa20   : > { %5964 = vrot.lane.b32.xlu1 %v11129_v37, %s8720_s19  ;;  %v8396_v17 = vpack.c.bf16 %v6154_v33, %v6153_v58  ;;  %v8389_v29 = vpack.c.bf16 %v6041_v60, %v6041_v60  ;;  %v6346_v58 = vmul.f32 %v6338_v55, %v11062_v2  ;;  %v6353_v33 = vmul.f32 %v6337_v42, %v11223_v45 }
 0xa21   : > { %v6344_v60 = vmul.f32 %v6337_v42, %v11078_v63 }
 0xa22   : > { %5966 = vrot.lane.b32.xlu0 %v11133_v12, %s8720_s19 }
 0xa24   : > { %6588 = vrot.lane.b32.xlu1 %v11129_v37, %s8721_s20 }
 0xa26   : > { %6590 = vrot.lane.b32.xlu0 %v11133_v12, %s8721_s20 }
 0xa28   : > { %6192 = vrot.lane.b32.xlu1 %v8392_v56, %s8723_s26  ;;  %v6456_v56 = vmul.f32 %v11044_v24, %v11065_v38 }
 0xa2a   : > { %6194 = vrot.lane.b32.xlu0 %v8393_v35, %s8723_s26  ;;  %v6457_v35 = vmul.f32 %v11212_v39, %v11058_v40 }
 0xa2c   : > { %6078 = vrot.lane.b32.xlu1 %v8384_v10, %s8724_s27  ;;  %v8414_v43 = vpack.c.bf16 %v6457_v35, %v6456_v56  ;;  %v6467_v10 = vmul.f32 %v11046_v32, %v11223_v45  ;;  %v6649_v56 = vpop.permute.xlu0 %6648  ;;  %v6647_v35 = vpop.permute.xlu1 %6646 }
 0xa2e   : > { %6080 = vrot.lane.b32.xlu0 %v8385_v26, %s8724_s27  ;;  %v6040_v26 = vmul.f32 %v11113_v0, %v11151_v13  ;;  %v8421_v54 = vpack.c.bf16 %v6467_v10, %v6467_v10  ;;  %v8416_v0 = vpack.c.bf16 %v6460_v59, %v6459_v49 }
 0xa30   : > { %5968 = vrot.lane.b32.xlu1 %v11179_v25, %s8720_s19  ;;  %v8388_v28 = vpack.c.bf16 %v6040_v26, %v6039_v9  ;;  %v8407_v9 = vpack.c.bf16 %v6344_v60, %v6344_v60  ;;  %v6660_v26 = vmul.f32 %v6647_v35, %v11169_v19  ;;  %v8036_v60 = vld [vmem:[%s11644_s2 + $0x80] sm:$0xff] }
 0xa32   : > { %5970 = vrot.lane.b32.xlu0 %v11183_v23, %s8720_s19 }
 0xa34   : > { %6592 = vrot.lane.b32.xlu1 %v11179_v25, %s8721_s20 }
 0xa36   : > { %6594 = vrot.lane.b32.xlu0 %v11183_v23, %s8721_s20 }
 0xa38   : > { %6196 = vrot.lane.b32.xlu1 %v8394_v16, %s8723_s26  ;;  %v6458_v16 = vmul.f32 %v11046_v32, %v11078_v63 }
 0xa3a   : > { %6198 = vrot.lane.b32.xlu0 %v8395_v14, %s8723_s26  ;;  %v6349_v14 = vmul.f32 %v6338_v55, %v11148_v31  ;;  %v8415_v41 = vpack.c.bf16 %v6458_v16, %v6458_v16 }
 0xa3c   : > { %6082 = vrot.lane.b32.xlu1 %v8386_v21, %s8724_s27  ;;  %v6461_v21 = vmul.f32 %v11046_v32, %v11124_v51  ;;  %v8410_v7 = vpack.c.bf16 %v6349_v14, %v6348_v30  ;;  %v6656_v14 = vmul.f32 %v6649_v56, %v11078_v63 }
 0xa3e   : > { %6084 = vrot.lane.b32.xlu0 %v8387_v53, %s8724_s27  ;;  %v6343_v53 = vmul.f32 %v6338_v55, %v11058_v40  ;;  %v8417_v6 = vpack.c.bf16 %v6461_v21, %v6461_v21 }
 0xa40   : > { %6508 = vrot.lane.b32.xlu1 %v8418_v34, %s8725_s28  ;;  %v6350_v34 = vmul.f32 %v6337_v42, %v11174_v47 }
 0xa42   : > { %6510 = vrot.lane.b32.xlu0 %v8419_v44, %s8725_s28  ;;  %v8406_v44 = vpack.c.bf16 %v6343_v53, %v6342_v61  ;;  %v8411_v32 = vpack.c.bf16 %v6350_v34, %v6350_v34  ;;  %v8431_v61 = vpack.c.bf16 %v6656_v14, %v6656_v14 }
 0xa44   : > { %5972 = vrot.lane.b32.xlu1 %v11228_v11, %s8720_s19 }
 0xa46   : > { %5974 = vrot.lane.b32.xlu0 %v11232_v62, %s8720_s19 }
 0xa48   : > { %6596 = vrot.lane.b32.xlu1 %v11228_v11, %s8721_s20 }
 0xa4a   : > { %6598 = vrot.lane.b32.xlu0 %v11232_v62, %s8721_s20 }
 0xa4c   : > { %6200 = vrot.lane.b32.xlu1 %v8396_v17, %s8723_s26  ;;  %v8408_v17 = vpack.c.bf16 %v6346_v58, %v6345_v36 }
 0xa4e   : > { %6202 = vrot.lane.b32.xlu0 %v8397_v27, %s8723_s26  ;;  %v8413_v27 = vpack.c.bf16 %v6353_v33, %v6353_v33 }
 0xa50   : > { %6500 = vrot.lane.b32.xlu1 %v8414_v43, %s8725_s28  ;;  %v6650_v43 = vsel %vm255_vm0, %v6647_v35, %v6649_v56  ;;  %vm7338_vm0 = vcmask 1041408  }
 0xa51   : > { %v6661_v10 = vmul.f32 %v6650_v43, %v11148_v31 }
 0xa52   : > { %6088 = vrot.lane.b32.xlu0 %v8389_v29, %s8724_s27  ;;  %v6347_v29 = vmul.f32 %v6337_v42, %v11124_v51  ;;  %v6662_v42 = vmul.f32 %v6649_v56, %v11174_v47  ;;  %v6655_v47 = vmul.f32 %v6650_v43, %v11058_v40 }
 0xa53   : > { %v8434_v49 = vpack.c.bf16 %v6661_v10, %v6660_v26 }
 0xa54   : > { %6086 = vrot.lane.b32.xlu1 %v8388_v28, %s8724_s27  ;;  %v8409_v28 = vpack.c.bf16 %v6347_v29, %v6347_v29  ;;  %v8435_v16 = vpack.c.bf16 %v6662_v42, %v6662_v42 }
 0xa56   : > { %6514 = vrot.lane.b32.xlu0 %v8421_v54, %s8725_s28  ;;  %v6465_v54 = vmul.f32 %v11044_v24, %v11220_v50  ;;  %v6352_v24 = vmul.f32 %v6338_v55, %v11151_v13  ;;  %v6663_v55 = vmul.f32 %v6647_v35, %v11220_v50 }
 0xa58   : > { %6504 = vrot.lane.b32.xlu1 %v8416_v0, %s8725_s28 }
 0xa5a   : > { %6502 = vrot.lane.b32.xlu0 %v8415_v41, %s8725_s28 }
 0xa5c   : > { %6394 = vrot.lane.b32.xlu1 %v8410_v7, %s8726_s30  ;;  %v6657_v7 = vmul.f32 %v6647_v35, %v11121_v57 }
 0xa5e   : > { %6506 = vrot.lane.b32.xlu0 %v8417_v6, %s8725_s28  ;;  %v6659_v6 = vmul.f32 %v6649_v56, %v11124_v51  ;;  %v8038_v51 = vld [vmem:[%s11644_s2 + $0x90] sm:$0xff] }
 0xa60   : > { %6386 = vrot.lane.b32.xlu1 %v8406_v44, %s8726_s30  ;;  %v8433_v33 = vpack.c.bf16 %v6659_v6, %v6659_v6 }
 0xa62   : > { %6396 = vrot.lane.b32.xlu0 %v8411_v32, %s8726_s30 }
 0xa64   : > { %6390 = vrot.lane.b32.xlu1 %v8408_v17, %s8726_s30 }
 0xa66   : > { %6400 = vrot.lane.b32.xlu0 %v8413_v27, %s8726_s30 }
 0xa68   : > { %6280 = vrot.lane.b32.xlu1 %v11179_v25, %s8722_s25  ;;  %v6466_v25 = vmul.f32 %v11212_v39, %v11151_v13  ;;  %v6665_v39 = vmul.f32 %v6649_v56, %v11223_v45  ;;  %v8039_v56 = vld [vmem:[%s11644_s2 + $0x98] sm:$0xff] }
 0xa6a   : > { %6388 = vrot.lane.b32.xlu0 %v8407_v9, %s8726_s30  ;;  %v8420_v31 = vpack.c.bf16 %v6466_v25, %v6465_v54  ;;  %v8437_v59 = vpack.c.bf16 %v6665_v39, %v6665_v39 }
 0xa6c   : > { %6284 = vrot.lane.b32.xlu1 %v11228_v11, %s8722_s25  ;;  %v6351_v11 = vmul.f32 %v6335_v3, %v11220_v50  ;;  %v6664_v3 = vmul.f32 %v6650_v43, %v11151_v13  ;;  %v6658_v13 = vmul.f32 %v6650_v43, %v11062_v2  ;;  %v8037_v43 = vld [vmem:[%s11644_s2 + $0x88] sm:$0xff] }
 0xa6e   : > { %6392 = vrot.lane.b32.xlu0 %v8409_v28, %s8726_s30  ;;  %v8436_v41 = vpack.c.bf16 %v6664_v3, %v6663_v55  ;;  %v8432_v2 = vpack.c.bf16 %v6658_v13, %v6657_v7 }
 0xa70   : > { %6706 = vrot.lane.b32.xlu1 %v8434_v49, %s8727_s7 }
 0xa72   : > { %6282 = vrot.lane.b32.xlu0 %v11183_v23, %s8722_s25  ;;  %v8412_v23 = vpack.c.bf16 %v6352_v24, %v6351_v11 }
 0xa74   : > { %6512 = vrot.lane.b32.xlu1 %v8420_v31, %s8725_s28  ;;  %s251_s28 = scalar_lea.vmem %s11648_s6, %s8097_s18 }
 0xa76   : > { %6286 = vrot.lane.b32.xlu0 %v11232_v62, %s8722_s25  ;;  %v6654_v62 = vmul.f32 %v6647_v35, %v11065_v38 }
 0xa78   : > { %6272 = vrot.lane.b32.xlu1 %v11076_v4, %s8722_s25  ;;  %v8430_v45 = vpack.c.bf16 %v6655_v47, %v6654_v62 }
 0xa7a   : > { %6708 = vrot.lane.b32.xlu0 %v8435_v16, %s8727_s7 }
 0xa7c   : > { %6398 = vrot.lane.b32.xlu1 %v8412_v23, %s8726_s30 }
 0xa7e   : > { %6712 = vrot.lane.b32.xlu0 %v8437_v59, %s8727_s7 }
 0xa80   : > { %6276 = vrot.lane.b32.xlu1 %v11129_v37, %s8722_s25  ;;  %v8538_v37 = vld [vmem:[%s11643_s1 + $0xc4] ss:$12 sps:$4 sm:$0xff]  }
 0xa81   : > { %7056 = vmatprep.mubr.bf16.mxu1 %v8538_v37 }
 0xa82   : > { %6274 = vrot.lane.b32.xlu0 %v11085_v8, %s8722_s25  ;;  %v5961_v4 = vpop.permute.xlu1 %5960 }
 0xa83   : > { %v5976_v30 = vrot.slane %v5961_v4, 4 }
 0xa84   : > { %v5963_v0 = vpop.permute.xlu0 %5962  ;;  %6698 = vrot.lane.b32.xlu1 %v8430_v45, %s8727_s7 }
 0xa85   : > { %v5977_v40 = vrot.slane %v5963_v0, 4 }
 0xa86   : > { %6278 = vrot.lane.b32.xlu0 %v11133_v12, %s8722_s25  ;;  %v6585_v8 = vpop.permute.xlu1 %6584 }
 0xa87   : > { %v5984_v21 = vsel %vm456_vm7, %v5976_v30, %v5977_v40  ;;  %v6600_v12 = vrot.slane %v6585_v8, 4 }
 0xa88   : > { %v11340_v63 = vsel %vm458_vm10, %v5961_v4, %v5984_v21  ;;  %v6587_v53 = vpop.permute.xlu0 %6586  ;;  %6710 = vrot.lane.b32.xlu1 %v8436_v41, %s8727_s7 }
 0xa89   : > { %v6601_v34 = vrot.slane %v6587_v53, 4 }
 0xa8a   : > { %6700 = vrot.lane.b32.xlu0 %v8431_v61, %s8727_s7  ;;  %v11345_v44 = vpop.permute.xlu1 %6188 }
 0xa8b   : > { %v6608_v58 = vsel %vm456_vm7, %v6600_v12, %v6601_v34 }
 0xa8c   : > { %v11349_v36 = vsel %vm1096_vm11, %v6585_v8, %v6608_v58  ;;  %v11351_v32 = vpop.permute.xlu0 %6190  ;;  %6702 = vrot.lane.b32.xlu1 %v8432_v2, %s8727_s7 }
 0xa8d   : > { %v6205_v12 = vrot.slane %v11351_v32, 4 }
 0xa8e   : > { %6704 = vrot.lane.b32.xlu0 %v8433_v33, %s8727_s7  ;;  %v11358_v17 = vpop.permute.xlu1 %6074  ;;  %v6204_v33 = vrot.slane %v11345_v44, 4 }
 0xa90   : > { %v11363_v27 = vpop.permute.xlu0 %6076  ;;  %6800 = vperm.xlu1 %8503, %v8038_v51  }
 0xa92   : > { %6805 = vperm.xlu0 %8502, %v8039_v56   ;;  %v5965_v35 = vpop.permute.xlu1 %5964 }
 0xa93   : > { %v5978_v10 = vrot.slane %v5965_v35, 4 }
 0xa94   : > { %v5967_v9 = vpop.permute.xlu0 %5966  ;;  %6790 = vperm.xlu1 %8503, %v8036_v60  }
 0xa95   : > { %v5979_v29 = vrot.slane %v5967_v9, 4 }
 0xa96   : > { %6795 = vperm.xlu0 %8502, %v8037_v43   ;;  %v6589_v26 = vpop.permute.xlu1 %6588 }
 0xa97   : > { %v5986_v28 = vsel %vm456_vm7, %v5978_v10, %v5979_v29  ;;  %v6602_v11 = vrot.slane %v6589_v26, 4  ;;  %v6212_v29 = vsel %vm456_vm7, %v6204_v33, %v6205_v12 }
 0xa98   : > { %v11373_v49 = vsel %vm458_vm10, %v5965_v35, %v5986_v28  ;;  %v6591_v54 = vpop.permute.xlu0 %6590 }
 0xa99   : > { %v8050_v25 = vcombine.low %v11340_v63, %v11373_v49  ;;  %v8051_v31 = vcombine.high %v11340_v63, %v11373_v49  ;;  %v6603_v42 = vrot.slane %v6591_v54, 4 }
 0xa9a   : > { %v6193_v24 = vpop.permute.xlu1 %6192 }
 0xa9b   : > { %v6610_v16 = vsel %vm456_vm7, %v6602_v11, %v6603_v42  ;;  %v6206_v2 = vrot.slane %v6193_v24, 4 }
 0xa9c   : > { %v11381_v39 = vsel %vm1096_vm11, %v6589_v26, %v6610_v16  ;;  %v6195_v23 = vpop.permute.xlu0 %6194 }
 0xa9d   : > { %v8074_v59 = vcombine.low %v11349_v36, %v11381_v39  ;;  %v8075_v47 = vcombine.high %v11349_v36, %v11381_v39  ;;  %v6207_v61 = vrot.slane %v6195_v23, 4 }
 0xa9e   : > { %v11387_v62 = vpop.permute.xlu1 %6078 }
 0xa9f   : > { %v6214_v56 = vsel %vm456_vm7, %v6206_v2, %v6207_v61  ;;  %v6213_v61 = vsel %vm692_vm8, %v11345_v44, %v6212_v29 }
 0xaa0   : > { %v6081_v4 = vpop.permute.xlu0 %6080  ;;  %v6215_v32 = vsel %vm692_vm8, %v6193_v24, %v6214_v56 }
 0xaa1   : > { %v6093_v11 = vrot.slane %v6081_v4, 4  ;;  %v8059_v2 = vcombine.high %v6213_v61, %v6215_v32  ;;  %v6090_v4 = vrot.slane %v11358_v17, 4 }
 0xaa2   : > { %v11389_v45 = vpop.permute.xlu1 %5968 }
 0xaa4   : > { %v11391_v3 = vpop.permute.xlu0 %5970 }
 0xaa5   : > { %v5981_v29 = vrot.slane %v11391_v3, 4 }
 0xaa6   : > { %v11393_v55 = vpop.permute.xlu1 %6592 }
 0xaa8   : > { %v11395_v0 = vpop.permute.xlu0 %6594 }
 0xaaa   : > { %v6197_v14 = vpop.permute.xlu1 %6196 }
 0xaab   : > { %v6208_v58 = vrot.slane %v6197_v14, 4 }
 0xaac   : > { %v6199_v40 = vpop.permute.xlu0 %6198 }
 0xaad   : > { %v6209_v6 = vrot.slane %v6199_v40, 4 }
 0xaae   : > { %v6083_v30 = vpop.permute.xlu1 %6082 }
 0xaaf   : > { %v6216_v60 = vsel %vm456_vm7, %v6208_v58, %v6209_v6  ;;  %v6094_v16 = vrot.slane %v6083_v30, 4  ;;  %v6091_v6 = vrot.slane %v11363_v27, 4  ;;  %v8058_v27 = vcombine.low %v6213_v61, %v6215_v32 }
 0xab0   : > { %v6085_v37 = vpop.permute.xlu0 %6084  ;;  %v6217_v28 = vsel %vm692_vm8, %v6197_v14, %v6216_v60  ;;  %v5980_v32 = vrot.slane %v11389_v45, 4 }
 0xab1   : > { %v6095_v10 = vrot.slane %v6085_v37, 4  ;;  %v6092_v37 = vrot.slane %v11387_v62, 4 }
 0xab2   : > { %v11397_v8 = vpop.permute.xlu1 %6508 }
 0xab3   : > { %v6102_v24 = vsel %vm456_vm7, %v6094_v16, %v6095_v10  ;;  %v6100_v33 = vsel %vm456_vm7, %v6092_v37, %v6093_v11  ;;  %v5988_v16 = vsel %vm456_vm7, %v5980_v32, %v5981_v29 }
 0xab4   : > { %v11399_v41 = vpop.permute.xlu0 %6510  ;;  %v6103_v56 = vsel %vm575_vm9, %v6083_v30, %v6102_v24  ;;  %v5989_v61 = vsel %vm458_vm10, %v11389_v45, %v5988_v16 }
 0xab6   : > { %v11401_v13 = vpop.permute.xlu1 %5972 }
 0xab7   : > { %v5982_v10 = vrot.slane %v11401_v13, 4 }
 0xab8   : > { %v5975_v21 = vpop.permute.xlu0 %5974 }
 0xaba   : > { %v11403_v7 = vpop.permute.xlu1 %6596 }
 0xabc   : > { %v11405_v53 = vpop.permute.xlu0 %6598 }
 0xabe   : > { %v6201_v34 = vpop.permute.xlu1 %6200 }
 0xabf   : > { %v6210_v43 = vrot.slane %v6201_v34, 4 }
 0xac0   : > { %v6203_v51 = vpop.permute.xlu0 %6202 }
 0xac1   : > { %v6211_v35 = vrot.slane %v6203_v51, 4  ;;  %v5983_v51 = vrot.slane %v5975_v21, 4  ;;  %v6101_v21 = vsel %vm575_vm9, %v11387_v62, %v6100_v33  ;;  %v6606_v33 = vrot.slane %v11403_v7, 4 }
 0xac2   : > { %v11411_v9 = vpop.permute.xlu1 %6500 }
 0xac3   : > { %v6218_v26 = vsel %vm456_vm7, %v6210_v43, %v6211_v35  ;;  %v6098_v43 = vsel %vm456_vm7, %v6090_v4, %v6091_v6  ;;  %v5990_v30 = vsel %vm456_vm7, %v5982_v10, %v5983_v51  ;;  %v6605_v4 = vrot.slane %v11395_v0, 4 }
 0xac4   : > { %v6219_v54 = vsel %vm692_vm8, %v6201_v34, %v6218_v26  ;;  %v6089_v42 = vpop.permute.xlu0 %6088  ;;  %v5991_v62 = vsel %vm458_vm10, %v11401_v13, %v5990_v30  ;;  %v5873_v13 = vrot.slane %v11052_v22, %v8783_v5  ;;  %v6604_v22 = vrot.slane %v11393_v55, 4 }
 0xac5   : > { %v8060_v23 = vcombine.low %v6217_v28, %v6219_v54  ;;  %v8061_v40 = vcombine.high %v6217_v28, %v6219_v54  ;;  %v6097_v58 = vrot.slane %v6089_v42, 4  ;;  %v6099_v54 = vsel %vm575_vm9, %v11358_v17, %v6098_v43 }
 0xac6   : > { %v6087_v12 = vpop.permute.xlu1 %6086  ;;  %v8055_v3 = vcombine.high %v6099_v54, %v6101_v21  ;;  %v8053_v37 = vcombine.high %v5989_v61, %v5991_v62  ;;  %v5884_v5 = vmul.f32 %v11169_v19, %v5873_v13  ;;  %v5880_v19 = vmul.f32 %v11065_v38, %v5873_v13 }
 0xac7   : > { %7024 = vmatprep.subr.bf16.mxu1 %v8061_v40  ;;  %v6096_v14 = vrot.slane %v6087_v12, 4  ;;  %v8054_v40 = vcombine.low %v6099_v54, %v6101_v21 }
 0xac8   : > { %v11423_v34 = vpop.permute.xlu0 %6514  ;;  %7025 = vmatpush1.bf16.msra.mxu1 %v8060_v23 }
 0xac9   : > { %v6104_v44 = vsel %vm456_vm7, %v6096_v14, %v6097_v58  ;;  %7026 = vmatprep.subr.bf16.mxu1 %v8059_v2  ;;  %v6607_v58 = vrot.slane %v11405_v53, 4  ;;  %v5886_v14 = vmul.f32 %v11220_v50, %v5873_v13  ;;  %v5882_v53 = vmul.f32 %v11121_v57, %v5873_v13 }
 0xaca   : > { %v6105_v60 = vsel %vm575_vm9, %v6087_v12, %v6104_v44  ;;  %v11430_v35 = vpop.permute.xlu1 %6504  ;;  %v8052_v12 = vcombine.low %v5989_v61, %v5991_v62  ;;  %v6612_v44 = vsel %vm456_vm7, %v6604_v22, %v6605_v4  ;;  %v6521_v57 = vrot.slane %v11399_v41, 4 }
 0xacb   : > { %v8057_v26 = vcombine.high %v6103_v56, %v6105_v60  ;;  %v8056_v42 = vcombine.low %v6103_v56, %v6105_v60  ;;  %v8456_v50 = vpack.c.bf16 %v5886_v14, %v5884_v5  ;;  %v6613_v48 = vsel %vm1096_vm11, %v11393_v55, %v6612_v44 }
 0xacc   : > { %v11437_v28 = vpop.permute.xlu0 %6502  ;;  %7027 = vmatpush1.bf16.msra.mxu1 %v8058_v27  ;;  %v8454_v1 = vpack.c.bf16 %v5882_v53, %v5880_v19  ;;  %v6518_v15 = vrot.slane %v11430_v35, 4  ;;  %v6523_v55 = vrot.slane %v11423_v34, 4  ;;  %v6516_v41 = vrot.slane %v11411_v9, 4 }
 0xacd   : > { %7028 = vmatprep.subr.bf16.mxu1 %v8057_v26  ;;  %v6517_v60 = vrot.slane %v11437_v28, 4 }
 0xace   : > { %v11443_v11 = vpop.permute.xlu1 %6394 }
 0xacf   : > { %v6524_v28 = vsel %vm456_vm7, %v6516_v41, %v6517_v60 }
 0xad0   : > { %v6507_v23 = vpop.permute.xlu0 %6506  ;;  %7029 = vmatpush1.bf16.msra.mxu1 %v8056_v42 }
 0xad1   : > { %7030 = vmatprep.subr.bf16.mxu1 %v8055_v3  ;;  %v6519_v27 = vrot.slane %v6507_v23, 4  ;;  %v6406_v3 = vrot.slane %v11443_v11, 4 }
 0xad2   : > { %v11450_v6 = vpop.permute.xlu1 %6386 }
 0xad3   : > { %v6526_v29 = vsel %vm456_vm7, %v6518_v15, %v6519_v27  ;;  %v6402_v39 = vrot.slane %v11450_v6, 4 }
 0xad4   : > { %v11452_v17 = vpop.permute.xlu0 %6396  ;;  %7031 = vmatpush1.bf16.msra.mxu1 %v8054_v40  ;;  %v6527_v42 = vsel %vm1011_vm12, %v11430_v35, %v6526_v29 }
 0xad5   : > { %7032 = vmatprep.subr.bf16.mxu1 %v8053_v37  ;;  %v6407_v34 = vrot.slane %v11452_v17, 4 }
 0xad6   : > { %v11454_v2 = vpop.permute.xlu1 %6390 }
 0xad7   : > { %v6414_v62 = vsel %vm456_vm7, %v6406_v3, %v6407_v34  ;;  %v6404_v35 = vrot.slane %v11454_v2, 4 }
 0xad8   : > { %v11456_v24 = vpop.permute.xlu0 %6400  ;;  %7033 = vmatpush1.bf16.msra.mxu1 %v8052_v12 }
 0xad9   : > { %7034 = vmatprep.subr.bf16.mxu1 %v8051_v31  ;;  %v6614_v31 = vsel %vm456_vm7, %v6606_v33, %v6607_v58  ;;  %v6409_v37 = vrot.slane %v11456_v24, 4  ;;  %v6415_v24 = vsel %vm894_vm13, %v11443_v11, %v6414_v62 }
 0xada   : > { %v11464_v45 = vpop.permute.xlu1 %6280  ;;  %v6615_v63 = vsel %vm1096_vm11, %v11403_v7, %v6614_v31  ;;  %v6520_v7 = vrot.slane %v11397_v8, 4 }
 0xadb   : > { %v8076_v38 = vcombine.low %v6613_v48, %v6615_v63  ;;  %v6292_v31 = vrot.slane %v11464_v45, 4 }
 0xadc   : > { %v11469_v51 = vpop.permute.xlu0 %6388  ;;  %7035 = vmatpush1.bf16.msra.mxu1 %v8050_v25  ;;  %v8077_v25 = vcombine.high %v6613_v48, %v6615_v63 }
 0xadd   : > { %7036 = vmatprep.subr.bf16.mxu1 %v8457_v20  ;;  %v6403_v17 = vrot.slane %v11469_v51, 4 }
 0xade   : > { %v11480_v0 = vpop.permute.xlu1 %6284 }
 0xadf   : > { %v6294_v14 = vrot.slane %v11480_v0, 4  ;;  %v6410_v5 = vsel %vm456_vm7, %v6402_v39, %v6403_v17  ;;  %v8540_v17 = vld [vmem:[%s11643_s1 + $0xdc] ss:$12 sps:$4 sm:$0xff]   ;;  %v8542_v39 = vld [vmem:[%s11643_s1 + $0xd8] ss:$12 sps:$4 sm:$0xff]  }
 0xae0   : > { %v6393_v49 = vpop.permute.xlu0 %6392  ;;  %7037 = vmatpush1.bf16.msra.mxu1 %v8456_v50  ;;  %v6411_v48 = vsel %vm894_vm13, %v11450_v6, %v6410_v5 }
 0xae1   : > { %7038 = vmatprep.subr.bf16.mxu1 %v8455_v18  ;;  %v6528_v18 = vsel %vm456_vm7, %v6520_v7, %v6521_v57 }
 0xae2   : > { %v11492_v20 = vpop.permute.xlu1 %6706  ;;  %v6529_v21 = vsel %vm1011_vm12, %v11397_v8, %v6528_v18  ;;  %v6525_v8 = vsel %vm1011_vm12, %v11411_v9, %v6524_v28 }
 0xae3   : > { %v8071_v61 = vcombine.high %v6525_v8, %v6527_v42  ;;  %v8070_v58 = vcombine.low %v6525_v8, %v6527_v42  ;;  %v6718_v27 = vrot.slane %v11492_v20, 4 }
 0xae4   : > { %v6283_v56 = vpop.permute.xlu0 %6282  ;;  %7039 = vmatpush1.bf16.msra.mxu1 %v8454_v1 }
 0xae5   : > { %7040 = vmatprep.subr.bf16.mxu1 %v8077_v25  ;;  %v6293_v4 = vrot.slane %v6283_v56, 4 }
 0xae6   : > { %v6513_v52 = vpop.permute.xlu1 %6512 }
 0xae7   : > { %v6522_v43 = vrot.slane %v6513_v52, 4  ;;  %v6300_v63 = vsel %vm456_vm7, %v6292_v31, %v6293_v4 }
 0xae8   : > { %v6287_v10 = vpop.permute.xlu0 %6286  ;;  %7041 = vmatpush2.bf16.msra.mxu1 %v8076_v38  ;;  %v6301_v60 = vsel %vm777_vm15, %v11464_v45, %v6300_v63 }
 0xae9   : > { %v6530_v26 = vsel %vm456_vm7, %v6522_v43, %v6523_v55  ;;  %7042 = vmatprep.subr.bf16.mxu1 %v8075_v47  ;;  %v6405_v47 = vrot.slane %v6393_v49, 4  ;;  %v6295_v13 = vrot.slane %v6287_v10, 4 }
 0xaea   : > { %v6531_v32 = vsel %vm1011_vm12, %v6513_v52, %v6530_v26  ;;  %v11511_v30 = vpop.permute.xlu1 %6272 }
 0xaeb   : > { %v8073_v54 = vcombine.high %v6529_v21, %v6531_v32  ;;  %v8072_v23 = vcombine.low %v6529_v21, %v6531_v32  ;;  %v6302_v50 = vsel %vm456_vm7, %v6294_v14, %v6295_v13 }
 0xaec   : > { %v6709_v16 = vpop.permute.xlu0 %6708  ;;  %7043 = vmatpush2.bf16.msra.mxu1 %v8074_v59  ;;  %v6412_v59 = vsel %vm456_vm7, %v6404_v35, %v6405_v47  ;;  %v6303_v25 = vsel %vm777_vm15, %v11480_v0, %v6302_v50 }
 0xaed   : > { %7044 = vmatprep.subr.bf16.mxu1 %v8073_v54  ;;  %v6413_v44 = vsel %vm894_vm13, %v11454_v2, %v6412_v59  ;;  %v6719_v49 = vrot.slane %v6709_v16, 4  ;;  %v6288_v2 = vrot.slane %v11511_v30, 4  ;;  %v8065_v18 = vcombine.high %v6301_v60, %v6303_v25  ;;  %v8543_v59 = vld [vmem:[%s11643_s1 + $0xe0] ss:$12 sps:$4 sm:$0xff]  }
 0xaee   : > { %v6399_v40 = vpop.permute.xlu1 %6398  ;;  %v8067_v57 = vcombine.high %v6411_v48, %v6413_v44  ;;  %v8066_v6 = vcombine.low %v6411_v48, %v6413_v44  ;;  %v8064_v34 = vcombine.low %v6301_v60, %v6303_v25 }
 0xaef   : > { %v6408_v12 = vrot.slane %v6399_v40, 4  ;;  %v6726_v15 = vsel %vm456_vm7, %v6718_v27, %v6719_v49 }
 0xaf0   : > { %v6713_v36 = vpop.permute.xlu0 %6712  ;;  %7045 = vmatpush2.bf16.msra.mxu1 %v8072_v23  ;;  %v6727_v45 = vsel %vm1212_vm14, %v11492_v20, %v6726_v15 }
 0xaf1   : > { %v6416_v9 = vsel %vm456_vm7, %v6408_v12, %v6409_v37  ;;  %7046 = vmatprep.subr.bf16.mxu1 %v8071_v61  ;;  %v6721_v55 = vrot.slane %v6713_v36, 4  ;;  %v8539_v36 = vld [vmem:[%s11643_s1 + $0xc8] ss:$12 sps:$4 sm:$0xff]  }
 0xaf2   : > { %v6417_v33 = vsel %vm894_vm13, %v6399_v40, %v6416_v9  ;;  %v6277_v51 = vpop.permute.xlu1 %6276 }
 0xaf3   : > { %v8069_v22 = vcombine.high %v6415_v24, %v6417_v33  ;;  %v8068_v11 = vcombine.low %v6415_v24, %v6417_v33  ;;  %v6290_v7 = vrot.slane %v6277_v51, 4 }
 0xaf4   : > { %v6275_v53 = vpop.permute.xlu0 %6274  ;;  %7047 = vmatpush2.bf16.msra.mxu1 %v8070_v58 }
 0xaf5   : > { %7048 = vmatprep.subr.bf16.mxu1 %v8069_v22  ;;  %v6289_v1 = vrot.slane %v6275_v53, 4 }
 0xaf6   : > { %v6699_v19 = vpop.permute.xlu1 %6698 }
 0xaf7   : > { %v6296_v0 = vsel %vm456_vm7, %v6288_v2, %v6289_v1  ;;  %v6714_v42 = vrot.slane %v6699_v19, 4 }
 0xaf8   : > { %v6279_v56 = vpop.permute.xlu0 %6278  ;;  %7049 = vmatpush2.bf16.msra.mxu1 %v8068_v11  ;;  %v6297_v54 = vsel %vm777_vm15, %v11511_v30, %v6296_v0  ;;  %v8536_v30 = vld [vmem:[%s11643_s1 + $0xc0] ss:$12 sps:$4 sm:$0xff]  }
 0xaf9   : > { %v6291_v38 = vrot.slane %v6279_v56, 4  ;;  %7050 = vmatprep.subr.bf16.mxu1 %v8067_v57 }
 0xafa   : > { %v6711_v52 = vpop.permute.xlu1 %6710 }
 0xafb   : > { %v6298_v43 = vsel %vm456_vm7, %v6290_v7, %v6291_v38  ;;  %v6720_v41 = vrot.slane %v6711_v52, 4 }
 0xafc   : > { %v6701_v29 = vpop.permute.xlu0 %6700  ;;  %7051 = vmatpush2.bf16.msra.mxu1 %v8066_v6  ;;  %v6299_v10 = vsel %vm777_vm15, %v6277_v51, %v6298_v43 }
 0xafd   : > { %v6715_v26 = vrot.slane %v6701_v29, 4  ;;  %v6728_v21 = vsel %vm456_vm7, %v6720_v41, %v6721_v55  ;;  %7052 = vmatprep.subr.bf16.mxu1 %v8065_v18  ;;  %v8063_v47 = vcombine.high %v6297_v54, %v6299_v10  ;;  %v8062_v20 = vcombine.low %v6297_v54, %v6299_v10 }
 0xafe   : > { %v6729_v28 = vsel %vm1212_vm14, %v6711_v52, %v6728_v21  ;;  %v6703_v32 = vpop.permute.xlu1 %6702 }
 0xaff   : > { %v8080_v3 = vcombine.low %v6727_v45, %v6729_v28  ;;  %v8081_v16 = vcombine.high %v6727_v45, %v6729_v28  ;;  %v6722_v62 = vsel %vm456_vm7, %v6714_v42, %v6715_v26  ;;  %v6716_v40 = vrot.slane %v6703_v32, 4 }
 0xb00   : > { %v6705_v8 = vpop.permute.xlu0 %6704  ;;  %7053 = vmatpush2.bf16.msra.mxu1 %v8064_v34  ;;  %v6723_v37 = vsel %vm1212_vm14, %v6699_v19, %v6722_v62 }
 0xb01   : > { %v6717_v23 = vrot.slane %v6705_v8, 4  ;;  %7054 = vmatprep.subr.bf16.mxu1 %v8063_v47  ;;  %7089 = vmatprep.subr.bf16.mxu0 %v8081_v16 }
 0xb02   : > { %7090 = vmatpush1.bf16.msra.mxu0 %v8080_v3 }
 0xb03   : > { %v6724_v61 = vsel %vm456_vm7, %v6716_v40, %v6717_v23 }
 0xb04   : > { %v6725_v35 = vsel %vm1212_vm14, %v6703_v32, %v6724_v61  ;;  %7055 = vmatpush2.bf16.msra.mxu1 %v8062_v20 }
 0xb05   : > { %v8078_v12 = vcombine.low %v6723_v37, %v6725_v35  ;;  %v8079_v13 = vcombine.high %v6723_v37, %v6725_v35 }
 0xb07   : > { %7057 = vmatmul.mubr.bf16.vlgmr.msra.gmra.mxu1 %v8536_v30  ;;  %7091 = vmatprep.subr.bf16.mxu0 %v8079_v13 }
 0xb08   : > { %7092 = vmatpush1.bf16.msra.mxu0 %v8078_v12  ;;  %7066 = vmatprep.mubr.bf16.mxu1 %v8540_v17 }
 0xb0b   : > { %8082 = vmatmul.mubr.msk.bf16.vlgmr.msra.gmra.mxu0 %vm937_vm5, %v8539_v36  ;;  %v6801_v9 = vpop.permute.xlu1 %6800 }
 0xb0c   : > { %7119 = vmatprep.mubr.bf16.mxu0 %v8728_v46 }
 0xb0d   : > { %v6806_v14 = vpop.permute.xlu0 %6805 }
 0xb0f   : > { %7067 = vmatmul.mubr.bf16.gmra.mxu1 %v8542_v39  ;;  %v6791_v4 = vpop.permute.xlu1 %6790 }
 0xb11   : > { %v6796_v44 = vpop.permute.xlu0 %6795 }
 0xb13   : > { %8083 = vmatmul.mubr.msk.bf16.gmra.mxu0 %vm937_vm5, %v8543_v59 }
 0xb14   : > { %7324 = vmatprep.mubr.bf16.mxu0 %v8728_v46 }
 0xbc7   : > { %v7058_v58 = vpop.f32.mrf.mxu1 }
 0xbc8   : > { %v7059_v33 = vadd.f32 %v7058_v58, %v6791_v4 }
 0xbc9   : > { %v7060_v24 = vpop.f32.mrf.mxu1 }
 0xbca   : > { %v7061_v22 = vadd.f32 %v7060_v24, %v6791_v4 }
 0xbcb   : > { %v7062_v51 = vpop.f32.mrf.mxu1  ;;  %v7111_v5 = vpop.f32.mrf.mxu0 }
 0xbcc   : > { %v11579_v31 = vadd.f32 %v7111_v5, %v7059_v33  ;;  %v7063_v11 = vadd.f32 %v7062_v51, %v6796_v44 }
 0xbcd   : > { %v7064_v50 = vpop.f32.mrf.mxu1  ;;  %v7113_v53 = vpop.f32.mrf.mxu0 }
 0xbce   : > { %v8084_v63 = vmul.f32 -1.442695, %v11579_v31  ;;  %v11582_v49 = vadd.f32 %v7113_v53, %v7061_v22  ;;  %v7065_v1 = vadd.f32 %v7064_v50, %v6796_v44 }
 0xbcf   : > { %v7068_v46 = vpop.f32.mrf.mxu1  ;;  %v7115_v19 = vpop.f32.mrf.mxu0 }
 0xbd0   : > { %8673 = vpow2.f32 %v8084_v63  ;;  %v8085_v48 = vmul.f32 -1.442695, %v11582_v49  ;;  %v11585_v57 = vadd.f32 %v7115_v19, %v7063_v11  ;;  %v7069_v56 = vadd.f32 %v7068_v46, %v6801_v9 }
 0xbd1   : > { %v7070_v25 = vpop.f32.mrf.mxu1  ;;  %v7117_v27 = vpop.f32.mrf.mxu0 }
 0xbd2   : > { %8675 = vpow2.f32 %v8085_v48  ;;  %v11587_v2 = vadd.f32 %v7117_v27, %v7065_v1  ;;  %v7071_v60 = vadd.f32 %v7070_v25, %v6801_v9  ;;  %v8086_v6 = vmul.f32 -1.442695, %v11585_v57 }
 0xbd3   : > { %v7072_v7 = vpop.f32.mrf.mxu1  ;;  %v7121_v38 = vpop.f32.mrf.mxu0 }
 0xbd4   : > { %v7122_v15 = vadd.f32 %v7121_v38, %v7069_v56  ;;  %v7073_v55 = vadd.f32 %v7072_v7, %v6806_v14  ;;  %v8087_v41 = vmul.f32 -1.442695, %v11587_v2 }
 0xbd5   : > { %v7074_v52 = vpop.f32.mrf.mxu1  ;;  %v7123_v18 = vpop.f32.mrf.mxu0 }
 0xbd6   : > { %v8088_v0 = vmul.f32 -1.442695, %v7122_v15  ;;  %v7124_v43 = vadd.f32 %v7123_v18, %v7071_v60  ;;  %v7075_v10 = vadd.f32 %v7074_v52, %v6806_v14 }
 0xbd7   : > { %v7125_v29 = vpop.f32.mrf.mxu0 }
 0xbd8   : > { %8677 = vpow2.f32 %v8088_v0  ;;  %v8089_v26 = vmul.f32 -1.442695, %v7124_v43  ;;  %v7126_v21 = vadd.f32 %v7125_v29, %v7073_v55 }
 0xbd9   : > { %8679 = vpow2.f32 %v8086_v6  ;;  %v7127_v45 = vpop.f32.mrf.mxu0 }
 0xbda   : > { %8681 = vpow2.f32 %v8089_v26  ;;  %v8090_v28 = vmul.f32 -1.442695, %v7126_v21  ;;  %v7128_v34 = vadd.f32 %v7127_v45, %v7075_v10 }
 0xbdb   : > { %8683 = vpow2.f32 %v8087_v41 }
 0xbdc   : > { %8685 = vpow2.f32 %v8090_v28  ;;  %v8091_v32 = vmul.f32 -1.442695, %v7128_v34 }
 0xbdd   : > { %v8674_v54 = vpop.eup %8673 }
 0xbde   : > { %v7154_v42 = vadd.f32 1.0, %v8674_v54  ;;  %8687 = vpow2.f32 %v8091_v32 }
 0xbdf   : > { %v8676_v3 = vpop.eup %8675 }
 0xbe0   : > { %8689 = vrcp.f32 %v7154_v42  ;;  %v7155_v16 = vadd.f32 1.0, %v8676_v3 }
 0xbe2   : > { %8691 = vrcp.f32 %v7155_v16 }
 0xbe5   : > { %v8678_v47 = vpop.eup %8677 }
 0xbe6   : > { %v8680_v8 = vpop.eup %8679  ;;  %v7158_v62 = vadd.f32 1.0, %v8678_v47  ;;  %v8544_v47 = vld [vmem:[%s11645_s3] sm:$0x1f]  }
 0xbe7   : > { %v8682_v23 = vpop.eup %8681  ;;  %v7156_v30 = vadd.f32 1.0, %v8680_v8 }
 0xbe8   : > { %v8684_v40 = vpop.eup %8683  ;;  %8693 = vrcp.f32 %v7158_v62  ;;  %v7159_v20 = vadd.f32 1.0, %v8682_v23 }
 0xbe9   : > { %v8686_v61 = vpop.eup %8685  ;;  %v7157_v17 = vadd.f32 1.0, %v8684_v40 }
 0xbea   : > { %8695 = vrcp.f32 %v7159_v20  ;;  %v7160_v37 = vadd.f32 1.0, %v8686_v61 }
 0xbeb   : > { %v8688_v35 = vpop.eup %8687 }
 0xbec   : > { %8697 = vrcp.f32 %v7160_v37  ;;  %v7161_v12 = vadd.f32 1.0, %v8688_v35  ;;  %v7347_v35 = vld [vmem:[%s11646_s4] sm:$0xff] }
 0xbed   : > { %v8690_v13 = vpop.eup %8689  ;;  %8699 = vrcp.f32 %v7156_v30 }
 0xbee   : > { %v7178_v36 = vmul.f32 %v8690_v13, %v11579_v31  ;;  %8701 = vrcp.f32 %v7161_v12 }
 0xbef   : > { %v8692_v39 = vpop.eup %8691  ;;  %8703 = vrcp.f32 %v7157_v17 }
 0xbf0   : > { %v7179_v59 = vmul.f32 %v8692_v39, %v11582_v49  ;;  %7194 = vrot.lane.b32.xlu1 %v7178_v36, %s8715_s8  ;;  %v7348_v36 = vld [vmem:[%s11646_s4 + $0x8] sm:$0x3] }
 0xbf2   : > { %7196 = vrot.lane.b32.xlu0 %v7179_v59, %s8715_s8 }
 0xbf5   : > { %v8694_v9 = vpop.eup %8693 }
 0xbf6   : > { %v7182_v58 = vmul.f32 %v8694_v9, %v7122_v15 }
 0xbf7   : > { %v8696_v14 = vpop.eup %8695 }
 0xbf8   : > { %v7183_v4 = vmul.f32 %v8696_v14, %v7124_v43  ;;  %7202 = vrot.lane.b32.xlu1 %v7182_v58, %s8715_s8 }
 0xbf9   : > { %v8698_v24 = vpop.eup %8697 }
 0xbfa   : > { %v8700_v33 = vpop.eup %8699  ;;  %v7184_v51 = vmul.f32 %v8698_v24, %v7126_v21  ;;  %7204 = vrot.lane.b32.xlu0 %v7183_v4, %s8715_s8 }
 0xbfb   : > { %v8702_v5 = vpop.eup %8701  ;;  %v7180_v50 = vmul.f32 %v8700_v33, %v11585_v57 }
 0xbfc   : > { %v7185_v22 = vmul.f32 %v8702_v5, %v7128_v34  ;;  %7206 = vrot.lane.b32.xlu1 %v7184_v51, %s8715_s8  ;;  %v8704_v31 = vpop.eup %8703 }
 0xbfd   : > { %v7181_v53 = vmul.f32 %v8704_v31, %v11587_v2 }
 0xbfe   : > { %7208 = vrot.lane.b32.xlu0 %v7185_v22, %s8715_s8 }
 0xc00   : > { %7198 = vrot.lane.b32.xlu1 %v7180_v50, %s8715_s8 }
 0xc02   : > { %7200 = vrot.lane.b32.xlu0 %v7181_v53, %s8715_s8 }
 0xc62   : > { %v7195_v44 = vpop.permute.xlu1 %7194 }
 0xc63   : > { %7226 = vst.msk [vmem:[#allocation2] sm:$0xff] %vm319_vm2, %v7195_v44 }
 0xc64   : > { %v7197_v63 = vpop.permute.xlu0 %7196 }
 0xc65   : > { %v7210_v49 = vsel %vm302_vm1, %v7195_v44, %v7197_v63  ;;  %7228 = vst.msk [vmem:[#allocation2 + $0x10] sm:$0xff] %vm302_vm1, %v7197_v63 }
 0xc6a   : > { %v7203_v11 = vpop.permute.xlu1 %7202  ;;  %v7238_v29 = vld [vmem:[#allocation2] sm:$0xff] }
 0xc6b   : > { %7232 = vst.msk [vmem:[#allocation2 + $0x30] sm:$0xff] %vm319_vm2, %v7203_v11 }
 0xc6c   : > { %v7205_v46 = vpop.permute.xlu0 %7204  ;;  %v7240_v0 = vld [vmem:[#allocation2 + $0x10] sm:$0xff] }
 0xc6d   : > { %v7212_v19 = vsel %vm302_vm1, %v7203_v11, %v7205_v46  ;;  %7234 = vst.msk [vmem:[#allocation2 + $0x40] sm:$0xff] %vm302_vm1, %v7205_v46 }
 0xc6e   : > { %v7207_v48 = vpop.permute.xlu1 %7206 }
 0xc6f   : > { %7235 = vst.msk [vmem:[#allocation2 + $0x48] sm:$0xff] %vm319_vm2, %v7207_v48 }
 0xc70   : > { %v7209_v1 = vpop.permute.xlu0 %7208 }
 0xc71   : > { %v7213_v57 = vsel %vm302_vm1, %v7207_v48, %v7209_v1  ;;  %7237 = vst.msk [vmem:[#allocation2 + $0x58] sm:$0xff] %vm302_vm1, %v7209_v1 }
 0xc72   : > { %v7199_v25 = vpop.permute.xlu1 %7198  ;;  %v7244_v2 = vld [vmem:[#allocation2 + $0x30] sm:$0xff]  ;;  %v7254_v52 = vpack.c.bf16 %v7213_v57, %v7212_v19 }
 0xc73   : > { %7229 = vst.msk [vmem:[#allocation2 + $0x18] sm:$0xff] %vm319_vm2, %v7199_v25  ;;  %vm7353_vm2 = vcmask 1024  }
 0xc74   : > { %v7201_v27 = vpop.permute.xlu0 %7200  ;;  %v7246_v60 = vld [vmem:[#allocation2 + $0x40] sm:$0xff] }
 0xc75   : > { %v7211_v56 = vsel %vm302_vm1, %v7199_v25, %v7201_v27  ;;  %7231 = vst.msk [vmem:[#allocation2 + $0x28] sm:$0xff] %vm302_vm1, %v7201_v27  ;;  %vm7351_vm1 = vcmask 7168  }
 0xc76   : > { %v7247_v7 = vld [vmem:[#allocation2 + $0x48] sm:$0xff]  ;;  %v7251_v55 = vpack.c.bf16 %v7211_v56, %v7210_v49 }
 0xc77   : > { %v7253_v38 = vpack.c.bf16 %v7247_v7, %v7244_v2 }
 0xc78   : > { %v7249_v15 = vld [vmem:[#allocation2 + $0x58] sm:$0xff] }
 0xc79   : > { %7275 = vrot.lane.b32.xlu1 %v7253_v38, %s8722_s25  ;;  %v7255_v6 = vpack.c.bf16 %v7249_v15, %v7246_v60 }
 0xc7a   : > { %v7241_v43 = vld [vmem:[#allocation2 + $0x18] sm:$0xff] }
 0xc7b   : > { %7279 = vrot.lane.b32.xlu0 %v7255_v6, %s8722_s25  ;;  %v7250_v10 = vpack.c.bf16 %v7241_v43, %v7238_v29 }
 0xc7c   : > { %v7243_v18 = vld [vmem:[#allocation2 + $0x28] sm:$0xff] }
 0xc7d   : > { %7277 = vrot.lane.b32.xlu1 %v7254_v52, %s8722_s25  ;;  %v7252_v41 = vpack.c.bf16 %v7243_v18, %v7240_v0 }
 0xc7f   : > { %7271 = vrot.lane.b32.xlu0 %v7251_v55, %s8722_s25 }
 0xc81   : > { %7273 = vrot.lane.b32.xlu1 %v7252_v41, %s8722_s25 }
 0xc83   : > { %7269 = vrot.lane.b32.xlu0 %v7250_v10, %s8722_s25 }
 0xceb   : > { %v7276_v26 = vpop.permute.xlu1 %7275 }
 0xced   : > { %v7280_v21 = vpop.permute.xlu0 %7279 }
 0xcef   : > { %v7278_v45 = vpop.permute.xlu1 %7277 }
 0xcf0   : > { %v7283_v28 = vsel %vm777_vm15, %v7276_v26, %v7278_v45  ;;  %v7284_v34 = vsel %vm777_vm15, %v7278_v45, %v7280_v21 }
 0xcf1   : > { %7304 = vmatprep.subr.bf16.mxu0 %v7284_v34  ;;  %v7272_v32 = vpop.permute.xlu0 %7271 }
 0xcf2   : > { %7305 = vmatpush1.bf16.msra.mxu0 %v7283_v28 }
 0xcf3   : > { %v7274_v54 = vpop.permute.xlu1 %7273 }
 0xcf4   : > { %v7282_v42 = vsel %vm777_vm15, %v7272_v32, %v7274_v54 }
 0xcf5   : > { %7306 = vmatprep.subr.bf16.mxu0 %v7282_v42  ;;  %v7270_v3 = vpop.permute.xlu0 %7269 }
 0xcf6   : > { %v7281_v16 = vsel %vm777_vm15, %v7270_v3, %v7272_v32 }
 0xcf7   : > { %7307 = vmatpush1.bf16.msra.mxu0 %v7281_v16 }
 0xcfa   : > { %8093 = vmatmul.mubr.msk.bf16.vlgmr.msra.gmra.mxu0 %vm937_vm5, %v8544_v47 }
 0xdba   : > { %v7326_v8 = vpop.f32.mrf.mxu0 }
 0xdbc   : > { %v7328_v62 = vpop.f32.mrf.mxu0 }
 0xdbd   : > { %v7335_v23 = vadd.f32 %v7328_v62, %v7326_v8 }
 0xdbe   : > { %v7330_v40 = vpop.f32.mrf.mxu0 }
 0xdbf   : > { %7336 = vadd.xlane.f32.xlu1 %v7335_v23  ;;  %v7339_v61 = vsel %vm7338_vm0, %v7330_v40, 0.0 }
 0xdc0   : > { %v7332_v20 = vpop.f32.mrf.mxu0 }
 0xdc1   : > { %v7340_v30 = vsel %vm7338_vm0, %v7332_v20, 0.0 }
 0xdc2   : > { %v7341_v37 = vadd.f32 %v7340_v30, %v7339_v61 }
 0xdc4   : > { %7342 = vadd.xlane.f32.xlu0 %v7341_v37 }
 0xe48   : > { %v7337_v17 = vpop.xlane.xlu1 %7336 }
 0xe49   : > { %v7345_v12 = vmul.f32 0.00390625, %v7337_v17 }
 0xe4b   : > { %v7349_v13 = vadd.f32 %v7347_v35, %v7345_v12 }
 0xe4d   : > { %7352 = vst.msk [vmem:[%s251_s28] sm:$0xff] %vm7351_vm1, %v7349_v13  ;;  %v7343_v39 = vpop.xlane.xlu0 %7342 }
 0xe4e   : > { %v7346_v59 = vmul.f32 0.00390625, %v7343_v39 }
 0xe50   : > { %v7350_v9 = vadd.f32 %v7348_v36, %v7346_v59 }
 0xe52   : > { %7354 = vst.msk [vmem:[%s251_s28 + $0x8] sm:$0x3] %vm7353_vm2, %v7350_v9 }
 0xe53 PF: > { %s16_s21 = sadd.s32 1, %s8711_s21  }
 0xe54   : > { %p13_p4 = scmp.ge.s32.totalorder %s16_s21, 4  }
 0xe56   :  { %15 = sbr.rel (!%p13_p4) target bundleno = 1 (0x1), region = 87 }

</bundles_post_ra>
